<compile_context>
chip_gen: v5e
topology: v5e:2x2
jax: 0.10.0
libtpu: 0.0.40
codegen_flags: <defaults>
</compile_context>

<pallas_src>
import math
from functools import partial

import numpy as np
import jax
import jax.numpy as jnp
from jax.experimental import pallas as pl
from jax.experimental.pallas import tpu as pltpu


# ----------------------------------------------------------------------------
# In-kernel helpers
# ----------------------------------------------------------------------------
def _erf(x):
    # Abramowitz & Stegun 7.1.26 rational approximation (|err| < 1.5e-7);
    # built from ops Mosaic lowers cheaply (exp / mul / where).
    a = jnp.abs(x)
    t = 1.0 / (1.0 + 0.3275911 * a)
    poly = ((((1.061405429 * t - 1.453152027) * t + 1.421413741) * t
             - 0.284496736) * t + 0.254829592) * t
    y = 1.0 - poly * jnp.exp(-a * a)
    return jnp.where(x >= 0.0, y, -y)


def _gelu_exact(x):
    # nn.GELU() default (erf-based, not tanh approximation)
    return 0.5 * x * (1.0 + _erf(x * (1.0 / math.sqrt(2.0))))


def _layernorm_rows(x, g, b, eps):
    mu = jnp.mean(x, axis=-1, keepdims=True)
    var = jnp.mean((x - mu) ** 2, axis=-1, keepdims=True)
    return (x - mu) * jax.lax.rsqrt(var + eps) * g + b


# ----------------------------------------------------------------------------
# Tiling helpers (host side, static)
# ----------------------------------------------------------------------------
def _largest_divisor_leq(n, target):
    best = 1
    for d in range(1, min(n, target) + 1):
        if n % d == 0:
            best = d
    return best


def _pick_window_batch(total_windows, n_win_per_img, seq, target_rows=256):
    """Windows per grid step. Candidates keep the (nW, N, N) shift mask
    expressible via BlockSpec: either a divisor of nW, or whole images."""
    n_img = total_windows // n_win_per_img
    cands = sorted(
        {d for d in range(1, n_win_per_img + 1) if n_win_per_img % d == 0}
        | {n_win_per_img * m for m in range(1, n_img + 1) if n_img % m == 0})
    for c in cands:
        if c * seq >= target_rows:
            return c
    return cands[-1]


# ----------------------------------------------------------------------------
# Pallas kernels
# ----------------------------------------------------------------------------
def _win_attn_kernel(x_ref, g_ref, b_ref, wqkv_ref, bqkv_ref, wproj_ref,
                     bproj_ref, rpb_ref, *rest, num_heads, head_dim, scale,
                     wins, seq, apply_ln, eps, masked, mask_rep):
    if masked:
        mask_ref, o_ref = rest
    else:
        (o_ref,) = rest

    C = num_heads * head_dim
    x = x_ref[...].astype(jnp.float32)                       # (wins*seq, C)
    if apply_ln:                                             # fused LayerNorm1
        x = _layernorm_rows(x, g_ref[...], b_ref[...], eps)

    # One MXU-shaped QKV projection over the whole window slab.
    qkv = jnp.dot(x, wqkv_ref[...],
                  preferred_element_type=jnp.float32) + bqkv_ref[...]
    qkv = qkv.reshape(wins, seq, 3 * C)

    if masked:
        mask = mask_ref[...]                                 # (wins|nW, N, N)

    heads = []
    for h in range(num_heads):
        q = qkv[:, :, h * head_dim:(h + 1) * head_dim] * scale
        k = qkv[:, :, C + h * head_dim:C + (h + 1) * head_dim]
        v = qkv[:, :, 2 * C + h * head_dim:2 * C + (h + 1) * head_dim]
        # Window-batched QK^T: (wins, N, N)
        s = jnp.einsum('wqd,wkd->wqk', q, k,
                       preferred_element_type=jnp.float32)
        s = s + rpb_ref[h]                                   # (N, N) broadcast
        if masked:
            if mask_rep > 1:
                # slab covers mask_rep whole images; broadcast the nW masks
                s = (s.reshape(mask_rep, wins // mask_rep, seq, seq)
                     + mask[None]).reshape(wins, seq, seq)
            else:
                s = s + mask
        # softmax in f32; the divide goes to the (otherwise idle) EUP slot
        m = jnp.max(s, axis=-1, keepdims=True)
        e = jnp.exp(s - m)
        p = e * pl.reciprocal(jnp.sum(e, axis=-1, keepdims=True), approx=True)
        heads.append(jnp.einsum('wqk,wkd->wqd', p, v,
                                preferred_element_type=jnp.float32))

    # Concatenate heads, then ONE (rows, C) @ (C, C) output projection.
    o = jnp.concatenate(heads, axis=-1).reshape(wins * seq, C)
    out = jnp.dot(o, wproj_ref[...],
                  preferred_element_type=jnp.float32) + bproj_ref[...]
    o_ref[...] = out.astype(o_ref.dtype)


def window_attention(xw, gamma, beta, wqkv, bqkv, wproj, bproj, rpb, mask,
                     num_heads, n_win_per_img, apply_ln):
    """xw: (B*nW, N, C); mask: (nW, N, N) or None; rpb: (nH, N, N)."""
    Bw, N, C = xw.shape
    head_dim = C // num_heads
    scale = head_dim ** (-0.5)
    wins = _pick_window_batch(Bw, n_win_per_img, N)
    rows = wins * N
    x2 = xw.reshape(Bw * N, C)

    masked = mask is not None
    mask_rep = wins // n_win_per_img if (masked and wins > n_win_per_img) else 1
    kernel = partial(_win_attn_kernel, num_heads=num_heads, head_dim=head_dim,
                     scale=scale, wins=wins, seq=N, apply_ln=apply_ln,
                     eps=1e-5, masked=masked, mask_rep=mask_rep)

    in_specs = [
        pl.BlockSpec((rows, C), lambda s: (s, 0)),
        pl.BlockSpec((1, C), lambda s: (0, 0)),
        pl.BlockSpec((1, C), lambda s: (0, 0)),
        pl.BlockSpec((C, 3 * C), lambda s: (0, 0)),
        pl.BlockSpec((1, 3 * C), lambda s: (0, 0)),
        pl.BlockSpec((C, C), lambda s: (0, 0)),
        pl.BlockSpec((1, C), lambda s: (0, 0)),
        pl.BlockSpec((num_heads, N, N), lambda s: (0, 0, 0)),
    ]
    args = [x2, gamma.reshape(1, C), beta.reshape(1, C), wqkv,
            bqkv.reshape(1, 3 * C), wproj, bproj.reshape(1, C), rpb]
    if masked:
        if wins >= n_win_per_img:
            # slab = whole images: the full (nW, N, N) mask, reused each step
            in_specs.append(pl.BlockSpec((n_win_per_img, N, N),
                                         lambda s: (0, 0, 0)))
        else:
            nb = n_win_per_img // wins
            in_specs.append(pl.BlockSpec((wins, N, N),
                                         lambda s: (s % nb, 0, 0)))
        args.append(mask)

    out = pl.pallas_call(
        kernel,
        out_shape=jax.ShapeDtypeStruct((Bw * N, C), xw.dtype),
        grid=(Bw * N // rows,),
        in_specs=in_specs,
        out_specs=pl.BlockSpec((rows, C), lambda s: (s, 0)),
        compiler_params=pltpu.CompilerParams(
            dimension_semantics=("parallel",)),
    )(*args)
    return out.reshape(Bw, N, C)


def _block_tail_kernel(short_ref, attn_ref, g_ref, b_ref, w1_ref, b1_ref,
                       w2_ref, b2_ref, o_ref, *, eps):
    # x = shortcut + attn ;  out = x + fc2(gelu(fc1(LN(x))))
    s = short_ref[...].astype(jnp.float32) + attn_ref[...].astype(jnp.float32)
    y = _layernorm_rows(s, g_ref[...], b_ref[...], eps)
    h = jnp.dot(y, w1_ref[...], preferred_element_type=jnp.float32) + b1_ref[...]
    h = _gelu_exact(h)
    out = s + jnp.dot(h, w2_ref[...],
                      preferred_element_type=jnp.float32) + b2_ref[...]
    o_ref[...] = out.astype(o_ref.dtype)


def block_tail(shortcut, attn_out, gamma, beta, w1, b1, w2, b2):
    """Fused: attention residual + LayerNorm2 + MLP + MLP residual."""
    R, C = shortcut.shape
    Hd = w1.shape[1]
    T = _largest_divisor_leq(R, 512)
    return pl.pallas_call(
        partial(_block_tail_kernel, eps=1e-5),
        out_shape=jax.ShapeDtypeStruct((R, C), shortcut.dtype),
        grid=(R // T,),
        in_specs=[
            pl.BlockSpec((T, C), lambda s: (s, 0)),
            pl.BlockSpec((T, C), lambda s: (s, 0)),
            pl.BlockSpec((1, C), lambda s: (0, 0)),
            pl.BlockSpec((1, C), lambda s: (0, 0)),
            pl.BlockSpec((C, Hd), lambda s: (0, 0)),
            pl.BlockSpec((1, Hd), lambda s: (0, 0)),
            pl.BlockSpec((Hd, C), lambda s: (0, 0)),
            pl.BlockSpec((1, C), lambda s: (0, 0)),
        ],
        out_specs=pl.BlockSpec((T, C), lambda s: (s, 0)),
        compiler_params=pltpu.CompilerParams(
            dimension_semantics=("parallel",)),
    )(shortcut, attn_out, gamma.reshape(1, C), beta.reshape(1, C),
      w1, b1.reshape(1, Hd), w2, b2.reshape(1, C))


def _layernorm_kernel(x_ref, g_ref, b_ref, o_ref, *, eps):
    o_ref[...] = _layernorm_rows(x_ref[...].astype(jnp.float32),
                                 g_ref[...], b_ref[...], eps
                                 ).astype(o_ref.dtype)


def layernorm(x2, gamma, beta, eps=1e-5):
    """Standalone LN (only used on the padded-resolution fallback path)."""
    R, C = x2.shape
    T = _largest_divisor_leq(R, 512)
    return pl.pallas_call(
        partial(_layernorm_kernel, eps=eps),
        out_shape=jax.ShapeDtypeStruct((R, C), x2.dtype),
        grid=(R // T,),
        in_specs=[pl.BlockSpec((T, C), lambda s: (s, 0)),
                  pl.BlockSpec((1, C), lambda s: (0, 0)),
                  pl.BlockSpec((1, C), lambda s: (0, 0))],
        out_specs=pl.BlockSpec((T, C), lambda s: (s, 0)),
        compiler_params=pltpu.CompilerParams(
            dimension_semantics=("parallel",)),
    )(x2, gamma.reshape(1, C), beta.reshape(1, C))


# ----------------------------------------------------------------------------
# Plain-JAX / numpy glue (windowing, masks, relative position index)
# ----------------------------------------------------------------------------
def relative_position_index(ws):
    coords = np.stack(np.meshgrid(np.arange(ws), np.arange(ws), indexing="ij"))
    coords_flatten = coords.reshape(2, -1)
    rel = coords_flatten[:, :, None] - coords_flatten[:, None, :]
    rel = rel.transpose(1, 2, 0).copy()
    rel[:, :, 0] += ws - 1
    rel[:, :, 1] += ws - 1
    rel[:, :, 0] *= 2 * ws - 1
    return rel.sum(-1)                                  # (N, N)


def create_mask(H, W, window_size, shift_size):
    # Reproduces BasicLayer.create_mask exactly (including the reference's
    # w_slices quirk: slice(-ws, -ws) is empty and slice(-ws, None) follows).
    Hp = int(np.ceil(H / window_size)) * window_size
    Wp = int(np.ceil(W / window_size)) * window_size
    img_mask = np.zeros((1, Hp, Wp, 1), np.float32)
    h_slices = (slice(0, -window_size),
                slice(-window_size, -shift_size),
                slice(-shift_size, None))
    w_slices = (slice(0, -window_size),
                slice(-window_size, -window_size),
                slice(-window_size, None))
    cnt = 0
    for h in h_slices:
        for w in w_slices:
            img_mask[:, h, w, :] = cnt
            cnt += 1
    mw = img_mask.reshape(1, Hp // window_size, window_size,
                          Wp // window_size, window_size, 1)
    mw = mw.transpose(0, 1, 3, 2, 4, 5).reshape(-1, window_size * window_size)
    attn_mask = mw[:, None, :] - mw[:, :, None]
    attn_mask = np.where(attn_mask != 0, -100.0, 0.0).astype(np.float32)
    return attn_mask                                    # (nW, N, N)


def swin_block(x, p, H, W, window_size, shift_size, attn_mask, num_heads):
    B, L, C = x.shape
    N = window_size * window_size
    shortcut = x

    pad_r = (window_size - W % window_size) % window_size
    pad_d = (window_size - H % window_size) % window_size
    fuse_ln1 = (pad_r == 0 and pad_d == 0)

    if fuse_ln1:
        xs = x                                   # LN1 happens inside attention
    else:
        # TODO(synk): padded resolutions must normalize before zero-padding, so
        # LN1 runs standalone and is skipped inside the attention kernel.
        xs = layernorm(x.reshape(B * L, C),
                       p["ln1_g"], p["ln1_b"]).reshape(B, L, C)

    xs = xs.reshape(B, H, W, C)
    xs = jnp.pad(xs, ((0, 0), (0, pad_d), (0, pad_r), (0, 0)))
    Hp, Wp = H + pad_d, W + pad_r
    nW = (Hp // window_size) * (Wp // window_size)

    if shift_size > 0:
        xs = jnp.roll(xs, (-shift_size, -shift_size), axis=(1, 2))
        mask = attn_mask                          # (nW, N, N)
    else:
        mask = None                               # mask-free kernel variant

    # window_partition (plain XLA reshape/transpose; fuses with pad/roll)
    xw = xs.reshape(B, Hp // window_size, window_size, Wp // window_size,
                    window_size, C)
    xw = xw.transpose(0, 1, 3, 2, 4, 5).reshape(B * nW, N, C)

    aw = window_attention(xw, p["ln1_g"], p["ln1_b"], p["qkv_w"], p["qkv_b"],
                          p["proj_w"], p["proj_b"], p["rpb"], mask,
                          num_heads, nW, apply_ln=fuse_ln1)

    # window_reverse
    xr = aw.reshape(B, Hp // window_size, Wp // window_size, window_size,
                    window_size, C)
    xr = xr.transpose(0, 1, 3, 2, 4, 5).reshape(B, Hp, Wp, C)
    if shift_size > 0:
        xr = jnp.roll(xr, (shift_size, shift_size), axis=(1, 2))
    xr = xr[:, :H, :W, :].reshape(B * L, C)

    # attention residual + LN2 + MLP + MLP residual, one fused kernel
    out = block_tail(shortcut.reshape(B * L, C), xr, p["ln2_g"], p["ln2_b"],
                     p["fc1_w"], p["fc1_b"], p["fc2_w"], p["fc2_b"])
    return out.reshape(B, L, C)


def basic_layer(x, params, H, W, window_size, num_heads):
    shift_size = window_size // 2
    attn_mask = jnp.asarray(create_mask(H, W, window_size, shift_size))
    for i, p in enumerate(params["blocks"]):
        ss = 0 if i % 2 == 0 else shift_size
        x = swin_block(x, p, H, W, window_size, ss, attn_mask, num_heads)
    # TODO(synk): downsample=None in this configuration, so no PatchMerging.
    return x, H, W


# ----------------------------------------------------------------------------
# Deterministic parameter init
# ----------------------------------------------------------------------------
def init_params(key, dim, depth, num_heads, window_size, mlp_ratio=4.0):
    hidden = int(dim * mlp_ratio)
    N = window_size * window_size
    nbias = (2 * window_size - 1) ** 2
    rpi = relative_position_index(window_size).reshape(-1)    # numpy (N*N,)
    blocks = []
    for i in range(depth):
        ks = jax.random.split(jax.random.fold_in(key, i), 8)
        rpb_table = 0.02 * jax.random.truncated_normal(
            ks[4], -2.0, 2.0, (nbias, num_heads), jnp.float32)
        # Precompute the (nH, N, N) relative-position bias once (hoisted gather)
        rpb = jnp.transpose(rpb_table[rpi].reshape(N, N, num_heads), (2, 0, 1))
        p = dict(
            ln1_g=jnp.ones((dim,), jnp.float32),
            ln1_b=jnp.zeros((dim,), jnp.float32),
            qkv_w=0.02 * jax.random.normal(ks[0], (dim, 3 * dim), jnp.float32),
            qkv_b=0.02 * jax.random.normal(ks[1], (3 * dim,), jnp.float32),
            proj_w=0.02 * jax.random.normal(ks[2], (dim, dim), jnp.float32),
            proj_b=0.02 * jax.random.normal(ks[3], (dim,), jnp.float32),
            rpb=rpb,
            ln2_g=jnp.ones((dim,), jnp.float32),
            ln2_b=jnp.zeros((dim,), jnp.float32),
            fc1_w=0.02 * jax.random.normal(ks[5], (dim, hidden), jnp.float32),
            fc1_b=jnp.zeros((hidden,), jnp.float32),
            fc2_w=0.02 * jax.random.normal(ks[6], (hidden, dim), jnp.float32),
            fc2_b=jnp.zeros((dim,), jnp.float32),
        )
        blocks.append(p)
    return {"blocks": blocks}


# ----------------------------------------------------------------------------
if __name__ == "__main__":
    B, H, W = 2, 8, 8
    dim, depth, num_heads, window_size = 32, 2, 4, 4

    key = jax.random.PRNGKey(0)
    kx, kp = jax.random.split(key)
    x = jax.random.normal(kx, (B, H * W, dim), jnp.float32)
    params = init_params(kp, dim, depth, num_heads, window_size)

    out, Ho, Wo = basic_layer(x, params, H, W, window_size, num_heads)
    out = jax.block_until_ready(out)
    assert out.shape == (B, H * W, dim) and (Ho, Wo) == (H, W)
    assert bool(jnp.all(jnp.isfinite(out)))
    print("KERNEL_OK")
</pallas_src>

<mosaic_0001>
module attributes {stable_mosaic.version = 11 : i64} {
  func.func @_win_attn_kernel(%arg0: i32, %arg1: memref<128x32xf32, #tpu.memory_space<vmem>>, %arg2: memref<1x32xf32, #tpu.memory_space<vmem>>, %arg3: memref<1x32xf32, #tpu.memory_space<vmem>>, %arg4: memref<32x96xf32, #tpu.memory_space<vmem>>, %arg5: memref<1x96xf32, #tpu.memory_space<vmem>>, %arg6: memref<32x32xf32, #tpu.memory_space<vmem>>, %arg7: memref<1x32xf32, #tpu.memory_space<vmem>>, %arg8: memref<4x16x16xf32, #tpu.memory_space<vmem>>, %arg9: memref<128x32xf32, #tpu.memory_space<vmem>>) attributes {dimension_semantics = [#tpu.dimension_semantics<parallel>], iteration_bounds = array<i64: 1>, scalar_prefetch = 0 : i64, scratch_operands = 0 : i64, tpu.core_type = #tpu.core_type<tc>, window_params = [{transform_indices = @transform_0, window_bounds = array<i64: 128, 32>}, {pipeline_mode = #tpu.pipeline_mode<synchronous>, transform_indices = @transform_1, window_bounds = array<i64: 1, 32>}, {pipeline_mode = #tpu.pipeline_mode<synchronous>, transform_indices = @transform_2, window_bounds = array<i64: 1, 32>}, {pipeline_mode = #tpu.pipeline_mode<synchronous>, transform_indices = @transform_3, window_bounds = array<i64: 32, 96>}, {pipeline_mode = #tpu.pipeline_mode<synchronous>, transform_indices = @transform_4, window_bounds = array<i64: 1, 96>}, {pipeline_mode = #tpu.pipeline_mode<synchronous>, transform_indices = @transform_5, window_bounds = array<i64: 32, 32>}, {pipeline_mode = #tpu.pipeline_mode<synchronous>, transform_indices = @transform_6, window_bounds = array<i64: 1, 32>}, {pipeline_mode = #tpu.pipeline_mode<synchronous>, transform_indices = @transform_7, window_bounds = array<i64: 4, 16, 16>}, {transform_indices = @transform_8, window_bounds = array<i64: 128, 32>}]} {
    %c0 = arith.constant 0 : index
    %c0_0 = arith.constant 0 : index
    %0 = vector.load %arg1[%c0, %c0_0] : memref<128x32xf32, #tpu.memory_space<vmem>>, vector<128x32xf32>
    %c0_1 = arith.constant 0 : index
    %c0_2 = arith.constant 0 : index
    %1 = vector.load %arg2[%c0_1, %c0_2] : memref<1x32xf32, #tpu.memory_space<vmem>>, vector<1x32xf32>
    %c0_3 = arith.constant 0 : index
    %c0_4 = arith.constant 0 : index
    %2 = vector.load %arg3[%c0_3, %c0_4] : memref<1x32xf32, #tpu.memory_space<vmem>>, vector<1x32xf32>
    %cst = arith.constant dense<0.000000e+00> : vector<128xf32>
    %3 = vector.multi_reduction <add>, %0, %cst [1] : vector<128x32xf32> to vector<128xf32>
    %4 = vector.shape_cast %3 : vector<128xf32> to vector<128x1xf32>
    %cst_5 = arith.constant 3.200000e+01 : f32
    %5 = vector.broadcast %cst_5 : f32 to vector<128x1xf32>
    %6 = arith.divf %4, %5 : vector<128x1xf32>
    %7 = vector.broadcast %6 : vector<128x1xf32> to vector<128x32xf32>
    %8 = arith.subf %0, %7 : vector<128x32xf32>
    %9 = arith.mulf %8, %8 : vector<128x32xf32>
    %cst_6 = arith.constant dense<0.000000e+00> : vector<128xf32>
    %10 = vector.multi_reduction <add>, %9, %cst_6 [1] : vector<128x32xf32> to vector<128xf32>
    %11 = vector.shape_cast %10 : vector<128xf32> to vector<128x1xf32>
    %cst_7 = arith.constant 3.200000e+01 : f32
    %12 = vector.broadcast %cst_7 : f32 to vector<128x1xf32>
    %13 = arith.divf %11, %12 : vector<128x1xf32>
    %14 = vector.broadcast %6 : vector<128x1xf32> to vector<128x32xf32>
    %15 = arith.subf %0, %14 : vector<128x32xf32>
    %cst_8 = arith.constant 9.99999974E-6 : f32
    %16 = vector.broadcast %cst_8 : f32 to vector<128x1xf32>
    %17 = arith.addf %13, %16 : vector<128x1xf32>
    %18 = math.rsqrt %17 : vector<128x1xf32>
    %19 = vector.broadcast %18 : vector<128x1xf32> to vector<128x32xf32>
    %20 = arith.mulf %15, %19 : vector<128x32xf32>
    %21 = vector.broadcast %1 : vector<1x32xf32> to vector<128x32xf32>
    %22 = arith.mulf %20, %21 : vector<128x32xf32>
    %23 = vector.broadcast %2 : vector<1x32xf32> to vector<128x32xf32>
    %24 = arith.addf %22, %23 : vector<128x32xf32>
    %c0_9 = arith.constant 0 : index
    %c0_10 = arith.constant 0 : index
    %25 = vector.load %arg4[%c0_9, %c0_10] : memref<32x96xf32, #tpu.memory_space<vmem>>, vector<32x96xf32>
    %cst_11 = arith.constant dense<0.000000e+00> : vector<128x96xf32>
    %26 = tpu.matmul %24, %25, %cst_11 {dimension_numbers = #tpu.dot_dimension_numbers<[1], [0], [0], [1], [0, 0, 1, 1], [], []>} : vector<128x32xf32>, vector<32x96xf32>, vector<128x96xf32> -> vector<128x96xf32>
    %c0_12 = arith.constant 0 : index
    %c0_13 = arith.constant 0 : index
    %27 = vector.load %arg5[%c0_12, %c0_13] : memref<1x96xf32, #tpu.memory_space<vmem>>, vector<1x96xf32>
    %28 = vector.broadcast %27 : vector<1x96xf32> to vector<128x96xf32>
    %29 = arith.addf %26, %28 : vector<128x96xf32>
    %30 = vector.shape_cast %29 : vector<128x96xf32> to vector<8x16x96xf32>
    %31 = vector.extract_strided_slice %30 {offsets = [0, 0, 0], sizes = [8, 16, 8], strides = [1, 1, 1]} : vector<8x16x96xf32> to vector<8x16x8xf32>
    %cst_14 = arith.constant 0.353553385 : f32
    %32 = vector.broadcast %cst_14 : f32 to vector<8x16x8xf32>
    %33 = arith.mulf %31, %32 : vector<8x16x8xf32>
    %34 = vector.extract_strided_slice %30 {offsets = [0, 0, 32], sizes = [8, 16, 8], strides = [1, 1, 1]} : vector<8x16x96xf32> to vector<8x16x8xf32>
    %35 = vector.extract_strided_slice %30 {offsets = [0, 0, 64], sizes = [8, 16, 8], strides = [1, 1, 1]} : vector<8x16x96xf32> to vector<8x16x8xf32>
    "tpu.trace_start"() <{level = 10 : i32, message = "wqd,wkd->wqk"}> : () -> ()
    %cst_15 = arith.constant dense<0.000000e+00> : vector<8x16x16xf32>
    %36 = tpu.matmul %33, %34, %cst_15 {dimension_numbers = #tpu.dot_dimension_numbers<[2], [2], [1], [1], [0, 0, 0, 1, 1, 1], [0], [0]>} : vector<8x16x8xf32>, vector<8x16x8xf32>, vector<8x16x16xf32> -> vector<8x16x16xf32>
    "tpu.trace_stop"() : () -> ()
    %c0_16 = arith.constant 0 : index
    %c0_17 = arith.constant 0 : index
    %c0_18 = arith.constant 0 : index
    %37 = vector.load %arg8[%c0_16, %c0_17, %c0_18] : memref<4x16x16xf32, #tpu.memory_space<vmem>>, vector<1x16x16xf32>
    %38 = vector.shape_cast %37 : vector<1x16x16xf32> to vector<16x16xf32>
    %39 = vector.shape_cast %38 : vector<16x16xf32> to vector<1x16x16xf32>
    %40 = vector.broadcast %39 : vector<1x16x16xf32> to vector<8x16x16xf32>
    %41 = arith.addf %36, %40 : vector<8x16x16xf32>
    %cst_19 = arith.constant dense<0xFF800000> : vector<8x16xf32>
    %42 = vector.multi_reduction <maximumf>, %41, %cst_19 [2] : vector<8x16x16xf32> to vector<8x16xf32>
    %43 = vector.shape_cast %42 : vector<8x16xf32> to vector<8x16x1xf32>
    %44 = vector.broadcast %43 : vector<8x16x1xf32> to vector<8x16x16xf32>
    %45 = arith.subf %41, %44 : vector<8x16x16xf32>
    %46 = math.exp %45 : vector<8x16x16xf32>
    %cst_20 = arith.constant dense<0.000000e+00> : vector<8x16xf32>
    %47 = vector.multi_reduction <add>, %46, %cst_20 [2] : vector<8x16x16xf32> to vector<8x16xf32>
    %48 = vector.shape_cast %47 : vector<8x16xf32> to vector<8x16x1xf32>
    %49 = tpu.reciprocal %48 {approx = true} : vector<8x16x1xf32> -> vector<8x16x1xf32>
    %50 = vector.broadcast %49 : vector<8x16x1xf32> to vector<8x16x16xf32>
    %51 = arith.mulf %46, %50 : vector<8x16x16xf32>
    "tpu.trace_start"() <{level = 10 : i32, message = "wqk,wkd->wqd"}> : () -> ()
    %cst_21 = arith.constant dense<0.000000e+00> : vector<8x16x8xf32>
    %52 = tpu.matmul %51, %35, %cst_21 {dimension_numbers = #tpu.dot_dimension_numbers<[2], [1], [1], [2], [0, 0, 0, 1, 1, 2], [0], [0]>} : vector<8x16x16xf32>, vector<8x16x8xf32>, vector<8x16x8xf32> -> vector<8x16x8xf32>
    "tpu.trace_stop"() : () -> ()
    %53 = vector.extract_strided_slice %30 {offsets = [0, 0, 8], sizes = [8, 16, 8], strides = [1, 1, 1]} : vector<8x16x96xf32> to vector<8x16x8xf32>
    %cst_22 = arith.constant 0.353553385 : f32
    %54 = vector.broadcast %cst_22 : f32 to vector<8x16x8xf32>
    %55 = arith.mulf %53, %54 : vector<8x16x8xf32>
    %56 = vector.extract_strided_slice %30 {offsets = [0, 0, 40], sizes = [8, 16, 8], strides = [1, 1, 1]} : vector<8x16x96xf32> to vector<8x16x8xf32>
    %57 = vector.extract_strided_slice %30 {offsets = [0, 0, 72], sizes = [8, 16, 8], strides = [1, 1, 1]} : vector<8x16x96xf32> to vector<8x16x8xf32>
    "tpu.trace_start"() <{level = 10 : i32, message = "wqd,wkd->wqk"}> : () -> ()
    %cst_23 = arith.constant dense<0.000000e+00> : vector<8x16x16xf32>
    %58 = tpu.matmul %55, %56, %cst_23 {dimension_numbers = #tpu.dot_dimension_numbers<[2], [2], [1], [1], [0, 0, 0, 1, 1, 1], [0], [0]>} : vector<8x16x8xf32>, vector<8x16x8xf32>, vector<8x16x16xf32> -> vector<8x16x16xf32>
    "tpu.trace_stop"() : () -> ()
    %c1 = arith.constant 1 : index
    %c0_24 = arith.constant 0 : index
    %c0_25 = arith.constant 0 : index
    %59 = vector.load %arg8[%c1, %c0_24, %c0_25] : memref<4x16x16xf32, #tpu.memory_space<vmem>>, vector<1x16x16xf32>
    %60 = vector.shape_cast %59 : vector<1x16x16xf32> to vector<16x16xf32>
    %61 = vector.shape_cast %60 : vector<16x16xf32> to vector<1x16x16xf32>
    %62 = vector.broadcast %61 : vector<1x16x16xf32> to vector<8x16x16xf32>
    %63 = arith.addf %58, %62 : vector<8x16x16xf32>
    %cst_26 = arith.constant dense<0xFF800000> : vector<8x16xf32>
    %64 = vector.multi_reduction <maximumf>, %63, %cst_26 [2] : vector<8x16x16xf32> to vector<8x16xf32>
    %65 = vector.shape_cast %64 : vector<8x16xf32> to vector<8x16x1xf32>
    %66 = vector.broadcast %65 : vector<8x16x1xf32> to vector<8x16x16xf32>
    %67 = arith.subf %63, %66 : vector<8x16x16xf32>
    %68 = math.exp %67 : vector<8x16x16xf32>
    %cst_27 = arith.constant dense<0.000000e+00> : vector<8x16xf32>
    %69 = vector.multi_reduction <add>, %68, %cst_27 [2] : vector<8x16x16xf32> to vector<8x16xf32>
    %70 = vector.shape_cast %69 : vector<8x16xf32> to vector<8x16x1xf32>
    %71 = tpu.reciprocal %70 {approx = true} : vector<8x16x1xf32> -> vector<8x16x1xf32>
    %72 = vector.broadcast %71 : vector<8x16x1xf32> to vector<8x16x16xf32>
    %73 = arith.mulf %68, %72 : vector<8x16x16xf32>
    "tpu.trace_start"() <{level = 10 : i32, message = "wqk,wkd->wqd"}> : () -> ()
    %cst_28 = arith.constant dense<0.000000e+00> : vector<8x16x8xf32>
    %74 = tpu.matmul %73, %57, %cst_28 {dimension_numbers = #tpu.dot_dimension_numbers<[2], [1], [1], [2], [0, 0, 0, 1, 1, 2], [0], [0]>} : vector<8x16x16xf32>, vector<8x16x8xf32>, vector<8x16x8xf32> -> vector<8x16x8xf32>
    "tpu.trace_stop"() : () -> ()
    %75 = vector.extract_strided_slice %30 {offsets = [0, 0, 16], sizes = [8, 16, 8], strides = [1, 1, 1]} : vector<8x16x96xf32> to vector<8x16x8xf32>
    %cst_29 = arith.constant 0.353553385 : f32
    %76 = vector.broadcast %cst_29 : f32 to vector<8x16x8xf32>
    %77 = arith.mulf %75, %76 : vector<8x16x8xf32>
    %78 = vector.extract_strided_slice %30 {offsets = [0, 0, 48], sizes = [8, 16, 8], strides = [1, 1, 1]} : vector<8x16x96xf32> to vector<8x16x8xf32>
    %79 = vector.extract_strided_slice %30 {offsets = [0, 0, 80], sizes = [8, 16, 8], strides = [1, 1, 1]} : vector<8x16x96xf32> to vector<8x16x8xf32>
    "tpu.trace_start"() <{level = 10 : i32, message = "wqd,wkd->wqk"}> : () -> ()
    %cst_30 = arith.constant dense<0.000000e+00> : vector<8x16x16xf32>
    %80 = tpu.matmul %77, %78, %cst_30 {dimension_numbers = #tpu.dot_dimension_numbers<[2], [2], [1], [1], [0, 0, 0, 1, 1, 1], [0], [0]>} : vector<8x16x8xf32>, vector<8x16x8xf32>, vector<8x16x16xf32> -> vector<8x16x16xf32>
    "tpu.trace_stop"() : () -> ()
    %c2 = arith.constant 2 : index
    %c0_31 = arith.constant 0 : index
    %c0_32 = arith.constant 0 : index
    %81 = vector.load %arg8[%c2, %c0_31, %c0_32] : memref<4x16x16xf32, #tpu.memory_space<vmem>>, vector<1x16x16xf32>
    %82 = vector.shape_cast %81 : vector<1x16x16xf32> to vector<16x16xf32>
    %83 = vector.shape_cast %82 : vector<16x16xf32> to vector<1x16x16xf32>
    %84 = vector.broadcast %83 : vector<1x16x16xf32> to vector<8x16x16xf32>
    %85 = arith.addf %80, %84 : vector<8x16x16xf32>
    %cst_33 = arith.constant dense<0xFF800000> : vector<8x16xf32>
    %86 = vector.multi_reduction <maximumf>, %85, %cst_33 [2] : vector<8x16x16xf32> to vector<8x16xf32>
    %87 = vector.shape_cast %86 : vector<8x16xf32> to vector<8x16x1xf32>
    %88 = vector.broadcast %87 : vector<8x16x1xf32> to vector<8x16x16xf32>
    %89 = arith.subf %85, %88 : vector<8x16x16xf32>
    %90 = math.exp %89 : vector<8x16x16xf32>
    %cst_34 = arith.constant dense<0.000000e+00> : vector<8x16xf32>
    %91 = vector.multi_reduction <add>, %90, %cst_34 [2] : vector<8x16x16xf32> to vector<8x16xf32>
    %92 = vector.shape_cast %91 : vector<8x16xf32> to vector<8x16x1xf32>
    %93 = tpu.reciprocal %92 {approx = true} : vector<8x16x1xf32> -> vector<8x16x1xf32>
    %94 = vector.broadcast %93 : vector<8x16x1xf32> to vector<8x16x16xf32>
    %95 = arith.mulf %90, %94 : vector<8x16x16xf32>
    "tpu.trace_start"() <{level = 10 : i32, message = "wqk,wkd->wqd"}> : () -> ()
    %cst_35 = arith.constant dense<0.000000e+00> : vector<8x16x8xf32>
    %96 = tpu.matmul %95, %79, %cst_35 {dimension_numbers = #tpu.dot_dimension_numbers<[2], [1], [1], [2], [0, 0, 0, 1, 1, 2], [0], [0]>} : vector<8x16x16xf32>, vector<8x16x8xf32>, vector<8x16x8xf32> -> vector<8x16x8xf32>
    "tpu.trace_stop"() : () -> ()
    %97 = vector.extract_strided_slice %30 {offsets = [0, 0, 24], sizes = [8, 16, 8], strides = [1, 1, 1]} : vector<8x16x96xf32> to vector<8x16x8xf32>
    %cst_36 = arith.constant 0.353553385 : f32
    %98 = vector.broadcast %cst_36 : f32 to vector<8x16x8xf32>
    %99 = arith.mulf %97, %98 : vector<8x16x8xf32>
    %100 = vector.extract_strided_slice %30 {offsets = [0, 0, 56], sizes = [8, 16, 8], strides = [1, 1, 1]} : vector<8x16x96xf32> to vector<8x16x8xf32>
    %101 = vector.extract_strided_slice %30 {offsets = [0, 0, 88], sizes = [8, 16, 8], strides = [1, 1, 1]} : vector<8x16x96xf32> to vector<8x16x8xf32>
    "tpu.trace_start"() <{level = 10 : i32, message = "wqd,wkd->wqk"}> : () -> ()
    %cst_37 = arith.constant dense<0.000000e+00> : vector<8x16x16xf32>
    %102 = tpu.matmul %99, %100, %cst_37 {dimension_numbers = #tpu.dot_dimension_numbers<[2], [2], [1], [1], [0, 0, 0, 1, 1, 1], [0], [0]>} : vector<8x16x8xf32>, vector<8x16x8xf32>, vector<8x16x16xf32> -> vector<8x16x16xf32>
    "tpu.trace_stop"() : () -> ()
    %c3 = arith.constant 3 : index
    %c0_38 = arith.constant 0 : index
    %c0_39 = arith.constant 0 : index
    %103 = vector.load %arg8[%c3, %c0_38, %c0_39] : memref<4x16x16xf32, #tpu.memory_space<vmem>>, vector<1x16x16xf32>
    %104 = vector.shape_cast %103 : vector<1x16x16xf32> to vector<16x16xf32>
    %105 = vector.shape_cast %104 : vector<16x16xf32> to vector<1x16x16xf32>
    %106 = vector.broadcast %105 : vector<1x16x16xf32> to vector<8x16x16xf32>
    %107 = arith.addf %102, %106 : vector<8x16x16xf32>
    %cst_40 = arith.constant dense<0xFF800000> : vector<8x16xf32>
    %108 = vector.multi_reduction <maximumf>, %107, %cst_40 [2] : vector<8x16x16xf32> to vector<8x16xf32>
    %109 = vector.shape_cast %108 : vector<8x16xf32> to vector<8x16x1xf32>
    %110 = vector.broadcast %109 : vector<8x16x1xf32> to vector<8x16x16xf32>
    %111 = arith.subf %107, %110 : vector<8x16x16xf32>
    %112 = math.exp %111 : vector<8x16x16xf32>
    %cst_41 = arith.constant dense<0.000000e+00> : vector<8x16xf32>
    %113 = vector.multi_reduction <add>, %112, %cst_41 [2] : vector<8x16x16xf32> to vector<8x16xf32>
    %114 = vector.shape_cast %113 : vector<8x16xf32> to vector<8x16x1xf32>
    %115 = tpu.reciprocal %114 {approx = true} : vector<8x16x1xf32> -> vector<8x16x1xf32>
    %116 = vector.broadcast %115 : vector<8x16x1xf32> to vector<8x16x16xf32>
    %117 = arith.mulf %112, %116 : vector<8x16x16xf32>
    "tpu.trace_start"() <{level = 10 : i32, message = "wqk,wkd->wqd"}> : () -> ()
    %cst_42 = arith.constant dense<0.000000e+00> : vector<8x16x8xf32>
    %118 = tpu.matmul %117, %101, %cst_42 {dimension_numbers = #tpu.dot_dimension_numbers<[2], [1], [1], [2], [0, 0, 0, 1, 1, 2], [0], [0]>} : vector<8x16x16xf32>, vector<8x16x8xf32>, vector<8x16x8xf32> -> vector<8x16x8xf32>
    "tpu.trace_stop"() : () -> ()
    %119 = tpu.concatenate %52, %74, %96, %118 in 2 : vector<8x16x8xf32>, vector<8x16x8xf32>, vector<8x16x8xf32>, vector<8x16x8xf32> -> vector<8x16x32xf32>
    %120 = vector.shape_cast %119 : vector<8x16x32xf32> to vector<128x32xf32>
    %c0_43 = arith.constant 0 : index
    %c0_44 = arith.constant 0 : index
    %121 = vector.load %arg6[%c0_43, %c0_44] : memref<32x32xf32, #tpu.memory_space<vmem>>, vector<32x32xf32>
    %cst_45 = arith.constant dense<0.000000e+00> : vector<128x32xf32>
    %122 = tpu.matmul %120, %121, %cst_45 {dimension_numbers = #tpu.dot_dimension_numbers<[1], [0], [0], [1], [0, 0, 1, 1], [], []>} : vector<128x32xf32>, vector<32x32xf32>, vector<128x32xf32> -> vector<128x32xf32>
    %c0_46 = arith.constant 0 : index
    %c0_47 = arith.constant 0 : index
    %123 = vector.load %arg7[%c0_46, %c0_47] : memref<1x32xf32, #tpu.memory_space<vmem>>, vector<1x32xf32>
    %124 = vector.broadcast %123 : vector<1x32xf32> to vector<128x32xf32>
    %125 = arith.addf %122, %124 : vector<128x32xf32>
    %c0_48 = arith.constant 0 : index
    %c0_49 = arith.constant 0 : index
    %126 = vector.load %arg9[%c0_48, %c0_49] : memref<128x32xf32, #tpu.memory_space<vmem>>, vector<128x32xf32>
    tpu.vector_store %arg9[%c0_48, %c0_49], %125 {strides = array<i32>} : memref<128x32xf32, #tpu.memory_space<vmem>>, vector<128x32xf32>,
    return
  }
  func.func @transform_0(%arg0: i32) -> (i32, i32) {
    %c0_i32 = arith.constant 0 : i32
    %c0_i32_0 = arith.constant 0 : i32
    return %arg0, %c0_i32 : i32, i32
  }
  func.func @transform_1(%arg0: i32) -> (i32, i32) {
    %c0_i32 = arith.constant 0 : i32
    %c0_i32_0 = arith.constant 0 : i32
    %c0_i32_1 = arith.constant 0 : i32
    return %c0_i32, %c0_i32_0 : i32, i32
  }
  func.func @transform_2(%arg0: i32) -> (i32, i32) {
    %c0_i32 = arith.constant 0 : i32
    %c0_i32_0 = arith.constant 0 : i32
    %c0_i32_1 = arith.constant 0 : i32
    return %c0_i32, %c0_i32_0 : i32, i32
  }
  func.func @transform_3(%arg0: i32) -> (i32, i32) {
    %c0_i32 = arith.constant 0 : i32
    %c0_i32_0 = arith.constant 0 : i32
    %c0_i32_1 = arith.constant 0 : i32
    return %c0_i32, %c0_i32_0 : i32, i32
  }
  func.func @transform_4(%arg0: i32) -> (i32, i32) {
    %c0_i32 = arith.constant 0 : i32
    %c0_i32_0 = arith.constant 0 : i32
    %c0_i32_1 = arith.constant 0 : i32
    return %c0_i32, %c0_i32_0 : i32, i32
  }
  func.func @transform_5(%arg0: i32) -> (i32, i32) {
    %c0_i32 = arith.constant 0 : i32
    %c0_i32_0 = arith.constant 0 : i32
    %c0_i32_1 = arith.constant 0 : i32
    return %c0_i32, %c0_i32_0 : i32, i32
  }
  func.func @transform_6(%arg0: i32) -> (i32, i32) {
    %c0_i32 = arith.constant 0 : i32
    %c0_i32_0 = arith.constant 0 : i32
    %c0_i32_1 = arith.constant 0 : i32
    return %c0_i32, %c0_i32_0 : i32, i32
  }
  func.func @transform_7(%arg0: i32) -> (i32, i32, i32) {
    %c0_i32 = arith.constant 0 : i32
    %c0_i32_0 = arith.constant 0 : i32
    %c0_i32_1 = arith.constant 0 : i32
    %c0_i32_2 = arith.constant 0 : i32
    return %c0_i32, %c0_i32_0, %c0_i32_1 : i32, i32, i32
  }
  func.func @transform_8(%arg0: i32) -> (i32, i32) {
    %c0_i32 = arith.constant 0 : i32
    %c0_i32_0 = arith.constant 0 : i32
    return %arg0, %c0_i32 : i32, i32
  }
}

</mosaic_0001>

<bundles_post_ra>
// kernel: tpu_custom_call.1
= control target key start
LH: loop header
LB: loop body
LE: loop exit
PB: predicated region body
PF: predicated region fallthrough
CT: control target
= control target key end

     0   :  { %vm47_vm0 = vcmask 261120   ;;  %v4760_v32 = vmov 32.0   ;;  %s4761_s25 = smov 96   ;;  %s4763_s26 = smov 120   ;;  %s7397_s0 = inlined_call_operand.vmem [shape: f32[128,32], index: 0, kind: input, shape index: {}]   ;;  %s7398_s1 = inlined_call_operand.vmem [shape: f32[1,32], index: 1, kind: input, shape index: {}]   ;;  %s7399_s2 = inlined_call_operand.vmem [shape: f32[1,32], index: 2, kind: input, shape index: {}]   ;;  %s7400_s4 = inlined_call_operand.vmem [shape: f32[1,96], index: 4, kind: input, shape index: {}]   ;;  %s7401_s3 = inlined_call_operand.vmem [shape: f32[32,96], index: 3, kind: input, shape index: {}]   ;;  %s7402_s7 = inlined_call_operand.vmem [shape: f32[4,16,16], index: 7, kind: input, shape index: {}]   ;;  %s7403_s5 = inlined_call_operand.vmem [shape: f32[32,32], index: 5, kind: input, shape index: {}]   ;;  %s7404_s6 = inlined_call_operand.vmem [shape: f32[1,32], index: 6, kind: input, shape index: {}]   ;;  %s7405_s8 = inlined_call_operand.vmem [shape: f32[128,32], index: 8, kind: output, shape index: {}]  }
   0x1   :  { %v4823_v0 = vld [vmem:[%s7397_s0 + $0x40] sm:$0xff]  ;;  %v34_v1 = vld [vmem:[%s7397_s0 + $0x28] sm:$0xff]  ;;  %v4859_v12 = vld [vmem:[%s7397_s0 + $0x30] sm:$0xff]  ;;  %4470 = vrcp.f32 %v4760_v32  ;;  %s4764_s27 = smov 88   ;;  %s4765_s10 = smov 56  }
   0x2   :  { %v29_v2 = vld [vmem:[%s7397_s0] sm:$0xff]  ;;  %v72_v3 = vsel %vm47_vm0, %v4823_v0, 0.0  ;;  %v63_v4 = vsel %vm47_vm0, %v34_v1, 0.0  ;;  %v4838_v6 = vld [vmem:[%s7397_s0 + $0x8] sm:$0xff]  ;;  %v4864_v13 = vld [vmem:[%s7397_s0 + $0x50] sm:$0xff]  ;;  %v66_v15 = vsel %vm47_vm0, %v4859_v12, 0.0 }
   0x3   :  { %v48_v5 = vsel %vm47_vm0, %v29_v2, 0.0  ;;  %73 = vadd.xlane.f32.xlu1 %v72_v3  ;;  %64 = vadd.xlane.f32.xlu2 %v63_v4  ;;  %v4843_v7 = vld [vmem:[%s7397_s0 + $0x48] sm:$0xff]  ;;  %v4848_v8 = vld [vmem:[%s7397_s0 + $0x20] sm:$0xff]  ;;  %v51_v9 = vsel %vm47_vm0, %v4838_v6, 0.0  ;;  %v4869_v14 = vld [vmem:[%s7397_s0 + $0x10] sm:$0xff]  ;;  %v78_v16 = vsel %vm47_vm0, %v4864_v13, 0.0 }
   0x4   :  { %49 = vadd.xlane.f32.xlu0 %v48_v5  ;;  %v75_v10 = vsel %vm47_vm0, %v4843_v7, 0.0  ;;  %v60_v11 = vsel %vm47_vm0, %v4848_v8, 0.0  ;;  %v54_v17 = vsel %vm47_vm0, %v4869_v14, 0.0  ;;  %v4880_v18 = vld [vmem:[%s7397_s0 + $0x38] sm:$0xff]  ;;  %v4885_v19 = vld [vmem:[%s7397_s0 + $0x60] sm:$0xff]  ;;  %v4901_v24 = vld [vmem:[%s7397_s0 + $0x68] sm:$0xff] }
   0x5   :  { %v4890_v20 = vld [vmem:[%s7397_s0 + $0x18] sm:$0xff]  ;;  %v69_v21 = vsel %vm47_vm0, %v4880_v18, 0.0  ;;  %v84_v22 = vsel %vm47_vm0, %v4885_v19, 0.0  ;;  %v4906_v25 = vld [vmem:[%s7397_s0 + $0x70] sm:$0xff]  ;;  %v87_v27 = vsel %vm47_vm0, %v4901_v24, 0.0  ;;  %s4766_s11 = smov 112  }
   0x6   :  { %v57_v23 = vsel %vm47_vm0, %v4890_v20, 0.0  ;;  %v4911_v26 = vld [vmem:[%s7397_s0 + $0x58] sm:$0xff]  ;;  %v90_v28 = vsel %vm47_vm0, %v4906_v25, 0.0  ;;  %s4767_s12 = smov 80   ;;  %s4768_s16 = smov 48  }
   0x7   :  { %v81_v29 = vsel %vm47_vm0, %v4911_v26, 0.0  ;;  %v4922_v30 = vld [vmem:[%s7397_s0 + $0x78] sm:$0xff]  ;;  %v4471_v33 = vpop.eup %4470  ;;  %s4769_s17 = smov 72   ;;  %s4770_s18 = smov 104  }
   0x8   :  { %v93_v31 = vsel %vm47_vm0, %v4922_v30, 0.0  ;;  %v97_v34 = vmul.f32 32.0, %v4471_v33  ;;  %vm101_vm1 = vweird.f32 %v4471_v33  ;;  %s4771_s24 = smov 40  }
   0xa   :  { %v98_v35 = vsub.f32 1.0, %v97_v34 }
   0xb   :  { %52 = vadd.xlane.f32.xlu1 %v51_v9  ;;  %76 = vadd.xlane.f32.xlu2 %v75_v10 }
   0xc   :  { %61 = vadd.xlane.f32.xlu0 %v60_v11  ;;  %v99_v36 = vmul.f32 %v4471_v33, %v98_v35 }
   0xe   :  { %v100_v37 = vadd.f32 %v4471_v33, %v99_v36 }
  0x10   :  { %v4926_v38 = vsel %vm101_vm1, %v4471_v33, %v100_v37 }
  0x13   :  { %67 = vadd.xlane.f32.xlu1 %v66_v15  ;;  %79 = vadd.xlane.f32.xlu2 %v78_v16 }
  0x14   :  { %55 = vadd.xlane.f32.xlu0 %v54_v17 }
  0x1b   :  { %70 = vadd.xlane.f32.xlu1 %v69_v21  ;;  %85 = vadd.xlane.f32.xlu2 %v84_v22 }
  0x1c   :  { %58 = vadd.xlane.f32.xlu0 %v57_v23 }
  0x23   :  { %88 = vadd.xlane.f32.xlu1 %v87_v27  ;;  %91 = vadd.xlane.f32.xlu2 %v90_v28 }
  0x24   :  { %82 = vadd.xlane.f32.xlu0 %v81_v29 }
  0x2b   :  { %94 = vadd.xlane.f32.xlu2 %v93_v31 }
  0x76   :  { %v74_v39 = vpop.xlane.xlu1 %73  ;;  %v65_v40 = vpop.xlane.xlu2 %64 }
  0x77   :  { %v108_v41 = vmul.f32 %v4926_v38, %v65_v40  ;;  %v50_v42 = vpop.xlane.xlu0 %49  ;;  %v111_v43 = vmul.f32 %v4926_v38, %v74_v39 }
  0x78   :  { %v103_v44 = vmul.f32 %v4926_v38, %v50_v42 }
  0x79   :  { %v4931_v45 = vsub.f32 %v34_v1, %v108_v41  ;;  %v4938_v48 = vsub.f32 %v4823_v0, %v111_v43 }
  0x7a   :  { %v4933_v46 = vsub.f32 %v29_v2, %v103_v44 }
  0x7b   :  { %v140_v47 = vmul.f32 %v4931_v45, %v4931_v45  ;;  %v143_v58 = vmul.f32 %v4938_v48, %v4938_v48 }
  0x7c   :  { %v135_v49 = vmul.f32 %v4933_v46, %v4933_v46 }
  0x7d   :  { %v166_v50 = vsel %vm47_vm0, %v140_v47, 0.0  ;;  %v175_v62 = vsel %vm47_vm0, %v143_v58, 0.0 }
  0x7e   :  { %167 = vadd.xlane.f32.xlu2 %v166_v50  ;;  %v53_v51 = vpop.xlane.xlu1 %52  ;;  %v151_v52 = vsel %vm47_vm0, %v135_v49, 0.0  ;;  %v77_v53 = vpop.xlane.xlu2 %76 }
  0x7f   :  { %152 = vadd.xlane.f32.xlu0 %v151_v52  ;;  %v62_v54 = vpop.xlane.xlu0 %61  ;;  %v104_v55 = vmul.f32 %v4926_v38, %v53_v51  ;;  %v112_v57 = vmul.f32 %v4926_v38, %v77_v53 }
  0x80   :  { %v107_v56 = vmul.f32 %v4926_v38, %v62_v54 }
  0x81   :  { %v4953_v60 = vsub.f32 %v4838_v6, %v104_v55  ;;  %v4956_v61 = vsub.f32 %v4843_v7, %v112_v57 }
  0x82   :  { %v4950_v59 = vsub.f32 %v4848_v8, %v107_v56 }
  0x83   :  { %v144_v6 = vmul.f32 %v4956_v61, %v4956_v61  ;;  %v136_v7 = vmul.f32 %v4953_v60, %v4953_v60 }
  0x84   :  { %v139_v63 = vmul.f32 %v4950_v59, %v4950_v59 }
  0x85   :  { %v178_v15 = vsel %vm47_vm0, %v144_v6, 0.0  ;;  %v154_v16 = vsel %vm47_vm0, %v136_v7, 0.0 }
  0x86   :  { %v68_v0 = vpop.xlane.xlu1 %67  ;;  %v163_v1 = vsel %vm47_vm0, %v139_v63, 0.0  ;;  %v80_v2 = vpop.xlane.xlu2 %79  ;;  %v448_v63 = vld [vmem:[%s7401_s3 + $0x18] sm:$0xff] }
  0x87   :  { %v109_v3 = vmul.f32 %v4926_v38, %v68_v0  ;;  %176 = vadd.xlane.f32.xlu0 %v175_v62  ;;  %164 = vadd.xlane.f32.xlu1 %v163_v1  ;;  %v56_v4 = vpop.xlane.xlu0 %55  ;;  %v113_v5 = vmul.f32 %v4926_v38, %v80_v2  ;;  %v446_v0 = vld [vmem:[%s7401_s3 + $0x8] sm:$0xff]  ;;  %v445_v2 = vld [vmem:[%s7401_s3] sm:$0xff] }
  0x88   :  { %v105_v8 = vmul.f32 %v4926_v38, %v56_v4  ;;  %513 = vmatpush.msra.mxu0 %v448_v63  ;;  %4279 = vmatpush.msra.mxu1 %v448_v63 }
  0x89   :  { %v4970_v9 = vsub.f32 %v4859_v12, %v109_v3  ;;  %v4975_v11 = vsub.f32 %v4864_v13, %v113_v5  ;;  %4280 = vmatpush.msra.mxu2 %v448_v63  ;;  %4281 = vmatpush.msra.mxu3 %v448_v63 }
  0x8a   :  { %v4980_v17 = vsub.f32 %v4869_v14, %v105_v8 }
  0x8b   :  { %v141_v10 = vmul.f32 %v4970_v9, %v4970_v9  ;;  %v145_v28 = vmul.f32 %v4975_v11, %v4975_v11 }
  0x8c   :  { %v137_v29 = vmul.f32 %v4980_v17, %v4980_v17 }
  0x8d   :  { %v169_v21 = vsel %vm47_vm0, %v141_v10, 0.0  ;;  %v181_v34 = vsel %vm47_vm0, %v145_v28, 0.0 }
  0x8e   :  { %170 = vadd.xlane.f32.xlu2 %v169_v21  ;;  %v71_v22 = vpop.xlane.xlu1 %70  ;;  %v86_v23 = vpop.xlane.xlu2 %85  ;;  %v157_v35 = vsel %vm47_vm0, %v137_v29, 0.0 }
  0x8f   :  { %v110_v12 = vmul.f32 %v4926_v38, %v71_v22  ;;  %179 = vadd.xlane.f32.xlu0 %v178_v15  ;;  %155 = vadd.xlane.f32.xlu1 %v154_v16  ;;  %v59_v27 = vpop.xlane.xlu0 %58  ;;  %v115_v13 = vmul.f32 %v4926_v38, %v86_v23 }
  0x90   :  { %v106_v14 = vmul.f32 %v4926_v38, %v59_v27 }
  0x91   :  { %v4991_v31 = vsub.f32 %v4880_v18, %v110_v12  ;;  %v4996_v33 = vsub.f32 %v4885_v19, %v115_v13 }
  0x92   :  { %v5001_v36 = vsub.f32 %v4890_v20, %v106_v14 }
  0x93   :  { %v142_v32 = vmul.f32 %v4991_v31, %v4991_v31  ;;  %v147_v42 = vmul.f32 %v4996_v33, %v4996_v33 }
  0x94   :  { %v138_v43 = vmul.f32 %v5001_v36, %v5001_v36 }
  0x95   :  { %v172_v37 = vsel %vm47_vm0, %v142_v32, 0.0  ;;  %v187_v50 = vsel %vm47_vm0, %v147_v42, 0.0 }
  0x96   :  { %173 = vadd.xlane.f32.xlu2 %v172_v37  ;;  %v89_v39 = vpop.xlane.xlu1 %88  ;;  %v92_v40 = vpop.xlane.xlu2 %91  ;;  %v160_v51 = vsel %vm47_vm0, %v138_v43, 0.0 }
  0x97   :  { %v116_v18 = vmul.f32 %v4926_v38, %v89_v39  ;;  %182 = vadd.xlane.f32.xlu0 %v181_v34  ;;  %158 = vadd.xlane.f32.xlu1 %v157_v35  ;;  %v83_v41 = vpop.xlane.xlu0 %82  ;;  %v117_v19 = vmul.f32 %v4926_v38, %v92_v40 }
  0x98   :  { %v114_v20 = vmul.f32 %v4926_v38, %v83_v41 }
  0x99   :  { %v5012_v44 = vsub.f32 %v4901_v24, %v116_v18  ;;  %v5017_v49 = vsub.f32 %v4906_v25, %v117_v19 }
  0x9a   :  { %v5022_v52 = vsub.f32 %v4911_v26, %v114_v20 }
  0x9b   :  { %v148_v47 = vmul.f32 %v5012_v44, %v5012_v44  ;;  %v149_v55 = vmul.f32 %v5017_v49, %v5017_v49 }
  0x9c   :  { %v146_v25 = vmul.f32 %v5022_v52, %v5022_v52 }
  0x9d   :  { %v190_v53 = vsel %vm47_vm0, %v148_v47, 0.0  ;;  %v193_v26 = vsel %vm47_vm0, %v149_v55, 0.0 }
  0x9e   :  { %191 = vadd.xlane.f32.xlu2 %v190_v53  ;;  %v95_v54 = vpop.xlane.xlu2 %94  ;;  %v184_v57 = vsel %vm47_vm0, %v146_v25, 0.0 }
  0x9f   :  { %188 = vadd.xlane.f32.xlu0 %v187_v50  ;;  %161 = vadd.xlane.f32.xlu1 %v160_v51  ;;  %v118_v24 = vmul.f32 %v4926_v38, %v95_v54 }
  0xa1   :  { %v5031_v56 = vsub.f32 %v4922_v30, %v118_v24  ;;  %v447_v30 = vld [vmem:[%s7401_s3 + $0x10] sm:$0xff] }
  0xa2   :  { %514 = vmatpush.msra.mxu0 %v447_v30  ;;  %4282 = vmatpush.msra.mxu1 %v447_v30 }
  0xa3   :  { %v150_v58 = vmul.f32 %v5031_v56, %v5031_v56  ;;  %4283 = vmatpush.msra.mxu2 %v447_v30  ;;  %4284 = vmatpush.msra.mxu3 %v447_v30 }
  0xa4   :  { %515 = vmatpush.msra.mxu0 %v446_v0  ;;  %4285 = vmatpush.msra.mxu1 %v446_v0 }
  0xa5   :  { %v196_v62 = vsel %vm47_vm0, %v150_v58, 0.0  ;;  %4286 = vmatpush.msra.mxu2 %v446_v0  ;;  %4287 = vmatpush.msra.mxu3 %v446_v0 }
  0xa6   :  { %516 = vmatpush.msra.mxu0 %v445_v2  ;;  %4288 = vmatpush.msra.mxu1 %v445_v2 }
  0xa7   :  { %194 = vadd.xlane.f32.xlu0 %v193_v26  ;;  %185 = vadd.xlane.f32.xlu1 %v184_v57  ;;  %v5093_v57 = vld [vmem:[%s7398_s1] ss:$0 sm:$0xff] }
  0xa8   :  { %4289 = vmatpush.msra.mxu2 %v445_v2  ;;  %4290 = vmatpush.msra.mxu3 %v445_v2 }
  0xaf   :  { %197 = vadd.xlane.f32.xlu1 %v196_v62 }
  0xf1   :  { %v168_v1 = vpop.xlane.xlu2 %167 }
  0xf2   :  { %v204_v3 = vmul.f32 %v168_v1, %v4926_v38  ;;  %v153_v4 = vpop.xlane.xlu0 %152 }
  0xf3   :  { %v199_v5 = vmul.f32 %v153_v4, %v4926_v38 }
  0xf4   :  { %v5052_v6 = vadd.f32 1e-05, %v204_v3 }
  0xf5   :  { %v215_v7 = vadd.f32 1e-05, %v199_v5 }
  0xf6   :  { %4472 = vrsqrt.f32 %v5052_v6  ;;  %vm287_vm5 = vweird.f32 %v5052_v6 }
  0xf7   :  { %4474 = vrsqrt.f32 %v215_v7  ;;  %vm237_vm3 = vweird.f32 %v215_v7 }
  0xfa   :  { %v165_v8 = vpop.xlane.xlu1 %164  ;;  %v177_v10 = vpop.xlane.xlu0 %176 }
  0xfb   :  { %v203_v15 = vmul.f32 %v165_v8, %v4926_v38  ;;  %v207_v16 = vmul.f32 %v177_v10, %v4926_v38 }
  0xfc   :  { %v5057_v21 = vpop.eup %4472 }
  0xfd   :  { %v4475_v22 = vpop.eup %4474  ;;  %v282_v23 = vmul.f32 %v5057_v21, %v5052_v6  ;;  %v5061_v12 = vadd.f32 1e-05, %v203_v15  ;;  %v5063_v27 = vadd.f32 1e-05, %v207_v16  ;;  %vm288_vm6 = vweird.f32 %v5057_v21 }
  0xfe   :  { %v232_v13 = vmul.f32 %v4475_v22, %v215_v7  ;;  %vm238_vm2 = vweird.f32 %v4475_v22  ;;  %vm5127_vm7 = vmor %vm287_vm5, %vm288_vm6 }
  0xff   :  { %4476 = vrsqrt.f32 %v5061_v12  ;;  %v283_v28 = vmul.f32 %v5057_v21, %v282_v23  ;;  %vm239_vm4 = vmor %vm237_vm3, %vm238_vm2  ;;  %v5116_v23 = vld [vmem:[%s7399_s2] ss:$0 sm:$0xff]  ;;  %vm277_vm8 = vweird.f32 %v5061_v12  ;;  %vm317_vm12 = vweird.f32 %v5063_v27 }
 0x100   :  { %v233_v29 = vmul.f32 %v4475_v22, %v232_v13  ;;  %4478 = vrsqrt.f32 %v5063_v27 }
 0x101   :  { %v171_v14 = vpop.xlane.xlu2 %170  ;;  %v284_v18 = vmul.f32 0.5, %v283_v28 }
 0x102   :  { %v234_v32 = vmul.f32 0.5, %v233_v29  ;;  %v205_v34 = vmul.f32 %v171_v14, %v4926_v38  ;;  %v156_v35 = vpop.xlane.xlu1 %155  ;;  %v180_v37 = vpop.xlane.xlu0 %179 }
 0x103   :  { %v200_v39 = vmul.f32 %v156_v35, %v4926_v38  ;;  %v208_v40 = vmul.f32 %v180_v37, %v4926_v38  ;;  %v285_v54 = vsub.f32 1.5, %v284_v18 }
 0x104   :  { %v235_v41 = vsub.f32 1.5, %v234_v32  ;;  %v5071_v19 = vadd.f32 1e-05, %v205_v34 }
 0x105   :  { %v5073_v42 = vpop.eup %4476  ;;  %v5075_v43 = vadd.f32 1e-05, %v200_v39  ;;  %v5077_v20 = vadd.f32 1e-05, %v208_v40  ;;  %v286_v4 = vmul.f32 %v5057_v21, %v285_v54 }
 0x106   :  { %v5079_v47 = vpop.eup %4478  ;;  %v236_v50 = vmul.f32 %v4475_v22, %v235_v41  ;;  %v272_v51 = vmul.f32 %v5073_v42, %v5061_v12  ;;  %4480 = vrsqrt.f32 %v5071_v19  ;;  %vm278_vm9 = vweird.f32 %v5073_v42 }
 0x107   :  { %v312_v53 = vmul.f32 %v5079_v47, %v5063_v27  ;;  %4482 = vrsqrt.f32 %v5075_v43  ;;  %vm318_vm10 = vweird.f32 %v5079_v47  ;;  %v290_v6 = vsel %vm5127_vm7, %v5057_v21, %v286_v4  ;;  %vm5147_vm11 = vmor %vm277_vm8, %vm278_vm9 }
 0x108   :  { %v273_v24 = vmul.f32 %v5073_v42, %v272_v51  ;;  %4484 = vrsqrt.f32 %v5077_v20  ;;  %v240_v26 = vsel %vm239_vm4, %v4475_v22, %v236_v50  ;;  %vm247_vm13 = vweird.f32 %v5075_v43  ;;  %vm5162_vm14 = vmor %vm317_vm12, %vm318_vm10 }
 0x109   :  { %v313_v55 = vmul.f32 %v5079_v47, %v312_v53  ;;  %v174_v25 = vpop.xlane.xlu2 %173  ;;  %v391_v0 = vmul.f32 %v240_v26, %v4933_v46  ;;  %vm297_vm4 = vweird.f32 %v5071_v19  ;;  %vm327_vm6 = vweird.f32 %v5077_v20 }
 0x10a   :  { %v274_v58 = vmul.f32 0.5, %v273_v24  ;;  %v206_v62 = vmul.f32 %v174_v25, %v4926_v38  ;;  %v159_v63 = vpop.xlane.xlu1 %158  ;;  %v183_v30 = vpop.xlane.xlu0 %182  ;;  %v396_v24 = vmul.f32 %v290_v6, %v4931_v45 }
 0x10b   :  { %v314_v1 = vmul.f32 0.5, %v313_v55  ;;  %v201_v2 = vmul.f32 %v159_v63, %v4926_v38  ;;  %v209_v8 = vmul.f32 %v183_v30, %v4926_v38  ;;  %v410_v22 = vmul.f32 %v5093_v57, %v391_v0 }
 0x10c   :  { %v5100_v3 = vpop.eup %4480  ;;  %v275_v5 = vsub.f32 1.5, %v274_v58  ;;  %v5103_v7 = vadd.f32 1e-05, %v206_v62 }
 0x10d   :  { %v5106_v10 = vpop.eup %4482  ;;  %v315_v15 = vsub.f32 1.5, %v314_v1  ;;  %v292_v46 = vmul.f32 %v5100_v3, %v5071_v19  ;;  %v5110_v16 = vadd.f32 1e-05, %v201_v2  ;;  %v5144_v37 = vadd.f32 1e-05, %v209_v8 }
 0x10e   :  { %v5118_v13 = vpop.eup %4484  ;;  %v242_v28 = vmul.f32 %v5106_v10, %v5075_v43  ;;  %4486 = vrsqrt.f32 %v5103_v7  ;;  %v276_v35 = vmul.f32 %v5073_v42, %v275_v5  ;;  %v429_v39 = vadd.f32 %v5116_v23, %v410_v22 }
 0x10f   :  { %v293_v14 = vmul.f32 %v5100_v3, %v292_v46  ;;  %v322_v32 = vmul.f32 %v5118_v13, %v5077_v20  ;;  %4488 = vrsqrt.f32 %v5110_v16  ;;  %v316_v12 = vmul.f32 %v5079_v47, %v315_v15 }
 0x110   :  { %v243_v34 = vmul.f32 %v5106_v10, %v242_v28  ;;  %4490 = vrsqrt.f32 %v5144_v37  ;;  %4049 = vmatmul.msk.f32.vlgmr.msra.gmra.mxu0 %vm47_vm0, %v429_v39  ;;  %vm248_vm15 = vweird.f32 %v5106_v10  ;;  %v280_v63 = vsel %vm5147_vm11, %v5073_v42, %v276_v35 }
 0x111   :  { %v192_v40 = vpop.xlane.xlu2 %191  ;;  %v294_v41 = vmul.f32 0.5, %v293_v14  ;;  %v323_v54 = vmul.f32 %v5118_v13, %v322_v32  ;;  %v320_v30 = vsel %vm5162_vm14, %v5079_v47, %v316_v12  ;;  %v5189_v42 = vmul.f32 %v5093_v57, %v396_v24  ;;  %vm5202_vm2 = vmor %vm247_vm13, %vm248_vm15 }
 0x112   :  { %v244_v50 = vmul.f32 0.5, %v243_v34  ;;  %v212_v51 = vmul.f32 %v192_v40, %v4926_v38  ;;  %v162_v21 = vpop.xlane.xlu1 %161  ;;  %v189_v53 = vpop.xlane.xlu0 %188  ;;  %vm328_vm1 = vweird.f32 %v5118_v13  ;;  %v395_v46 = vmul.f32 %v280_v63, %v4950_v59 }
 0x113   :  { %v202_v58 = vmul.f32 %v162_v21, %v4926_v38  ;;  %v211_v62 = vmul.f32 %v189_v53, %v4926_v38  ;;  %v295_v1 = vsub.f32 1.5, %v294_v41  ;;  %v324_v5 = vmul.f32 0.5, %v323_v54  ;;  %vm5276_vm15 = vmor %vm327_vm6, %vm328_vm1 }
 0x114   :  { %v5158_v55 = vpop.eup %4486  ;;  %v245_v25 = vsub.f32 1.5, %v244_v50  ;;  %v5166_v26 = vadd.f32 1e-05, %v212_v51  ;;  %vm257_vm3 = vweird.f32 %v5110_v16  ;;  %v399_v32 = vmul.f32 %v320_v30, %v4938_v48 }
 0x115   :  { %v302_v45 = vmul.f32 %v5158_v55, %v5103_v7  ;;  %v5179_v0 = vpop.eup %4488  ;;  %v5183_v4 = vadd.f32 1e-05, %v202_v58  ;;  %v5193_v47 = vadd.f32 1e-05, %v211_v62  ;;  %v5210_v34 = vmul.f32 %v5100_v3, %v295_v1 }
 0x116   :  { %v246_v2 = vmul.f32 %v5106_v10, %v245_v25  ;;  %4492 = vrsqrt.f32 %v5166_v26  ;;  %v252_v15 = vmul.f32 %v5179_v0, %v5110_v16  ;;  %v5196_v22 = vpop.eup %4490  ;;  %vm298_vm5 = vweird.f32 %v5100_v3 }
 0x117   :  { %v303_v8 = vmul.f32 %v5158_v55, %v302_v45  ;;  %4494 = vrsqrt.f32 %v5183_v4  ;;  %v332_v59 = vmul.f32 %v5196_v22, %v5144_v37  ;;  %v325_v35 = vsub.f32 1.5, %v324_v5  ;;  %vm5296_vm1 = vmor %vm297_vm4, %vm298_vm5 }
 0x118   :  { %v253_v14 = vmul.f32 %v5179_v0, %v252_v15  ;;  %4496 = vrsqrt.f32 %v5193_v47  ;;  %v250_v48 = vsel %vm5202_vm2, %v5106_v10, %v246_v2  ;;  %v414_v39 = vmul.f32 %v5093_v57, %v395_v46 }
 0x119   :  { %v304_v29 = vmul.f32 0.5, %v303_v8  ;;  %v418_v40 = vmul.f32 %v5093_v57, %v399_v32  ;;  %vm258_vm7 = vweird.f32 %v5179_v0  ;;  %v333_v41 = vmul.f32 %v5196_v22, %v332_v59 }
 0x11a   :  { %v186_v43 = vpop.xlane.xlu1 %185  ;;  %v195_v6 = vpop.xlane.xlu0 %194  ;;  %v254_v12 = vmul.f32 0.5, %v253_v14  ;;  %vm337_vm8 = vweird.f32 %v5144_v37  ;;  %v392_v54 = vmul.f32 %v250_v48, %v4953_v60  ;;  %v433_v25 = vadd.f32 %v5116_v23, %v414_v39  ;;  %vm5257_vm11 = vmor %vm257_vm3, %vm258_vm7 }
 0x11b   :  { %v210_v50 = vmul.f32 %v186_v43, %v4926_v38  ;;  %v213_v51 = vmul.f32 %v195_v6, %v4926_v38  ;;  %v305_v21 = vsub.f32 1.5, %v304_v29  ;;  %v334_v27 = vmul.f32 0.5, %v333_v41 }
 0x11c   :  { %v5223_v18 = vpop.eup %4492  ;;  %v255_v53 = vsub.f32 1.5, %v254_v12  ;;  %v437_v58 = vadd.f32 %v5116_v23, %v418_v40  ;;  %v326_v45 = vmul.f32 %v5118_v13, %v325_v35  ;;  %vm307_vm9 = vweird.f32 %v5103_v7  ;;  %4053 = vmatmul.msk.f32.vlgmr.msra.gmra.mxu1 %vm47_vm0, %v433_v25 }
 0x11d   :  { %v362_v10 = vmul.f32 %v5223_v18, %v5166_v26  ;;  %v5233_v24 = vpop.eup %4494  ;;  %v5237_v62 = vadd.f32 1e-05, %v210_v50  ;;  %vm308_vm10 = vweird.f32 %v5158_v55  ;;  %v335_v2 = vsub.f32 1.5, %v334_v27 }
 0x11e   :  { %v262_v60 = vmul.f32 %v5233_v24, %v5183_v4  ;;  %v5245_v30 = vpop.eup %4496  ;;  %v256_v1 = vmul.f32 %v5179_v0, %v255_v53  ;;  %4057 = vmatmul.msk.f32.vlgmr.msra.gmra.mxu2 %vm47_vm0, %v437_v58  ;;  %v5251_v5 = vadd.f32 1e-05, %v213_v51  ;;  %vm338_vm12 = vweird.f32 %v5196_v22 }
 0x11f   :  { %v363_v63 = vmul.f32 %v5223_v18, %v362_v10  ;;  %4498 = vrsqrt.f32 %v5237_v62  ;;  %vm267_vm13 = vweird.f32 %v5183_v4  ;;  %v352_v46 = vmul.f32 %v5245_v30, %v5193_v47 }
 0x120   :  { %v263_v15 = vmul.f32 %v5233_v24, %v262_v60  ;;  %v5267_v28 = vmul.f32 %v5158_v55, %v305_v21  ;;  %vm268_vm14 = vweird.f32 %v5233_v24  ;;  %4500 = vrsqrt.f32 %v5251_v5 }
 0x121   :  { %v411_v16 = vmul.f32 %v5093_v57, %v392_v54  ;;  %v336_v32 = vmul.f32 %v5196_v22, %v335_v2  ;;  %v364_v59 = vmul.f32 0.5, %v363_v63  ;;  %v353_v6 = vmul.f32 %v5245_v30, %v352_v46  ;;  %vm5332_vm4 = vmor %vm267_vm13, %vm268_vm14 }
 0x122   :  { %v198_v29 = vpop.xlane.xlu1 %197  ;;  %v264_v43 = vmul.f32 0.5, %v263_v15  ;;  %vm357_vm2 = vweird.f32 %v5193_v47  ;;  %vm347_vm3 = vweird.f32 %v5237_v62  ;;  %v330_v20 = vsel %vm5276_vm15, %v5118_v13, %v326_v45 }
 0x123   :  { %v430_v48 = vadd.f32 %v5116_v23, %v411_v16  ;;  %v214_v35 = vmul.f32 %v198_v29, %v4926_v38  ;;  %v260_v12 = vsel %vm5257_vm11, %v5179_v0, %v256_v1  ;;  %vm367_vm6 = vweird.f32 %v5166_v26  ;;  %vm5307_vm11 = vmor %vm337_vm8, %vm338_vm12 }
 0x124   :  { %v265_v40 = vsub.f32 1.5, %v264_v43  ;;  %v354_v41 = vmul.f32 0.5, %v353_v6  ;;  %vm358_vm7 = vweird.f32 %v5245_v30  ;;  %v400_v38 = vmul.f32 %v330_v20, %v4956_v61  ;;  %vm5347_vm8 = vmor %vm307_vm9, %vm308_vm10 }
 0x125   :  { %v4499_v13 = vpop.eup %4498  ;;  %4050 = vmatmul.msk.f32.gmra.mxu0 %vm47_vm0, %v430_v48  ;;  %v434_v19 = vadd.f32 %v5116_v23, %v5189_v42  ;;  %v5314_v50 = vadd.f32 1e-05, %v214_v35  ;;  %v393_v51 = vmul.f32 %v260_v12, %v4980_v17  ;;  %v300_v61 = vsel %vm5296_vm1, %v5100_v3, %v5210_v34  ;;  %vm5368_vm10 = vmor %vm357_vm2, %vm358_vm7 }
 0x126   :  { %v266_v37 = vmul.f32 %v5233_v24, %v265_v40  ;;  %v355_v21 = vsub.f32 1.5, %v354_v41  ;;  %v342_v53 = vmul.f32 %v4499_v13, %v5237_v62  ;;  %v340_v10 = vsel %vm5307_vm11, %v5196_v22, %v336_v32  ;;  %v5326_v54 = vpop.eup %4500 }
 0x127   :  { %v365_v42 = vsub.f32 1.5, %v364_v59  ;;  %4054 = vmatmul.msk.f32.gmra.mxu1 %vm47_vm0, %v434_v19  ;;  %v419_v3 = vmul.f32 %v5093_v57, %v400_v38  ;;  %4502 = vrsqrt.f32 %v5314_v50  ;;  %v412_v34 = vmul.f32 %v5093_v57, %v393_v51 }
 0x128   :  { %v356_v22 = vmul.f32 %v5245_v30, %v355_v21  ;;  %v343_v27 = vmul.f32 %v4499_v13, %v342_v53  ;;  %vm348_vm5 = vweird.f32 %v4499_v13  ;;  %v372_v25 = vmul.f32 %v5326_v54, %v5251_v5 }
 0x129   :  { %v438_v58 = vadd.f32 %v5116_v23, %v419_v3  ;;  %v431_v45 = vadd.f32 %v5116_v23, %v412_v34  ;;  %v397_v63 = vmul.f32 %v300_v61, %v4970_v9  ;;  %v401_v60 = vmul.f32 %v340_v10, %v4975_v11  ;;  %vm5383_vm12 = vmor %vm347_vm3, %vm348_vm5 }
 0x12a   :  { %v344_v1 = vmul.f32 0.5, %v343_v27  ;;  %v373_v2 = vmul.f32 %v5326_v54, %v372_v25  ;;  %v270_v8 = vsel %vm5332_vm4, %v5233_v24, %v266_v37  ;;  %v310_v7 = vsel %vm5347_vm8, %v5158_v55, %v5267_v28 }
 0x12b   :  { %vm368_vm9 = vweird.f32 %v5223_v18  ;;  %4058 = vmatmul.msk.f32.gmra.mxu2 %vm47_vm0, %v438_v58  ;;  %v416_v11 = vmul.f32 %v5093_v57, %v397_v63  ;;  %v420_v24 = vmul.f32 %v5093_v57, %v401_v60  ;;  %v394_v15 = vmul.f32 %v270_v8, %v5001_v36 }
 0x12c   :  { %v366_v55 = vmul.f32 %v5223_v18, %v365_v42  ;;  %v345_v46 = vsub.f32 1.5, %v344_v1  ;;  %v374_v28 = vmul.f32 0.5, %v373_v2  ;;  %v360_v47 = vsel %vm5368_vm10, %v5245_v30, %v356_v22  ;;  %vm5396_vm13 = vmor %vm367_vm6, %vm368_vm9 }
 0x12d   :  { %v4503_v16 = vpop.eup %4502  ;;  %4051 = vmatmul.msk.f32.gmra.mxu0 %vm47_vm0, %v431_v45  ;;  %v435_v36 = vadd.f32 %v5116_v23, %v416_v11  ;;  %v413_v14 = vmul.f32 %v5093_v57, %v394_v15  ;;  %v398_v32 = vmul.f32 %v310_v7, %v4991_v31  ;;  %v439_v30 = vadd.f32 %v5116_v23, %v420_v24 }
 0x12e   :  { %v346_v59 = vmul.f32 %v4499_v13, %v345_v46  ;;  %v382_v43 = vmul.f32 %v4503_v16, %v5314_v50  ;;  %v403_v6 = vmul.f32 %v360_v47, %v4996_v33  ;;  %v375_v48 = vsub.f32 1.5, %v374_v28 }
 0x12f   :  { %4055 = vmatmul.msk.f32.gmra.mxu1 %vm47_vm0, %v435_v36  ;;  %v370_v35 = vsel %vm5396_vm13, %v5223_v18, %v366_v55  ;;  %v432_v26 = vadd.f32 %v5116_v23, %v413_v14  ;;  %v417_v12 = vmul.f32 %v5093_v57, %v398_v32  ;;  %vm377_vm14 = vweird.f32 %v5251_v5 }
 0x130   :  { %v383_v20 = vmul.f32 %v4503_v16, %v382_v43  ;;  %v350_v31 = vsel %vm5383_vm12, %v4499_v13, %v346_v59  ;;  %v422_v39 = vmul.f32 %v5093_v57, %v403_v6  ;;  %vm378_vm15 = vweird.f32 %v5326_v54 }
 0x131   :  { %v402_v40 = vmul.f32 %v350_v31, %v5022_v52  ;;  %v404_v18 = vmul.f32 %v370_v35, %v5012_v44  ;;  %v376_v38 = vmul.f32 %v5326_v54, %v375_v48  ;;  %vm379_vm2 = vmor %vm377_vm14, %vm378_vm15  ;;  %v436_v52 = vadd.f32 %v5116_v23, %v417_v12 }
 0x132   :  { %v441_v33 = vadd.f32 %v5116_v23, %v422_v39  ;;  %v384_v13 = vmul.f32 0.5, %v383_v20  ;;  %vm387_vm3 = vweird.f32 %v5314_v50  ;;  %vm388_vm1 = vweird.f32 %v4503_v16 }
 0x133   :  { %4059 = vmatmul.msk.f32.gmra.mxu2 %vm47_vm0, %v439_v30  ;;  %v421_v41 = vmul.f32 %v5093_v57, %v402_v40  ;;  %v423_v0 = vmul.f32 %v5093_v57, %v404_v18  ;;  %v380_v51 = vsel %vm379_vm2, %v5326_v54, %v376_v38  ;;  %vm389_vm6 = vmor %vm387_vm3, %vm388_vm1  ;;  %vm590_vm7 = vcmask 64512  }
 0x134   :  { %4061 = vmatmul.msk.f32.vlgmr.msra.gmra.mxu3 %vm47_vm0, %v441_v33  ;;  %v385_v19 = vsub.f32 1.5, %v384_v13  ;;  %v405_v61 = vmul.f32 %v380_v51, %v5017_v49  ;;  %v5441_v49 = vld [vmem:[%s7400_s4] ss:$0 sm:$0xff]  ;;  %s4762_s4 = smov 64   ;;  %vm897_vm11 = vcmask 130048   ;;  %vm3891_vm4 = vcmask 195584  }
 0x135   :  { %4052 = vmatmul.msk.f32.gmra.mxu0 %vm47_vm0, %v432_v26  ;;  %v440_v5 = vadd.f32 %v5116_v23, %v421_v41  ;;  %v442_v44 = vadd.f32 %v5116_v23, %v423_v0 }
 0x136   :  { %v386_v37 = vmul.f32 %v4503_v16, %v385_v19  ;;  %v424_v21 = vmul.f32 %v5093_v57, %v405_v61 }
 0x137   :  { %4056 = vmatmul.msk.f32.gmra.mxu1 %vm47_vm0, %v436_v52 }
 0x138   :  { %v390_v53 = vsel %vm389_vm6, %v4503_v16, %v386_v37  ;;  %v443_v10 = vadd.f32 %v5116_v23, %v424_v21 }
 0x139   :  { %v406_v54 = vmul.f32 %v390_v53, %v5031_v56 }
 0x13b   :  { %4060 = vmatmul.msk.f32.gmra.mxu2 %vm47_vm0, %v440_v5  ;;  %v425_v50 = vmul.f32 %v5093_v57, %v406_v54 }
 0x13c   :  { %4062 = vmatmul.msk.f32.gmra.mxu3 %vm47_vm0, %v442_v44 }
 0x13d   :  { %v444_v42 = vadd.f32 %v5116_v23, %v425_v50 }
 0x144   :  { %4063 = vmatmul.msk.f32.gmra.mxu3 %vm47_vm0, %v443_v10 }
 0x14c   :  { %4064 = vmatmul.msk.f32.gmra.mxu3 %vm47_vm0, %v444_v42 }
 0x18d   :  { %v518_v17 = vpop.f32.mrf.mxu0 }
 0x18e   :  { %v5444_v3 = vadd.f32 %v5441_v49, %v518_v17 }
 0x190   :  { %586 = vrot.lane.b32.xlu0 %v5444_v3, %s4761_s25  ;;  %v5561_v6 = vmul.f32 0.35355338, %v5444_v3 }
 0x199   :  { %v530_v56 = vpop.f32.mrf.mxu1 }
 0x19a   :  { %v5459_v4 = vadd.f32 %v5441_v49, %v530_v56 }
 0x19c   :  { %7478 = vst [vmem:[#allocation3_spill] sm:$0xff] %v5459_v4  ;;  %v5592_v26 = vmul.f32 0.35355338, %v5459_v4 }
 0x19e   :  { %7493 = vst [vmem:[#allocation18_spill] sm:$0xff] %v5592_v26 }
 0x1a1   :  { %v542_v23 = vpop.f32.mrf.mxu2 }
 0x1a2   :  { %v521_v34 = vpop.f32.mrf.mxu0  ;;  %v5487_v11 = vadd.f32 %v5441_v49, %v542_v23 }
 0x1a3   :  { %v5449_v57 = vadd.f32 %v5441_v49, %v521_v34 }
 0x1a4   :  { %v533_v22 = vpop.f32.mrf.mxu1  ;;  %7480 = vst [vmem:[#allocation5_spill] sm:$0xff] %v5487_v11  ;;  %v5573_v20 = vmul.f32 0.35355338, %v5487_v11 }
 0x1a5   :  { %v5452_v27 = vadd.f32 %v5441_v49, %v533_v22  ;;  %588 = vrot.lane.b32.xlu2 %v5449_v57, %s4761_s25  ;;  %v5508_v16 = vpack.i.bf16 %v5444_v3, %v5449_v57  ;;  %v5570_v48 = vmul.f32 0.35355338, %v5449_v57 }
 0x1a6   :  { %7490 = vst [vmem:[#allocation15_spill] sm:$0xff] %v5573_v20 }
 0x1a7   :  { %7477 = vst [vmem:[#allocation2_spill] sm:$0xff] %v5452_v27  ;;  %667 = vrot.lane.b32.xlu1 %v5452_v27, %s4761_s25  ;;  %v5516_v29 = vpack.i.bf16 %v5459_v4, %v5452_v27  ;;  %v5585_v35 = vmul.f32 0.35355338, %v5452_v27 }
 0x1a9   :  { %7483 = vst [vmem:[#allocation8_spill] sm:$0xff] %v5516_v29 }
 0x1aa   :  { %v524_v25 = vpop.f32.mrf.mxu0  ;;  %7492 = vst [vmem:[#allocation17_spill] sm:$0xff] %v5585_v35 }
 0x1ab   :  { %v5462_v58 = vadd.f32 %v5441_v49, %v524_v25 }
 0x1ac   :  { %v536_v60 = vpop.f32.mrf.mxu1 }
 0x1ad   :  { %665 = vrot.lane.b32.xlu2 %v5459_v4, %s4761_s25  ;;  %v5474_v2 = vadd.f32 %v5441_v49, %v536_v60  ;;  %v5525_v14 = vmul.f32 0.35355338, %v5462_v58 }
 0x1ae   :  { %v545_v45 = vpop.f32.mrf.mxu2 }
 0x1af   :  { %v5467_v63 = vadd.f32 %v5441_v49, %v545_v45  ;;  %626 = vrot.lane.b32.xlu1 %v5462_v58, %s4761_s25  ;;  %7485 = vst [vmem:[#allocation10_spill] sm:$0xff] %v5525_v14  ;;  %v5580_v31 = vmul.f32 0.35355338, %v5474_v2 }
 0x1b1   :  { %745 = vrot.lane.b32.xlu0 %v5467_v63, %s4761_s25  ;;  %v5536_v43 = vpack.i.bf16 %v5487_v11, %v5467_v63  ;;  %7491 = vst [vmem:[#allocation16_spill] sm:$0xff] %v5580_v31  ;;  %v5681_v22 = vmul.f32 0.35355338, %v5467_v63 }
 0x1b2   :  { %v527_v55 = vpop.f32.mrf.mxu0 }
 0x1b3   :  { %v5499_v46 = vadd.f32 %v5441_v49, %v527_v55  ;;  %7487 = vst [vmem:[#allocation12_spill] sm:$0xff] %v5536_v43 }
 0x1b4   :  { %v539_v32 = vpop.f32.mrf.mxu1  ;;  %7502 = vst [vmem:[#allocation27_spill] sm:$0xff] %v5681_v22 }
 0x1b5   :  { %v5532_v59 = vadd.f32 %v5441_v49, %v539_v32  ;;  %v5552_v30 = vpack.i.bf16 %v5462_v58, %v5499_v46  ;;  %v5598_v39 = vmul.f32 0.35355338, %v5499_v46 }
 0x1b6   :  { %v548_v1 = vpop.f32.mrf.mxu2 }
 0x1b7   :  { %v5477_v8 = vadd.f32 %v5441_v49, %v548_v1  ;;  %v554_v7 = vpop.f32.mrf.mxu3  ;;  %7486 = vst [vmem:[#allocation11_spill] sm:$0xff] %v5532_v59  ;;  %v5542_v62 = vpack.i.bf16 %v5474_v2, %v5532_v59  ;;  %v5669_v17 = vmul.f32 0.35355338, %v5532_v59 }
 0x1b8   :  { %v5484_v9 = vadd.f32 %v5441_v49, %v554_v7  ;;  %7489 = vst [vmem:[#allocation14_spill] sm:$0xff] %v5552_v30 }
 0x1b9   :  { %7479 = vst [vmem:[#allocation4_spill] sm:$0xff] %v5477_v8  ;;  %704 = vrot.lane.b32.xlu0 %v5474_v2, %s4761_s25  ;;  %782 = vrot.lane.b32.xlu1 %v5477_v8, %s4761_s25  ;;  %v5704_v55 = vmul.f32 0.35355338, %v5477_v8 }
 0x1ba   :  { %7488 = vst [vmem:[#allocation13_spill] sm:$0xff] %v5542_v62  ;;  %v5695_v1 = vmul.f32 0.35355338, %v5484_v9 }
 0x1bb   :  { %7494 = vst [vmem:[#allocation19_spill] sm:$0xff] %v5598_v39 }
 0x1bc   :  { %7501 = vst [vmem:[#allocation26_spill] sm:$0xff] %v5669_v17 }
 0x1bd   :  { %7505 = vst [vmem:[#allocation30_spill] sm:$0xff] %v5695_v1 }
 0x1be   :  { %v551_v33 = vpop.f32.mrf.mxu2  ;;  %7507 = vst [vmem:[#allocation32_spill] sm:$0xff] %v5704_v55 }
 0x1bf   :  { %v557_v24 = vpop.f32.mrf.mxu3  ;;  %v5608_v41 = vadd.f32 %v5441_v49, %v551_v33 }
 0x1c0   :  { %v5494_v15 = vadd.f32 %v5441_v49, %v557_v24 }
 0x1c1   :  { %821 = vrot.lane.b32.xlu0 %v5484_v9, %s4761_s25  ;;  %743 = vrot.lane.b32.xlu1 %v5487_v11, %s4761_s25  ;;  %7495 = vst [vmem:[#allocation20_spill] sm:$0xff] %v5608_v41  ;;  %v5641_v51 = vpack.i.bf16 %v5477_v8, %v5608_v41  ;;  %v5660_v54 = vmul.f32 0.35355338, %v5608_v41 }
 0x1c2   :  { %7481 = vst [vmem:[#allocation6_spill] sm:$0xff] %v5494_v15  ;;  %823 = vrot.lane.b32.xlu2 %v5494_v15, %s4761_s25  ;;  %v5522_v36 = vpack.i.bf16 %v5484_v9, %v5494_v15  ;;  %v5631_v5 = vmul.f32 0.35355338, %v5494_v15 }
 0x1c3   :  { %7499 = vst [vmem:[#allocation24_spill] sm:$0xff] %v5641_v51 }
 0x1c4   :  { %7484 = vst [vmem:[#allocation9_spill] sm:$0xff] %v5522_v36 }
 0x1c5   :  { %7498 = vst [vmem:[#allocation23_spill] sm:$0xff] %v5631_v5 }
 0x1c6   :  { %7500 = vst [vmem:[#allocation25_spill] sm:$0xff] %v5660_v54 }
 0x1c7   :  { %v560_v28 = vpop.f32.mrf.mxu3 }
 0x1c8   :  { %v5504_v47 = vadd.f32 %v5441_v49, %v560_v28 }
 0x1c9   :  { %628 = vrot.lane.b32.xlu0 %v5499_v46, %s4761_s25 }
 0x1ca   :  { %7482 = vst [vmem:[#allocation7_spill] sm:$0xff] %v5504_v47  ;;  %4307 = vrot.lane.b32.xlu2 %v5508_v16, %s4762_s4  ;;  %860 = vrot.lane.b32.xlu1 %v5504_v47, %s4761_s25  ;;  %v5613_v18 = vmul.f32 0.35355338, %v5504_v47 }
 0x1cc   :  { %7496 = vst [vmem:[#allocation21_spill] sm:$0xff] %v5613_v18 }
 0x1cf   :  { %v563_v38 = vpop.f32.mrf.mxu3 }
 0x1d0   :  { %v5622_v13 = vadd.f32 %v5441_v49, %v563_v38 }
 0x1d1   :  { %4312 = vrot.lane.b32.xlu0 %v5516_v29, %s4762_s4 }
 0x1d2   :  { %4317 = vrot.lane.b32.xlu2 %v5522_v36, %s4762_s4  ;;  %1396 = vrot.lane.b32.xlu1 %v5525_v14, %s4763_s26  ;;  %7497 = vst [vmem:[#allocation22_spill] sm:$0xff] %v5622_v13 }
 0x1d9   :  { %4322 = vrot.lane.b32.xlu0 %v5536_v43, %s4762_s4 }
 0x1da   :  { %1361 = vrot.lane.b32.xlu2 %v5444_v3, %s4764_s27  ;;  %4327 = vrot.lane.b32.xlu1 %v5542_v62, %s4762_s4 }
 0x1e1   :  { %1363 = vrot.lane.b32.xlu0 %v5449_v57, %s4764_s27 }
 0x1e2   :  { %1400 = vrot.lane.b32.xlu2 %v5462_v58, %s4764_s27  ;;  %4332 = vrot.lane.b32.xlu1 %v5552_v30, %s4762_s4 }
 0x1e9   :  { %1480 = vrot.lane.b32.xlu0 %v5532_v59, %s4764_s27 }
 0x1ea   :  { %1357 = vrot.lane.b32.xlu2 %v5561_v6, %s4763_s26  ;;  %1402 = vrot.lane.b32.xlu1 %v5499_v46, %s4764_s27 }
 0x1f1   :  { %1441 = vrot.lane.b32.xlu0 %v5452_v27, %s4764_s27 }
 0x1f2   :  { %1359 = vrot.lane.b32.xlu2 %v5570_v48, %s4763_s26  ;;  %1513 = vrot.lane.b32.xlu1 %v5573_v20, %s4763_s26 }
 0x1f9   :  { %1474 = vrot.lane.b32.xlu0 %v5580_v31, %s4763_s26 }
 0x1fa   :  { %706 = vrot.lane.b32.xlu2 %v5532_v59, %s4761_s25  ;;  %1437 = vrot.lane.b32.xlu1 %v5585_v35, %s4763_s26 }
 0x1ff   :  { %v589_v12 = vpop.permute.xlu2 %588 }
 0x200   :  { %4065 = vmatpush.xpose.msk.msrb.mxu1 %vm590_vm7, %v589_v12 }
 0x201   :  { %1435 = vrot.lane.b32.xlu0 %v5592_v26, %s4763_s26 }
 0x202   :  { %1398 = vrot.lane.b32.xlu2 %v5598_v39, %s4763_s26  ;;  %1556 = vrot.lane.b32.xlu1 %v5477_v8, %s4764_s27  ;;  %v587_v40 = vpop.permute.xlu0 %586 }
 0x204   :  { %4066 = vmatpush.xpose.msk.msrb.mxu1 %vm590_vm7, %v587_v40 }
 0x207   :  { %4067 = vmatmul.msk.f32.vlgmr.msrb.gmra.mxu1 %vm590_vm7, %v5561_v6  ;;  %v666_v52 = vpop.permute.xlu2 %665 }
 0x209   :  { %1597 = vrot.lane.b32.xlu0 %v5494_v15, %s4764_s27 }
 0x20a   :  { %784 = vrot.lane.b32.xlu2 %v5608_v41, %s4761_s25  ;;  %1630 = vrot.lane.b32.xlu1 %v5613_v18, %s4763_s26 }
 0x20f   :  { %4068 = vmatmul.msk.f32.gmra.mxu1 %vm590_vm7, %v5570_v48 }
 0x211   :  { %1595 = vrot.lane.b32.xlu0 %v5484_v9, %s4764_s27 }
 0x212   :  { %1519 = vrot.lane.b32.xlu2 %v5467_v63, %s4764_s27  ;;  %1636 = vrot.lane.b32.xlu1 %v5622_v13, %s4764_s27 }
 0x219   :  { %1593 = vrot.lane.b32.xlu0 %v5631_v5, %s4763_s26  ;;  %v668_v0 = vpop.permute.xlu1 %667 }
 0x21a   :  { %4073 = vmatpush.xpose.msk.msrb.mxu3 %vm590_vm7, %v668_v0  ;;  %1478 = vrot.lane.b32.xlu2 %v5474_v2, %s4764_s27 }
 0x21c   :  { %v824_v19 = vpop.permute.xlu2 %823 }
 0x21e   :  { %4074 = vmatpush.xpose.msk.msrb.mxu3 %vm590_vm7, %v666_v52 }
 0x221   :  { %4337 = vrot.lane.b32.xlu0 %v5641_v51, %s4762_s4  ;;  %4075 = vmatmul.msk.f32.vlgmr.msrb.gmra.mxu3 %vm590_vm7, %v5592_v26  ;;  %v627_v44 = vpop.permute.xlu1 %626 }
 0x222   :  { %862 = vrot.lane.b32.xlu2 %v5622_v13, %s4761_s25  ;;  %s4773_s25 = smov 8  }
 0x223   :  { %v746_v61 = vpop.permute.xlu0 %745 }
 0x224   :  { %v5649_v37 = vpop.permute.xlu2 %4307 }
 0x229   :  { %1558 = vrot.lane.b32.xlu0 %v5608_v41, %s4764_s27  ;;  %4076 = vmatmul.msk.f32.gmra.mxu3 %vm590_vm7, %v5585_v35 }
 0x22a   :  { %1517 = vrot.lane.b32.xlu2 %v5487_v11, %s4764_s27 }
 0x22b   :  { %v705_v21 = vpop.permute.xlu0 %704  ;;  %v783_v53 = vpop.permute.xlu1 %782 }
 0x22c   :  { %v5657_v10 = vpop.permute.xlu2 %4317 }
 0x231   :  { %1554 = vrot.lane.b32.xlu0 %v5660_v54, %s4763_s26 }
 0x232   :  { %1439 = vrot.lane.b32.xlu2 %v5459_v4, %s4764_s27 }
 0x233   :  { %v822_v50 = vpop.permute.xlu0 %821  ;;  %v744_v49 = vpop.permute.xlu1 %743 }
 0x234   :  { %v5666_v42 = vpop.permute.xlu2 %1361 }
 0x23a   :  { %1476 = vrot.lane.b32.xlu2 %v5669_v17, %s4763_s26 }
 0x23b   :  { %v629_v56 = vpop.permute.xlu0 %628 }
 0x23c   :  { %4069 = vmatpush.xpose.msk.msrb.mxu2 %vm590_vm7, %v629_v56  ;;  %v5674_v34 = vpop.permute.xlu2 %1400  ;;  %v5676_v23 = vpop.permute.xlu1 %860  ;;  %v4310_v56 = vunpack.i.h.bf16 %v5649_v37 }
 0x240   :  { %4070 = vmatpush.xpose.msk.msrb.mxu2 %vm590_vm7, %v627_v44  ;;  %v5728_v44 = vpack.i.bf16 %v5504_v47, %v5622_v13 }
 0x242   :  { %1515 = vrot.lane.b32.xlu2 %v5681_v22, %s4763_s26  ;;  %7509 = vst [vmem:[#allocation34_spill] sm:$0xff] %v5728_v44 }
 0x243   :  { %4071 = vmatmul.msk.f32.vlgmr.msrb.gmra.mxu2 %vm590_vm7, %v5525_v14  ;;  %v5685_v25 = vpop.permute.xlu0 %4312 }
 0x244   :  { %4081 = vmatpush.xpose.msk.msra.mxu2 %vm590_vm7, %v746_v61  ;;  %v5690_v45 = vpop.permute.xlu2 %1357  ;;  %v5692_v60 = vpop.permute.xlu1 %1396 }
 0x245   :  { %7503 = vst [vmem:[#allocation28_spill] sm:$0xff] %v5690_v45 }
 0x246   :  { %7504 = vst [vmem:[#allocation29_spill] sm:$0xff] %v5692_v60 }
 0x248   :  { %4082 = vmatpush.xpose.msk.msra.mxu2 %vm590_vm7, %v744_v49 }
 0x24a   :  { %1591 = vrot.lane.b32.xlu2 %v5695_v1, %s4763_s26 }
 0x24b   :  { %4072 = vmatmul.msk.f32.gmra.mxu2 %vm590_vm7, %v5598_v39  ;;  %v4323_v7 = vpop.permute.xlu0 %4322 }
 0x24c   :  { %v5701_v24 = vpop.permute.xlu2 %1359  ;;  %v4328_v28 = vpop.permute.xlu1 %4327 }
 0x24d   :  { %7506 = vst [vmem:[#allocation31_spill] sm:$0xff] %v5701_v24 }
 0x252   :  { %1552 = vrot.lane.b32.xlu2 %v5704_v55, %s4763_s26 }
 0x253   :  { %4083 = vmatmul.msk.f32.vlgmr.msra.gmra.mxu2 %vm590_vm7, %v5573_v20  ;;  %v5708_v32 = vpop.permute.xlu0 %1363 }
 0x254   :  { %v707_v12 = vpop.permute.xlu2 %706  ;;  %v4333_v33 = vpop.permute.xlu1 %4332 }
 0x255   :  { %4077 = vmatpush.xpose.msk.msra.mxu1 %vm590_vm7, %v707_v12  ;;  %v4334_v52 = vunpack.i.l.bf16 %v4333_v33  ;;  %v4335_v0 = vunpack.i.h.bf16 %v4333_v33  ;;  %v4324_v12 = vunpack.i.l.bf16 %v4323_v7  ;;  %v4329_v33 = vunpack.i.l.bf16 %v4328_v28 }
 0x259   :  { %4078 = vmatpush.xpose.msk.msra.mxu1 %vm590_vm7, %v705_v21  ;;  %v4309_v21 = vunpack.i.l.bf16 %v5649_v37 }
 0x25a   :  { %1634 = vrot.lane.b32.xlu2 %v5504_v47, %s4764_s27 }
 0x25b   :  { %4084 = vmatmul.msk.f32.gmra.mxu2 %vm590_vm7, %v5681_v22  ;;  %v5716_v40 = vpop.permute.xlu0 %1480 }
 0x25c   :  { %v5721_v38 = vpop.permute.xlu2 %1398  ;;  %4079 = vmatmul.msk.f32.vlgmr.msra.gmra.mxu1 %vm590_vm7, %v5580_v31 }
 0x25d   :  { %4089 = vmatpush.xpose.msk.msrb.mxu1 %vm590_vm7, %v824_v19  ;;  %7508 = vst [vmem:[#allocation33_spill] sm:$0xff] %v5721_v38 }
 0x261   :  { %4090 = vmatpush.xpose.msk.msrb.mxu1 %vm590_vm7, %v822_v50  ;;  %v5739_v50 = vmul.f32 0.35355338, %v5622_v13 }
 0x262   :  { %4342 = vrot.lane.b32.xlu2 %v5728_v44, %s4762_s4  ;;  %s4774_s4 = smov 24  }
 0x263   :  { %v5730_v61 = vpop.permute.xlu0 %1441  ;;  %7511 = vst [vmem:[#allocation36_spill] sm:$0xff] %v5739_v50 }
 0x264   :  { %7510 = vst [vmem:[#allocation35_spill] sm:$0xff] %v5730_v61  ;;  %v785_v19 = vpop.permute.xlu2 %784  ;;  %4080 = vmatmul.msk.f32.gmra.mxu1 %vm590_vm7, %v5669_v17 }
 0x265   :  { %1135 = vmatpush.msra.mxu1 %v4334_v52  ;;  %4085 = vmatpush.xpose.msk.msra.mxu3 %vm590_vm7, %v785_v19 }
 0x267   :  { %1136 = vmatpush.msra.mxu1 %v4335_v0  ;;  %v4325_v0 = vunpack.i.h.bf16 %v4323_v7  ;;  %v4314_v7 = vunpack.i.l.bf16 %v5685_v25 }
 0x269   :  { %4086 = vmatpush.xpose.msk.msra.mxu3 %vm590_vm7, %v783_v53  ;;  %v4330_v53 = vunpack.i.h.bf16 %v4328_v28 }
 0x26a   :  { %1632 = vrot.lane.b32.xlu2 %v5739_v50, %s4763_s26 }
 0x26b   :  { %v5742_v49 = vpop.permute.xlu0 %1474 }
 0x26c   :  { %7512 = vst [vmem:[#allocation37_spill] sm:$0xff] %v5742_v49  ;;  %v5747_v52 = vpop.permute.xlu2 %1519  ;;  %4087 = vmatmul.msk.f32.vlgmr.msra.gmra.mxu3 %vm590_vm7, %v5704_v55  ;;  %4091 = vmatmul.msk.f32.vlgmr.msrb.gmra.mxu1 %vm590_vm7, %v5695_v1 }
 0x26d   :  { %1100 = vmatpush.msrb.mxu3 %v4309_v21  ;;  %1240 = vmatpush.msrb.mxu1 %v4324_v12  ;;  %v5773_v12 = vld [vmem:[%s7402_s7] sm:$0xff] }
 0x26f   :  { %1101 = vmatpush.msrb.mxu3 %v4310_v56  ;;  %1241 = vmatpush.msrb.mxu1 %v4325_v0  ;;  %v4315_v56 = vunpack.i.h.bf16 %v5685_v25  ;;  %v5787_v25 = vld [vmem:[%s7402_s7 + $0x8] sm:$0xff] }
 0x271   :  { %1205 = vmatpush.msra.mxu3 %v4329_v33 }
 0x273   :  { %1206 = vmatpush.msra.mxu3 %v4330_v53  ;;  %v5753_v19 = vpop.permute.xlu0 %1435 }
 0x274   :  { %7513 = vst [vmem:[#allocation38_spill] sm:$0xff] %v5753_v19  ;;  %v5755_v37 = vpop.permute.xlu2 %1478  ;;  %4088 = vmatmul.msk.f32.gmra.mxu3 %vm590_vm7, %v5660_v54  ;;  %4092 = vmatmul.msk.f32.gmra.mxu1 %vm590_vm7, %v5631_v5  ;;  %v5839_v19 = vpop.permute.xlu1 %1402 }
 0x27b   :  { %v5761_v21 = vpop.permute.xlu0 %1597 }
 0x27c   :  { %7514 = vst [vmem:[#allocation39_spill] sm:$0xff] %v5761_v21  ;;  %v863_v36 = vpop.permute.xlu2 %862 }
 0x27d   :  { %4093 = vmatpush.xpose.msk.msrb.mxu2 %vm590_vm7, %v863_v36 }
 0x281   :  { %4094 = vmatpush.xpose.msk.msrb.mxu2 %vm590_vm7, %v5676_v23 }
 0x283   :  { %v5767_v28 = vpop.permute.xlu0 %1595 }
 0x284   :  { %7515 = vst [vmem:[#allocation40_spill] sm:$0xff] %v5767_v28  ;;  %4095 = vmatmul.msk.f32.vlgmr.msrb.gmra.mxu2 %vm590_vm7, %v5613_v18  ;;  %v618_v36 = vpop.f32.mrf.mxu1 }
 0x285   :  { %1170 = vmatpush.msra.mxu2 %v4314_v7  ;;  %v5778_v33 = vadd.f32 %v618_v36, %v5773_v12 }
 0x287   :  { %1171 = vmatpush.msra.mxu2 %v4315_v56  ;;  %v898_v23 = vsel %vm897_vm11, %v5778_v33, -inf }
 0x288   :  { %899 = vmax.xlane.f32.xlu0 %v898_v23 }
 0x28b   :  { %v5782_v0 = vpop.permute.xlu0 %1593 }
 0x28c   :  { %7516 = vst [vmem:[#allocation41_spill] sm:$0xff] %v5782_v0  ;;  %4096 = vmatmul.msk.f32.gmra.mxu2 %vm590_vm7, %v5739_v50  ;;  %v621_v53 = vpop.f32.mrf.mxu1  ;;  %v5804_v50 = vpop.permute.xlu2 %1517 }
 0x28d   :  { %v5792_v7 = vadd.f32 %v621_v53, %v5787_v25 }
 0x28f   :  { %v901_v56 = vsel %vm897_vm11, %v5792_v7, -inf }
 0x293   :  { %v4338_v36 = vpop.permute.xlu0 %4337  ;;  %902 = vmax.xlane.f32.xlu2 %v901_v56 }
 0x294   :  { %v4339_v62 = vunpack.i.l.bf16 %v4338_v36  ;;  %v4340_v23 = vunpack.i.h.bf16 %v4338_v36 }
 0x296   :  { %1275 = vmatpush.msrb.mxu2 %v4339_v62  ;;  %v5808_v62 = vpop.permute.xlu2 %1439 }
 0x297   :  { %7517 = vst [vmem:[#allocation42_spill] sm:$0xff] %v5808_v62 }
 0x298   :  { %1276 = vmatpush.msrb.mxu2 %v4340_v23 }
 0x29e   :  { %v5810_v36 = vpop.permute.xlu2 %1476 }
 0x29f   :  { %7518 = vst [vmem:[#allocation43_spill] sm:$0xff] %v5810_v36 }
 0x2a4   :  { %v696_v43 = vpop.f32.mrf.mxu3 }
 0x2a5   :  { %v5797_v30 = vadd.f32 %v696_v43, %v5773_v12 }
 0x2a7   :  { %v910_v18 = vsel %vm897_vm11, %v5797_v30, -inf }
 0x2a8   :  { %911 = vmax.xlane.f32.xlu1 %v910_v18 }
 0x2ac   :  { %v699_v13 = vpop.f32.mrf.mxu3 }
 0x2ad   :  { %v5802_v53 = vadd.f32 %v699_v13, %v5787_v25  ;;  %v5817_v13 = vpop.permute.xlu2 %1515 }
 0x2ae   :  { %7519 = vst [vmem:[#allocation44_spill] sm:$0xff] %v5817_v13  ;;  %v5852_v13 = vpop.permute.xlu0 %1558 }
 0x2af   :  { %v913_v56 = vsel %vm897_vm11, %v5802_v53, -inf  ;;  %7523 = vst [vmem:[#allocation48_spill] sm:$0xff] %v5852_v13 }
 0x2b0   :  { %914 = vmax.xlane.f32.xlu1 %v913_v56 }
 0x2b5   :  { %v5824_v47 = vpop.permute.xlu2 %1591 }
 0x2b6   :  { %7520 = vst [vmem:[#allocation45_spill] sm:$0xff] %v5824_v47 }
 0x2c6   :  { %v657_v43 = vpop.f32.mrf.mxu2 }
 0x2c7   :  { %v5813_v23 = vadd.f32 %v657_v43, %v5773_v12 }
 0x2c9   :  { %v904_v18 = vsel %vm897_vm11, %v5813_v23, -inf }
 0x2ca   :  { %905 = vmax.xlane.f32.xlu2 %v904_v18 }
 0x2ce   :  { %v660_v54 = vpop.f32.mrf.mxu2 }
 0x2cf   :  { %v5820_v51 = vadd.f32 %v660_v54, %v5787_v25 }
 0x2d1   :  { %v907_v56 = vsel %vm897_vm11, %v5820_v51, -inf }
 0x2d2   :  { %908 = vmax.xlane.f32.xlu2 %v907_v56 }
 0x2d6   :  { %v774_v29 = vpop.f32.mrf.mxu2 }
 0x2d7   :  { %v5827_v43 = vadd.f32 %v774_v29, %v5773_v12  ;;  %v5841_v29 = vpop.permute.xlu2 %1552 }
 0x2d8   :  { %7521 = vst [vmem:[#allocation46_spill] sm:$0xff] %v5841_v29 }
 0x2d9   :  { %v922_v17 = vsel %vm897_vm11, %v5827_v43, -inf  ;;  %v735_v18 = vpop.f32.mrf.mxu1 }
 0x2da   :  { %923 = vmax.xlane.f32.xlu2 %v922_v17  ;;  %v5832_v55 = vadd.f32 %v735_v18, %v5773_v12 }
 0x2dc   :  { %v916_v54 = vsel %vm897_vm11, %v5832_v55, -inf }
 0x2dd   :  { %917 = vmax.xlane.f32.xlu0 %v916_v54  ;;  %v5850_v54 = vpop.permute.xlu1 %1513 }
 0x2de   :  { %v777_v5 = vpop.f32.mrf.mxu2  ;;  %7522 = vst [vmem:[#allocation47_spill] sm:$0xff] %v5850_v54 }
 0x2df   :  { %v5837_v56 = vadd.f32 %v777_v5, %v5787_v25  ;;  %v5854_v36 = vpop.permute.xlu2 %1634 }
 0x2e0   :  { %7524 = vst [vmem:[#allocation49_spill] sm:$0xff] %v5854_v36 }
 0x2e1   :  { %v925_v0 = vsel %vm897_vm11, %v5837_v56, -inf  ;;  %v738_v17 = vpop.f32.mrf.mxu1 }
 0x2e2   :  { %926 = vmax.xlane.f32.xlu2 %v925_v0  ;;  %v5846_v18 = vadd.f32 %v738_v17, %v5787_v25 }
 0x2e4   :  { %v919_v47 = vsel %vm897_vm11, %v5846_v18, -inf }
 0x2e5   :  { %920 = vmax.xlane.f32.xlu0 %v919_v47  ;;  %v5869_v54 = vpop.permute.xlu1 %1437 }
 0x2e6   :  { %7525 = vst [vmem:[#allocation50_spill] sm:$0xff] %v5869_v54 }
 0x2e7   :  { %v5873_v31 = vpop.permute.xlu2 %4342 }
 0x2e9   :  { %v852_v5 = vpop.f32.mrf.mxu1 }
 0x2ea   :  { %v5857_v29 = vadd.f32 %v852_v5, %v5773_v12  ;;  %v5871_v5 = vpop.permute.xlu0 %1554 }
 0x2eb   :  { %7526 = vst [vmem:[#allocation51_spill] sm:$0xff] %v5871_v5 }
 0x2ec   :  { %v934_v0 = vsel %vm897_vm11, %v5857_v29, -inf }
 0x2ed   :  { %935 = vmax.xlane.f32.xlu0 %v934_v0 }
 0x2ef   :  { %v813_v17 = vpop.f32.mrf.mxu3  ;;  %v5885_v5 = vpop.permute.xlu2 %1632 }
 0x2f0   :  { %v5862_v22 = vadd.f32 %v813_v17, %v5773_v12  ;;  %7528 = vst [vmem:[#allocation53_spill] sm:$0xff] %v5885_v5 }
 0x2f1   :  { %v855_v49 = vpop.f32.mrf.mxu1 }
 0x2f2   :  { %v5865_v47 = vadd.f32 %v855_v49, %v5787_v25  ;;  %v928_v13 = vsel %vm897_vm11, %v5862_v22, -inf }
 0x2f3   :  { %929 = vmax.xlane.f32.xlu1 %v928_v13  ;;  %v5883_v13 = vpop.permute.xlu1 %1556 }
 0x2f4   :  { %v937_v0 = vsel %vm897_vm11, %v5865_v47, -inf  ;;  %7527 = vst [vmem:[#allocation52_spill] sm:$0xff] %v5883_v13 }
 0x2f5   :  { %938 = vmax.xlane.f32.xlu0 %v937_v0 }
 0x2f7   :  { %v816_v17 = vpop.f32.mrf.mxu3 }
 0x2f8   :  { %v5878_v38 = vadd.f32 %v816_v17, %v5787_v25 }
 0x2fa   :  { %v931_v49 = vsel %vm897_vm11, %v5878_v38, -inf }
 0x2fb   :  { %932 = vmax.xlane.f32.xlu1 %v931_v49  ;;  %v900_v24 = vpop.xlane.xlu0 %899  ;;  %v5890_v20 = vpop.permute.xlu1 %1630 }
 0x2fc   :  { %v946_v54 = vsub.f32 %v5778_v33, %v900_v24  ;;  %7529 = vst [vmem:[#allocation54_spill] sm:$0xff] %v5890_v20 }
 0x2fe   :  { %v962_v36 = vmul.f32 1.442695, %v946_v54 }
 0x300   :  { %4504 = vpow2.f32 %v962_v36 }
 0x306   :  { %v903_v28 = vpop.xlane.xlu2 %902  ;;  %v5887_v62 = vpop.eup %4504 }
 0x307   :  { %v947_v0 = vsub.f32 %v5792_v7, %v903_v28  ;;  %v891_v17 = vpop.f32.mrf.mxu2  ;;  %v994_v24 = vsel %vm897_vm11, %v5887_v62, 0.0  ;;  %v5904_v7 = vpop.permute.xlu1 %1636 }
 0x308   :  { %v5893_v21 = vadd.f32 %v891_v17, %v5773_v12  ;;  %995 = vadd.xlane.f32.xlu0 %v994_v24  ;;  %7530 = vst [vmem:[#allocation55_spill] sm:$0xff] %v5904_v7 }
 0x309   :  { %v964_v33 = vmul.f32 1.442695, %v947_v0 }
 0x30a   :  { %v940_v54 = vsel %vm897_vm11, %v5893_v21, -inf }
 0x30b   :  { %4506 = vpow2.f32 %v964_v33  ;;  %941 = vmax.xlane.f32.xlu1 %v940_v54 }
 0x30f   :  { %v894_v36 = vpop.f32.mrf.mxu2 }
 0x310   :  { %v5900_v49 = vadd.f32 %v894_v36, %v5787_v25 }
 0x311   :  { %v5902_v28 = vpop.eup %4506 }
 0x312   :  { %v943_v12 = vsel %vm897_vm11, %v5900_v49, -inf  ;;  %v997_v0 = vsel %vm897_vm11, %v5902_v28, 0.0 }
 0x313   :  { %944 = vmax.xlane.f32.xlu1 %v943_v12  ;;  %998 = vadd.xlane.f32.xlu0 %v997_v0 }
 0x31b   :  { %v912_v17 = vpop.xlane.xlu1 %911 }
 0x31c   :  { %v950_v24 = vsub.f32 %v5797_v30, %v912_v17 }
 0x31e   :  { %v970_v33 = vmul.f32 1.442695, %v950_v24 }
 0x320   :  { %4508 = vpow2.f32 %v970_v33 }
 0x323   :  { %v915_v54 = vpop.xlane.xlu1 %914 }
 0x324   :  { %v951_v25 = vsub.f32 %v5802_v53, %v915_v54 }
 0x326   :  { %v5912_v36 = vpop.eup %4508  ;;  %v972_v5 = vmul.f32 1.442695, %v951_v25 }
 0x327   :  { %v1006_v20 = vsel %vm897_vm11, %v5912_v36, 0.0 }
 0x328   :  { %4510 = vpow2.f32 %v972_v5  ;;  %1007 = vadd.xlane.f32.xlu1 %v1006_v20 }
 0x32e   :  { %v5916_v13 = vpop.eup %4510 }
 0x32f   :  { %v1009_v12 = vsel %vm897_vm11, %v5916_v13, 0.0 }
 0x330   :  { %1010 = vadd.xlane.f32.xlu2 %v1009_v12 }
 0x33d   :  { %v906_v30 = vpop.xlane.xlu2 %905 }
 0x33e   :  { %v948_v0 = vsub.f32 %v5813_v23, %v906_v30 }
 0x340   :  { %v966_v17 = vmul.f32 1.442695, %v948_v0 }
 0x342   :  { %4512 = vpow2.f32 %v966_v17 }
 0x345   :  { %v909_v53 = vpop.xlane.xlu2 %908 }
 0x346   :  { %v949_v24 = vsub.f32 %v5820_v51, %v909_v53 }
 0x348   :  { %v5922_v33 = vpop.eup %4512  ;;  %v968_v54 = vmul.f32 1.442695, %v949_v24 }
 0x349   :  { %v1000_v20 = vsel %vm897_vm11, %v5922_v33, 0.0 }
 0x34a   :  { %4514 = vpow2.f32 %v968_v54  ;;  %1001 = vadd.xlane.f32.xlu1 %v1000_v20 }
 0x34d   :  { %v924_v54 = vpop.xlane.xlu2 %923 }
 0x350   :  { %v5926_v5 = vpop.eup %4514  ;;  %v918_v12 = vpop.xlane.xlu0 %917 }
 0x351   :  { %v1003_v25 = vsel %vm897_vm11, %v5926_v5, 0.0  ;;  %v952_v23 = vsub.f32 %v5832_v55, %v918_v12 }
 0x352   :  { %1004 = vadd.xlane.f32.xlu1 %v1003_v25 }
 0x353   :  { %v974_v30 = vmul.f32 1.442695, %v952_v23 }
 0x355   :  { %4516 = vpow2.f32 %v974_v30 }
 0x358   :  { %v921_v51 = vpop.xlane.xlu0 %920 }
 0x359   :  { %v953_v0 = vsub.f32 %v5846_v18, %v921_v51  ;;  %v927_v18 = vpop.xlane.xlu2 %926 }
 0x35b   :  { %v5932_v17 = vpop.eup %4516  ;;  %v976_v53 = vmul.f32 1.442695, %v953_v0 }
 0x35c   :  { %v1012_v24 = vsel %vm897_vm11, %v5932_v17, 0.0 }
 0x35d   :  { %4518 = vpow2.f32 %v976_v53  ;;  %1013 = vadd.xlane.f32.xlu0 %v1012_v24  ;;  %v955_v53 = vsub.f32 %v5837_v56, %v927_v18 }
 0x35f   :  { %v980_v45 = vmul.f32 1.442695, %v955_v53 }
 0x360   :  { %v936_v20 = vpop.xlane.xlu0 %935 }
 0x361   :  { %v958_v30 = vsub.f32 %v5857_v29, %v936_v20 }
 0x363   :  { %v5936_v7 = vpop.eup %4518  ;;  %v986_v61 = vmul.f32 1.442695, %v958_v30 }
 0x364   :  { %v1015_v55 = vsel %vm897_vm11, %v5936_v7, 0.0 }
 0x365   :  { %1016 = vadd.xlane.f32.xlu0 %v1015_v55 }
 0x366   :  { %v930_v25 = vpop.xlane.xlu1 %929 }
 0x367   :  { %v956_v12 = vsub.f32 %v5862_v22, %v930_v25  ;;  %v4351_v25 = vpack.i.bf16 %v5499_v46, %v5452_v27 }
 0x368   :  { %v939_v23 = vpop.xlane.xlu0 %938 }
 0x369   :  { %v982_v51 = vmul.f32 1.442695, %v956_v12  ;;  %v959_v0 = vsub.f32 %v5865_v47, %v939_v23 }
 0x36b   :  { %4520 = vpow2.f32 %v982_v51  ;;  %v988_v24 = vmul.f32 1.442695, %v959_v0  ;;  %v4319_v51 = vunpack.i.l.bf16 %v5657_v10 }
 0x36d   :  { %4522 = vpow2.f32 %v988_v24  ;;  %v4320_v24 = vunpack.i.h.bf16 %v5657_v10 }
 0x36e   :  { %v933_v60 = vpop.xlane.xlu1 %932  ;;  %4524 = vpow2.f32 %v986_v61 }
 0x36f   :  { %v957_v22 = vsub.f32 %v5878_v38, %v933_v60  ;;  %4526 = vpow2.f32 %v980_v45  ;;  %v954_v60 = vsub.f32 %v5827_v43, %v924_v54 }
 0x371   :  { %v5944_v26 = vpop.eup %4520  ;;  %v984_v47 = vmul.f32 1.442695, %v957_v22  ;;  %v978_v18 = vmul.f32 1.442695, %v954_v60 }
 0x372   :  { %v1024_v55 = vsel %vm897_vm11, %v5944_v26, 0.0 }
 0x373   :  { %v5949_v29 = vpop.eup %4522  ;;  %1025 = vadd.xlane.f32.xlu2 %v1024_v55  ;;  %4528 = vpow2.f32 %v984_v47 }
 0x374   :  { %v1033_v56 = vsel %vm897_vm11, %v5949_v29, 0.0  ;;  %v5953_v20 = vpop.eup %4524 }
 0x375   :  { %1034 = vadd.xlane.f32.xlu1 %v1033_v56  ;;  %v5957_v61 = vpop.eup %4526  ;;  %v1030_v45 = vsel %vm897_vm11, %v5953_v20, 0.0 }
 0x376   :  { %v1021_v38 = vsel %vm897_vm11, %v5957_v61, 0.0 }
 0x379   :  { %4352 = vrot.lane.b32.xlu0 %v4351_v25, %s4765_s10  ;;  %v5965_v23 = vpop.eup %4528 }
 0x37a   :  { %v1027_v43 = vsel %vm897_vm11, %v5965_v23, 0.0 }
 0x37b   :  { %1031 = vadd.xlane.f32.xlu2 %v1030_v45  ;;  %v996_v12 = vpop.xlane.xlu0 %995 }
 0x37c   :  { %4530 = vrcp.f32 %v996_v12  ;;  %v5986_v12 = vpack.i.bf16 %v5487_v11, %v5462_v58 }
 0x37d   :  { %1022 = vadd.xlane.f32.xlu1 %v1021_v38  ;;  %4532 = vpow2.f32 %v978_v18 }
 0x37e   :  { %v942_v22 = vpop.xlane.xlu1 %941 }
 0x37f   :  { %v960_v47 = vsub.f32 %v5893_v21, %v942_v22  ;;  %v4344_v22 = vunpack.i.l.bf16 %v5873_v31 }
 0x381   :  { %v990_v60 = vmul.f32 1.442695, %v960_v47  ;;  %v4356_v47 = vpack.i.bf16 %v5467_v63, %v5459_v4 }
 0x382   :  { %v4531_v54 = vpop.eup %4530 }
 0x383   :  { %1028 = vadd.xlane.f32.xlu2 %v1027_v43  ;;  %v1058_v30 = vmul.f32 %v4531_v54, %v5887_v62  ;;  %v5972_v53 = vpop.eup %4532 }
 0x384   :  { %v1018_v55 = vsel %vm897_vm11, %v5972_v53, 0.0 }
 0x385   :  { %4097 = vmatmul.msk.f32.vlgmr.msrb.gmra.mxu3 %vm897_vm11, %v1058_v30 }
 0x386   :  { %v999_v0 = vpop.xlane.xlu0 %998  ;;  %1310 = vmatpush.msrb.mxu3 %v4319_v51  ;;  %v945_v25 = vpop.xlane.xlu1 %944 }
 0x387   :  { %4534 = vrcp.f32 %v999_v0  ;;  %v961_v30 = vsub.f32 %v5900_v49, %v945_v25 }
 0x388   :  { %1311 = vmatpush.msrb.mxu3 %v4320_v24  ;;  %4536 = vpow2.f32 %v990_v60 }
 0x389   :  { %v992_v51 = vmul.f32 1.442695, %v961_v30 }
 0x38b   :  { %1019 = vadd.xlane.f32.xlu2 %v1018_v55  ;;  %v4345_v55 = vunpack.i.h.bf16 %v5873_v31 }
 0x38d   :  { %v4535_v56 = vpop.eup %4534 }
 0x38e   :  { %v1059_v62 = vmul.f32 %v4535_v56, %v5902_v28  ;;  %v5982_v45 = vpop.eup %4536 }
 0x38f   :  { %v1036_v21 = vsel %vm897_vm11, %v5982_v45, 0.0 }
 0x390   :  { %4098 = vmatmul.msk.f32.gmra.mxu3 %vm897_vm11, %v1059_v62 }
 0x396   :  { %4347 = vrot.lane.b32.xlu1 %v5508_v16, %s4765_s10 }
 0x39b   :  { %v1008_v10 = vpop.xlane.xlu1 %1007 }
 0x39c   :  { %4538 = vrcp.f32 %v1008_v10  ;;  %v6045_v10 = vpack.i.bf16 %v5494_v15, %v5532_v59 }
 0x3a2   :  { %v4539_v38 = vpop.eup %4538 }
 0x3a3   :  { %v1062_v28 = vmul.f32 %v4539_v38, %v5912_v36  ;;  %v1011_v18 = vpop.xlane.xlu2 %1010  ;;  %1037 = vadd.xlane.f32.xlu0 %v1036_v21  ;;  %4362 = vrot.lane.b32.xlu2 %v5986_v12, %s4765_s10  ;;  %v4376_v36 = vpack.i.bf16 %v5477_v8, %v5484_v9  ;;  %v4371_v38 = vpack.i.bf16 %v5608_v41, %v5474_v2 }
 0x3a4   :  { %4540 = vrcp.f32 %v1011_v18 }
 0x3a5   :  { %4101 = vmatmul.msk.f32.vlgmr.msra.gmra.mxu2 %vm897_vm11, %v1062_v28  ;;  %4542 = vpow2.f32 %v992_v51 }
 0x3a6   :  { %4115 = vmatpush.xpose.msk.msra.mxu2 %vm590_vm7, %v5708_v32 }
 0x3aa   :  { %v4541_v43 = vpop.eup %4540  ;;  %4116 = vmatpush.xpose.msk.msra.mxu2 %vm590_vm7, %v5666_v42 }
 0x3ab   :  { %v1063_v54 = vmul.f32 %v4541_v43, %v5916_v13  ;;  %4377 = vrot.lane.b32.xlu2 %v4376_v36, %s4765_s10  ;;  %v6010_v42 = vpop.eup %4542 }
 0x3ac   :  { %v1039_v13 = vsel %vm897_vm11, %v6010_v42, 0.0 }
 0x3ad   :  { %4102 = vmatmul.msk.f32.gmra.mxu2 %vm897_vm11, %v1063_v54 }
 0x3b3   :  { %2128 = vrot.lane.b32.xlu2 %v5561_v6, %s4766_s11 }
 0x3b7   :  { %2134 = vrot.lane.b32.xlu0 %v5449_v57, %s4767_s12 }
 0x3bb   :  { %2212 = vrot.lane.b32.xlu2 %v5452_v27, %s4767_s12 }
 0x3bd   :  { %v1002_v32 = vpop.xlane.xlu1 %1001 }
 0x3be   :  { %4544 = vrcp.f32 %v1002_v32 }
 0x3bf   :  { %2130 = vrot.lane.b32.xlu0 %v5570_v48, %s4766_s11 }
 0x3c0   :  { %1040 = vadd.xlane.f32.xlu1 %v1039_v13  ;;  %v7534_v13 = vld [vmem:[#allocation35_spill] sm:$0xff] }
 0x3c3   :  { %2173 = vrot.lane.b32.xlu2 %v5499_v46, %s4767_s12 }
 0x3c4   :  { %v4545_v49 = vpop.eup %4544 }
 0x3c5   :  { %v1060_v0 = vmul.f32 %v4545_v49, %v5922_v33  ;;  %v1005_v24 = vpop.xlane.xlu1 %1004 }
 0x3c6   :  { %4546 = vrcp.f32 %v1005_v24  ;;  %v7536_v24 = vld [vmem:[#allocation55_spill] sm:$0xff] }
 0x3c7   :  { %4099 = vmatmul.msk.f32.vlgmr.msra.gmra.mxu1 %vm897_vm11, %v1060_v0  ;;  %2169 = vrot.lane.b32.xlu0 %v5598_v39, %s4766_s11  ;;  %v7535_v0 = vld [vmem:[#allocation39_spill] sm:$0xff] }
 0x3c8   :  { %1345 = vmatpush.msra.mxu1 %v4344_v22  ;;  %v7537_v22 = vld [vmem:[#allocation15_spill] sm:$0xff] }
 0x3ca   :  { %1346 = vmatpush.msra.mxu1 %v4345_v55  ;;  %v7538_v55 = vld [vmem:[#allocation42_spill] sm:$0xff] }
 0x3cb   :  { %2290 = vrot.lane.b32.xlu2 %v5467_v63, %s4767_s12 }
 0x3cc   :  { %v4547_v56 = vpop.eup %4546 }
 0x3cd   :  { %v1061_v62 = vmul.f32 %v4547_v56, %v5926_v5 }
 0x3cf   :  { %4100 = vmatmul.msk.f32.gmra.mxu1 %vm897_vm11, %v1061_v62  ;;  %2362 = vrot.lane.b32.xlu0 %v5695_v1, %s4766_s11 }
 0x3d0   :  { %v1014_v33 = vpop.xlane.xlu0 %1013 }
 0x3d1   :  { %4548 = vrcp.f32 %v1014_v33  ;;  %v7539_v33 = vld [vmem:[#allocation40_spill] sm:$0xff] }
 0x3d3   :  { %2210 = vrot.lane.b32.xlu2 %v5459_v4, %s4767_s12 }
 0x3d7   :  { %v4549_v31 = vpop.eup %4548 }
 0x3d8   :  { %v1064_v25 = vmul.f32 %v4549_v31, %v5932_v17  ;;  %v1017_v60 = vpop.xlane.xlu0 %1016  ;;  %v7540_v31 = vld [vmem:[#allocation49_spill] sm:$0xff] }
 0x3d9   :  { %4550 = vrcp.f32 %v1017_v60  ;;  %4357 = vrot.lane.b32.xlu1 %v4356_v47, %s4765_s10  ;;  %v7542_v60 = vld [vmem:[#allocation33_spill] sm:$0xff] }
 0x3da   :  { %4103 = vmatmul.msk.f32.vlgmr.msra.gmra.mxu3 %vm897_vm11, %v1064_v25  ;;  %v7541_v25 = vld [vmem:[#allocation31_spill] sm:$0xff] }
 0x3db   :  { %4119 = vmatpush.xpose.msk.msra.mxu3 %vm590_vm7, %v5839_v19  ;;  %2171 = vrot.lane.b32.xlu2 %v5462_v58, %s4767_s12 }
 0x3df   :  { %v4551_v5 = vpop.eup %4550  ;;  %4120 = vmatpush.xpose.msk.msra.mxu3 %vm590_vm7, %v5674_v34 }
 0x3e0   :  { %v1065_v17 = vmul.f32 %v4551_v5, %v5936_v7  ;;  %v7543_v5 = vld [vmem:[#allocation16_spill] sm:$0xff] }
 0x3e1   :  { %4367 = vrot.lane.b32.xlu1 %v6045_v10, %s4765_s10 }
 0x3e2   :  { %4104 = vmatmul.msk.f32.gmra.mxu3 %vm897_vm11, %v1065_v17 }
 0x3e3   :  { %2288 = vrot.lane.b32.xlu2 %v5487_v11, %s4767_s12 }
 0x3e6   :  { %v1026_v19 = vpop.xlane.xlu2 %1025 }
 0x3e7   :  { %4552 = vrcp.f32 %v1026_v19 }
 0x3e8   :  { %v1035_v18 = vpop.xlane.xlu1 %1034 }
 0x3e9   :  { %4372 = vrot.lane.b32.xlu1 %v4371_v38, %s4765_s10  ;;  %v7544_v38 = vld [vmem:[#allocation37_spill] sm:$0xff] }
 0x3eb   :  { %2167 = vrot.lane.b32.xlu2 %v5525_v14, %s4766_s11  ;;  %v4353_v62 = vpop.permute.xlu0 %4352 }
 0x3ec   :  { %v4354_v19 = vunpack.i.l.bf16 %v4353_v62 }
 0x3ed   :  { %v4553_v34 = vpop.eup %4552 }
 0x3ee   :  { %v1068_v7 = vmul.f32 %v4553_v34, %v5944_v26  ;;  %v1032_v28 = vpop.xlane.xlu2 %1031  ;;  %v7546_v34 = vld [vmem:[#allocation27_spill] sm:$0xff] }
 0x3ef   :  { %4554 = vrcp.f32 %v1032_v28 }
 0x3f0   :  { %4107 = vmatmul.msk.f32.vlgmr.msrb.gmra.mxu2 %vm897_vm11, %v1068_v7  ;;  %4556 = vrcp.f32 %v1035_v18  ;;  %v1023_v30 = vpop.xlane.xlu1 %1022  ;;  %v7547_v18 = vld [vmem:[#allocation43_spill] sm:$0xff] }
 0x3f1   :  { %4127 = vmatpush.xpose.msk.msrb.mxu2 %vm590_vm7, %v5716_v40  ;;  %2132 = vrot.lane.b32.xlu1 %v5444_v3, %s4767_s12 }
 0x3f3   :  { %2208 = vrot.lane.b32.xlu2 %v5585_v35, %s4766_s11 }
 0x3f5   :  { %v4555_v21 = vpop.eup %4554  ;;  %4128 = vmatpush.xpose.msk.msrb.mxu2 %vm590_vm7, %v5755_v37 }
 0x3f6   :  { %v1070_v26 = vmul.f32 %v4555_v21, %v5953_v20  ;;  %v1029_v43 = vpop.xlane.xlu2 %1028  ;;  %v4557_v40 = vpop.eup %4556  ;;  %v7548_v21 = vld [vmem:[#allocation44_spill] sm:$0xff] }
 0x3f7   :  { %4558 = vrcp.f32 %v1029_v43  ;;  %v1071_v54 = vmul.f32 %v4557_v40, %v5949_v29  ;;  %v7532_v29 = vld [vmem:[#allocation28_spill] sm:$0xff]  ;;  %v7551_v40 = vld [vmem:[#allocation45_spill] sm:$0xff] }
 0x3f8   :  { %4109 = vmatmul.msk.f32.vlgmr.msrb.gmra.mxu3 %vm897_vm11, %v1070_v26  ;;  %v7549_v26 = vld [vmem:[#allocation48_spill] sm:$0xff] }
 0x3f9   :  { %4131 = vmatpush.xpose.msk.msrb.mxu3 %vm590_vm7, %v5747_v52  ;;  %4382 = vrot.lane.b32.xlu1 %v5728_v44, %s4765_s10  ;;  %v7531_v52 = vld [vmem:[#allocation18_spill] sm:$0xff]  ;;  %v7550_v43 = vld [vmem:[#allocation52_spill] sm:$0xff] }
 0x3fb   :  { %2368 = vrot.lane.b32.xlu2 %v5494_v15, %s4767_s12 }
 0x3fd   :  { %v4559_v36 = vpop.eup %4558  ;;  %4132 = vmatpush.xpose.msk.msrb.mxu3 %vm590_vm7, %v5804_v50 }
 0x3fe   :  { %v1020_v37 = vpop.xlane.xlu2 %1019  ;;  %v1069_v20 = vmul.f32 %v4559_v36, %v5965_v23  ;;  %v7533_v23 = vld [vmem:[#allocation29_spill] sm:$0xff] }
 0x3ff   :  { %4560 = vrcp.f32 %v1020_v37  ;;  %v7553_v36 = vld [vmem:[#allocation41_spill] sm:$0xff] }
 0x400   :  { %4108 = vmatmul.msk.f32.gmra.mxu2 %vm897_vm11, %v1069_v20  ;;  %4110 = vmatmul.msk.f32.gmra.mxu3 %vm897_vm11, %v1071_v54  ;;  %4562 = vrcp.f32 %v1023_v30  ;;  %v7554_v37 = vld [vmem:[#allocation53_spill] sm:$0xff] }
 0x401   :  { %2206 = vrot.lane.b32.xlu1 %v7531_v52, %s4766_s11 }
 0x403   :  { %2329 = vrot.lane.b32.xlu2 %v5608_v41, %s4767_s12 }
 0x405   :  { %v4561_v51 = vpop.eup %4560 }
 0x406   :  { %v1066_v50 = vmul.f32 %v4561_v51, %v5972_v53  ;;  %v4563_v53 = vpop.eup %4562  ;;  %v4363_v51 = vpop.permute.xlu2 %4362 }
 0x407   :  { %v1067_v47 = vmul.f32 %v4563_v53, %v5957_v61  ;;  %v7545_v61 = vld [vmem:[#allocation47_spill] sm:$0xff] }
 0x408   :  { %v4348_v32 = vpop.permute.xlu1 %4347  ;;  %4105 = vmatmul.msk.f32.vlgmr.msrb.gmra.mxu1 %vm897_vm11, %v1066_v50  ;;  %4117 = vmatmul.msk.f32.vlgmr.msra.gmra.mxu2 %vm590_vm7, %v7532_v29  ;;  %v4355_v50 = vunpack.i.h.bf16 %v4353_v62  ;;  %v4364_v29 = vunpack.i.l.bf16 %v4363_v51  ;;  %v7557_v62 = vld [vmem:[#allocation46_spill] sm:$0xff] }
 0x409   :  { %4121 = vmatmul.msk.f32.vlgmr.msra.gmra.mxu3 %vm590_vm7, %v7533_v23  ;;  %4123 = vmatpush.xpose.msk.msrb.mxu1 %vm590_vm7, %v7534_v13  ;;  %v4349_v49 = vunpack.i.l.bf16 %v4348_v32  ;;  %v4350_v56 = vunpack.i.h.bf16 %v4348_v32  ;;  %v7555_v32 = vld [vmem:[#allocation38_spill] sm:$0xff] }
 0x40a   :  { %4139 = vmatpush.xpose.msk.msra.mxu2 %vm590_vm7, %v7535_v0  ;;  %4143 = vmatpush.xpose.msk.msra.mxu3 %vm590_vm7, %v7536_v24  ;;  %v7556_v0 = vld [vmem:[#allocation50_spill] sm:$0xff]  ;;  %v4365_v24 = vunpack.i.h.bf16 %v4363_v51 }
 0x40b   :  { %2284 = vrot.lane.b32.xlu1 %v7537_v22, %s4766_s11  ;;  %2366 = vrot.lane.b32.xlu2 %v5484_v9, %s4767_s12 }
 0x40c   :  { %1871 = vmatpush.msrb.mxu0 %v4349_v49 }
 0x40d   :  { %4124 = vmatpush.xpose.msk.msrb.mxu1 %vm590_vm7, %v7538_v55 }
 0x40e   :  { %4140 = vmatpush.xpose.msk.msra.mxu2 %vm590_vm7, %v7539_v33  ;;  %4144 = vmatpush.xpose.msk.msra.mxu3 %vm590_vm7, %v7540_v31  ;;  %v6154_v31 = vpop.f32.mrf.mxu3 }
 0x40f   :  { %1872 = vmatpush.msrb.mxu0 %v4350_v56  ;;  %7558 = vst [vmem:[#allocation28_spill] sm:$0xff] %v6154_v31 }
 0x410   :  { %4106 = vmatmul.msk.f32.gmra.mxu1 %vm897_vm11, %v1067_v47  ;;  %4118 = vmatmul.msk.f32.gmra.mxu2 %vm590_vm7, %v7541_v25 }
 0x411   :  { %4122 = vmatmul.msk.f32.gmra.mxu3 %vm590_vm7, %v7542_v60 }
 0x413   :  { %2251 = vrot.lane.b32.xlu1 %v5532_v59, %s4767_s12  ;;  %2245 = vrot.lane.b32.xlu2 %v7543_v5, %s4766_s11 }
 0x416   :  { %v1038_v17 = vpop.xlane.xlu0 %1037 }
 0x417   :  { %4564 = vrcp.f32 %v1038_v17  ;;  %v7559_v17 = vld [vmem:[#allocation51_spill] sm:$0xff] }
 0x418   :  { %4129 = vmatmul.msk.f32.vlgmr.msrb.gmra.mxu2 %vm590_vm7, %v7544_v38  ;;  %v6158_v38 = vpop.f32.mrf.mxu3 }
 0x419   :  { %4133 = vmatmul.msk.f32.vlgmr.msrb.gmra.mxu3 %vm590_vm7, %v7545_v61  ;;  %1941 = vmatpush.msrb.mxu2 %v4354_v19  ;;  %7560 = vst [vmem:[#allocation29_spill] sm:$0xff] %v6158_v38  ;;  %v7577_v38 = vld [vmem:[#allocation26_spill] sm:$0xff] }
 0x41b   :  { %2286 = vrot.lane.b32.xlu1 %v7546_v34, %s4766_s11 }
 0x41d   :  { %v4565_v7 = vpop.eup %4564 }
 0x41e   :  { %v1072_v28 = vmul.f32 %v4565_v7, %v5982_v45  ;;  %v7552_v45 = vld [vmem:[#allocation54_spill] sm:$0xff] }
 0x420   :  { %4111 = vmatmul.msk.f32.vlgmr.msra.gmra.mxu1 %vm897_vm11, %v1072_v28  ;;  %4130 = vmatmul.msk.f32.gmra.mxu2 %vm590_vm7, %v7547_v18 }
 0x421   :  { %4134 = vmatmul.msk.f32.gmra.mxu3 %vm590_vm7, %v7548_v21  ;;  %4135 = vmatpush.xpose.msk.msra.mxu1 %vm590_vm7, %v7549_v26 }
 0x423   :  { %2249 = vrot.lane.b32.xlu1 %v5474_v2, %s4767_s12 }
 0x425   :  { %4136 = vmatpush.xpose.msk.msra.mxu1 %vm590_vm7, %v7550_v43 }
 0x428   :  { %4141 = vmatmul.msk.f32.vlgmr.msra.gmra.mxu2 %vm590_vm7, %v7551_v40  ;;  %v6162_v7 = vpop.f32.mrf.mxu2 }
 0x429   :  { %4145 = vmatmul.msk.f32.vlgmr.msra.gmra.mxu3 %vm590_vm7, %v7552_v45  ;;  %7561 = vst [vmem:[#allocation35_spill] sm:$0xff] %v6162_v7 }
 0x42b   :  { %2327 = vrot.lane.b32.xlu1 %v5477_v8, %s4767_s12 }
 0x430   :  { %4142 = vmatmul.msk.f32.gmra.mxu2 %vm590_vm7, %v7553_v36  ;;  %v6166_v43 = vpop.f32.mrf.mxu2 }
 0x431   :  { %4146 = vmatmul.msk.f32.gmra.mxu3 %vm590_vm7, %v7554_v37  ;;  %7563 = vst [vmem:[#allocation55_spill] sm:$0xff] %v6166_v43 }
 0x433   :  { %v1041_v20 = vpop.xlane.xlu1 %1040 }
 0x434   :  { %4566 = vrcp.f32 %v1041_v20 }
 0x43a   :  { %v4567_v54 = vpop.eup %4566 }
 0x43b   :  { %v1073_v30 = vmul.f32 %v4567_v54, %v6010_v42  ;;  %v4378_v42 = vpop.permute.xlu2 %4377  ;;  %v6181_v54 = vld [vmem:[%s7402_s7 + $0x10] sm:$0xff] }
 0x43c   :  { %v4379_v33 = vunpack.i.l.bf16 %v4378_v42  ;;  %v4380_v19 = vunpack.i.h.bf16 %v4378_v42 }
 0x43d   :  { %4112 = vmatmul.msk.f32.gmra.mxu1 %vm897_vm11, %v1073_v30 }
 0x445   :  { %4125 = vmatmul.msk.f32.vlgmr.msrb.gmra.mxu1 %vm590_vm7, %v7555_v32  ;;  %v6186_v32 = vpop.f32.mrf.mxu1 }
 0x446   :  { %1906 = vmatpush.msrb.mxu1 %v4355_v50  ;;  %7569 = vst [vmem:[#allocation37_spill] sm:$0xff] %v6186_v32 }
 0x448   :  { %1907 = vmatpush.msrb.mxu1 %v4364_v29 }
 0x44b   :  { %v4358_v23 = vpop.permute.xlu1 %4357 }
 0x44c   :  { %v4360_v13 = vunpack.i.h.bf16 %v4358_v23  ;;  %v4359_v49 = vunpack.i.l.bf16 %v4358_v23  ;;  %v6193_v23 = vld [vmem:[%s7402_s7 + $0x18] sm:$0xff] }
 0x44d   :  { %4126 = vmatmul.msk.f32.gmra.mxu1 %vm590_vm7, %v7556_v0 }
 0x44e   :  { %1942 = vmatpush.msrb.mxu2 %v4359_v49  ;;  %2011 = vmatpush.msra.mxu0 %v4360_v13 }
 0x450   :  { %2012 = vmatpush.msra.mxu0 %v4365_v24 }
 0x453   :  { %v4368_v53 = vpop.permute.xlu1 %4367 }
 0x454   :  { %v4370_v55 = vunpack.i.h.bf16 %v4368_v53  ;;  %v4369_v56 = vunpack.i.l.bf16 %v4368_v53 }
 0x455   :  { %4137 = vmatmul.msk.f32.vlgmr.msra.gmra.mxu1 %vm590_vm7, %v7557_v62 }
 0x456   :  { %1976 = vmatpush.msrb.mxu3 %v4369_v56  ;;  %2081 = vmatpush.msra.mxu2 %v4370_v55  ;;  %v6205_v55 = vpop.f32.mrf.mxu1 }
 0x457   :  { %7570 = vst [vmem:[#allocation47_spill] sm:$0xff] %v6205_v55 }
 0x458   :  { %2082 = vmatpush.msra.mxu2 %v4379_v33 }
 0x45b   :  { %v4373_v47 = vpop.permute.xlu1 %4372 }
 0x45c   :  { %v4375_v25 = vunpack.i.h.bf16 %v4373_v47  ;;  %v4374_v60 = vunpack.i.l.bf16 %v4373_v47 }
 0x45d   :  { %4138 = vmatmul.msk.f32.gmra.mxu1 %vm590_vm7, %v7559_v17  ;;  %v6164_v28 = vpop.f32.mrf.mxu3 }
 0x45e   :  { %1977 = vmatpush.msrb.mxu3 %v4374_v60  ;;  %2046 = vmatpush.msra.mxu1 %v4375_v25  ;;  %7562 = vst [vmem:[#allocation39_spill] sm:$0xff] %v6164_v28 }
 0x460   :  { %2047 = vmatpush.msra.mxu1 %v4380_v19 }
 0x463   :  { %v6160_v61 = vpop.permute.xlu1 %2132 }
 0x465   :  { %v6168_v40 = vpop.f32.mrf.mxu3 }
 0x466   :  { %7564 = vst [vmem:[#allocation42_spill] sm:$0xff] %v6168_v40 }
 0x46b   :  { %v4383_v18 = vpop.permute.xlu1 %4382 }
 0x46c   :  { %v4384_v21 = vunpack.i.l.bf16 %v4383_v18  ;;  %v4385_v26 = vunpack.i.h.bf16 %v4383_v18 }
 0x46e   :  { %2116 = vmatpush.msra.mxu3 %v4384_v21 }
 0x470   :  { %2117 = vmatpush.msra.mxu3 %v4385_v26 }
 0x473   :  { %v6170_v45 = vpop.f32.mrf.mxu2 }
 0x474   :  { %7565 = vst [vmem:[#allocation40_spill] sm:$0xff] %v6170_v45 }
 0x47b   :  { %v6172_v36 = vpop.f32.mrf.mxu3 }
 0x47c   :  { %7566 = vst [vmem:[#allocation49_spill] sm:$0xff] %v6172_v36 }
 0x483   :  { %v6174_v37 = vpop.f32.mrf.mxu2  ;;  %v6176_v20 = vpop.f32.mrf.mxu3 }
 0x484   :  { %7567 = vst [vmem:[#allocation31_spill] sm:$0xff] %v6174_v37  ;;  %v6258_v37 = vpop.permute.xlu1 %2206 }
 0x485   :  { %7568 = vst [vmem:[#allocation33_spill] sm:$0xff] %v6176_v20  ;;  %v6217_v60 = vpop.f32.mrf.mxu1 }
 0x486   :  { %7571 = vst [vmem:[#allocation43_spill] sm:$0xff] %v6217_v60 }
 0x48b   :  { %v1390_v30 = vpop.f32.mrf.mxu2 }
 0x48c   :  { %v6184_v51 = vadd.f32 %v6181_v54, %v1390_v30  ;;  %v1429_v50 = vpop.f32.mrf.mxu3 }
 0x48d   :  { %v6196_v13 = vadd.f32 %v6181_v54, %v1429_v50  ;;  %v6224_v21 = vpop.f32.mrf.mxu1 }
 0x48e   :  { %v1669_v29 = vsel %vm897_vm11, %v6184_v51, -inf  ;;  %7572 = vst [vmem:[#allocation44_spill] sm:$0xff] %v6224_v21 }
 0x48f   :  { %1670 = vmax.xlane.f32.xlu0 %v1669_v29  ;;  %v1675_v42 = vsel %vm897_vm11, %v6196_v13, -inf }
 0x493   :  { %v1393_v49 = vpop.f32.mrf.mxu2 }
 0x494   :  { %v6199_v0 = vadd.f32 %v6193_v23, %v1393_v49  ;;  %v1432_v53 = vpop.f32.mrf.mxu3  ;;  %v6233_v49 = vpop.permute.xlu2 %2128 }
 0x495   :  { %v6208_v56 = vadd.f32 %v6193_v23, %v1432_v53 }
 0x496   :  { %v1672_v24 = vsel %vm897_vm11, %v6199_v0, -inf }
 0x497   :  { %1673 = vmax.xlane.f32.xlu1 %v1672_v24  ;;  %1676 = vmax.xlane.f32.xlu0 %v1675_v42  ;;  %v1678_v25 = vsel %vm897_vm11, %v6208_v56, -inf }
 0x49b   :  { %v1507_v62 = vpop.f32.mrf.mxu2 }
 0x49c   :  { %v6211_v33 = vadd.f32 %v6181_v54, %v1507_v62  ;;  %v1546_v24 = vpop.f32.mrf.mxu3  ;;  %v6237_v62 = vpop.permute.xlu2 %2212 }
 0x49d   :  { %v6231_v29 = vpop.f32.mrf.mxu1 }
 0x49e   :  { %v1687_v47 = vsel %vm897_vm11, %v6211_v33, -inf  ;;  %7573 = vst [vmem:[#allocation48_spill] sm:$0xff] %v6231_v29 }
 0x49f   :  { %1688 = vmax.xlane.f32.xlu1 %v1687_v47  ;;  %1679 = vmax.xlane.f32.xlu0 %v1678_v25  ;;  %v7575_v25 = vld [vmem:[#allocation23_spill] sm:$0xff] }
 0x4a3   :  { %v1510_v17 = vpop.f32.mrf.mxu2 }
 0x4a4   :  { %v6220_v19 = vadd.f32 %v6193_v23, %v1510_v17  ;;  %v1549_v17 = vpop.f32.mrf.mxu3  ;;  %v6252_v29 = vpop.permute.xlu2 %2173 }
 0x4a6   :  { %v1690_v18 = vsel %vm897_vm11, %v6220_v19, -inf }
 0x4a7   :  { %1691 = vmax.xlane.f32.xlu1 %v1690_v18 }
 0x4ab   :  { %v1624_v26 = vpop.f32.mrf.mxu2 }
 0x4ac   :  { %v6227_v30 = vadd.f32 %v6181_v54, %v1624_v26  ;;  %v6247_v26 = vadd.f32 %v6181_v54, %v1546_v24  ;;  %v1663_v36 = vpop.f32.mrf.mxu3  ;;  %v6261_v24 = vadd.f32 %v6193_v23, %v1549_v17  ;;  %v6270_v60 = vpop.permute.xlu2 %2290 }
 0x4ad   :  { %v6277_v17 = vpop.permute.xlu0 %2134 }
 0x4ae   :  { %v1705_v50 = vsel %vm897_vm11, %v6227_v30, -inf }
 0x4af   :  { %1706 = vmax.xlane.f32.xlu0 %v1705_v50 }
 0x4b3   :  { %v1627_v43 = vpop.f32.mrf.mxu2 }
 0x4b4   :  { %v6281_v40 = vpop.permute.xlu2 %2210 }
 0x4ba   :  { %v6235_v42 = vpop.f32.mrf.mxu1 }
 0x4bb   :  { %7574 = vst [vmem:[#allocation52_spill] sm:$0xff] %v6235_v42 }
 0x4c2   :  { %v1468_v53 = vpop.f32.mrf.mxu1 }
 0x4c3   :  { %v6240_v47 = vadd.f32 %v6181_v54, %v1468_v53  ;;  %2364 = vrot.lane.b32.xlu0 %v7575_v25, %s4766_s11  ;;  %v1693_v53 = vsel %vm897_vm11, %v6247_v26, -inf }
 0x4c5   :  { %v1681_v18 = vsel %vm897_vm11, %v6240_v47, -inf }
 0x4c6   :  { %1682 = vmax.xlane.f32.xlu2 %v1681_v18  ;;  %v6264_v18 = vadd.f32 %v6181_v54, %v1663_v36 }
 0x4c8   :  { %v1711_v45 = vsel %vm897_vm11, %v6264_v18, -inf }
 0x4ca   :  { %v1471_v50 = vpop.f32.mrf.mxu1 }
 0x4cb   :  { %v6250_v42 = vadd.f32 %v6193_v23, %v1471_v50  ;;  %v1696_v50 = vsel %vm897_vm11, %v6261_v24, -inf }
 0x4cd   :  { %v1684_v20 = vsel %vm897_vm11, %v6250_v42, -inf }
 0x4ce   :  { %1694 = vmax.xlane.f32.xlu2 %v1693_v53  ;;  %1685 = vmax.xlane.f32.xlu1 %v1684_v20  ;;  %v6275_v53 = vpop.permute.xlu1 %2284 }
 0x4d2   :  { %v1585_v21 = vpop.f32.mrf.mxu1 }
 0x4d3   :  { %v6273_v20 = vadd.f32 %v6181_v54, %v1585_v21  ;;  %v6290_v54 = vpop.permute.xlu2 %2171 }
 0x4d5   :  { %v1699_v36 = vsel %vm897_vm11, %v6273_v20, -inf }
 0x4d6   :  { %1697 = vmax.xlane.f32.xlu2 %v1696_v50  ;;  %1712 = vmax.xlane.f32.xlu1 %v1711_v45  ;;  %v6283_v28 = vpop.permute.xlu1 %2251  ;;  %v6285_v50 = vpop.permute.xlu0 %2130  ;;  %v6288_v45 = vadd.f32 %v6193_v23, %v1627_v43 }
 0x4d8   :  { %v1708_v21 = vsel %vm897_vm11, %v6288_v45, -inf }
 0x4db   :  { %v6300_v32 = vpop.permute.xlu2 %2288 }
 0x4de   :  { %1700 = vmax.xlane.f32.xlu2 %v1699_v36  ;;  %v6294_v7 = vpop.permute.xlu1 %2286  ;;  %v7576_v36 = vld [vmem:[#allocation32_spill] sm:$0xff]  ;;  %v6298_v55 = vpop.permute.xlu0 %2169 }
 0x4e3   :  { %v6308_v41 = vpop.permute.xlu2 %2167 }
 0x4e6   :  { %v6304_v43 = vpop.permute.xlu1 %2249  ;;  %v6306_v31 = vpop.permute.xlu0 %2362 }
 0x4ed   :  { %1709 = vmax.xlane.f32.xlu0 %v1708_v21 }
 0x4ee   :  { %v6310_v22 = vpop.permute.xlu1 %2327 }
 0x4ef   :  { %2323 = vrot.lane.b32.xlu1 %v7576_v36, %s4766_s11  ;;  %v6313_v36 = vpop.permute.xlu2 %2208 }
 0x4f6   :  { %2247 = vrot.lane.b32.xlu2 %v7577_v38, %s4766_s11 }
 0x502   :  { %v1671_v21 = vpop.xlane.xlu0 %1670 }
 0x503   :  { %v1717_v25 = vsub.f32 %v6184_v51, %v1671_v21 }
 0x505   :  { %v1733_v8 = vmul.f32 1.442695, %v1717_v25  ;;  %v6321_v25 = vpop.permute.xlu2 %2368 }
 0x507   :  { %4568 = vpow2.f32 %v1733_v8 }
 0x50a   :  { %v1674_v1 = vpop.xlane.xlu1 %1673  ;;  %v1677_v15 = vpop.xlane.xlu0 %1676 }
 0x50b   :  { %v1719_v34 = vsub.f32 %v6196_v13, %v1677_v15  ;;  %v1718_v5 = vsub.f32 %v6199_v0, %v1674_v1  ;;  %v1588_v15 = vpop.f32.mrf.mxu1 }
 0x50c   :  { %v6329_v1 = vadd.f32 %v6193_v23, %v1588_v15 }
 0x50d   :  { %v6316_v38 = vpop.eup %4568  ;;  %v1737_v11 = vmul.f32 1.442695, %v1719_v34  ;;  %v1735_v59 = vmul.f32 1.442695, %v1718_v5  ;;  %v6333_v0 = vpop.permute.xlu2 %2329 }
 0x50e   :  { %v1765_v39 = vsel %vm897_vm11, %v6316_v38, 0.0 }
 0x50f   :  { %1766 = vadd.xlane.f32.xlu0 %v1765_v39  ;;  %4570 = vpow2.f32 %v1737_v11 }
 0x510   :  { %4572 = vpow2.f32 %v1735_v59 }
 0x512   :  { %v1689_v51 = vpop.xlane.xlu1 %1688  ;;  %v1680_v39 = vpop.xlane.xlu0 %1679 }
 0x513   :  { %v1723_v21 = vsub.f32 %v6211_v33, %v1689_v51  ;;  %v1720_v35 = vsub.f32 %v6208_v56, %v1680_v39  ;;  %v1702_v33 = vsel %vm897_vm11, %v6329_v1, -inf  ;;  %v1666_v51 = vpop.f32.mrf.mxu3 }
 0x515   :  { %v6323_v8 = vpop.eup %4570  ;;  %v1745_v13 = vmul.f32 1.442695, %v1723_v21  ;;  %v1739_v21 = vmul.f32 1.442695, %v1720_v35 }
 0x516   :  { %v1771_v34 = vsel %vm897_vm11, %v6323_v8, 0.0  ;;  %v6331_v5 = vpop.eup %4572 }
 0x517   :  { %1772 = vadd.xlane.f32.xlu0 %v1771_v34  ;;  %4574 = vpow2.f32 %v1745_v13  ;;  %v1768_v15 = vsel %vm897_vm11, %v6331_v5, 0.0  ;;  %v6342_v34 = vadd.f32 %v6193_v23, %v1666_v51 }
 0x518   :  { %4576 = vpow2.f32 %v1739_v21 }
 0x519   :  { %v1714_v56 = vsel %vm897_vm11, %v6342_v34, -inf }
 0x51a   :  { %v1692_v11 = vpop.xlane.xlu1 %1691 }
 0x51b   :  { %v1724_v59 = vsub.f32 %v6220_v19, %v1692_v11  ;;  %v6348_v19 = vpop.permute.xlu2 %2366 }
 0x51d   :  { %v1747_v44 = vmul.f32 1.442695, %v1724_v59  ;;  %v6344_v52 = vpop.eup %4574 }
 0x51e   :  { %v1783_v13 = vsel %vm897_vm11, %v6344_v52, 0.0  ;;  %v6352_v39 = vpop.eup %4576 }
 0x51f   :  { %1703 = vmax.xlane.f32.xlu2 %v1702_v33  ;;  %1769 = vadd.xlane.f32.xlu0 %v1768_v15  ;;  %4578 = vpow2.f32 %v1747_v44  ;;  %v1774_v23 = vsel %vm897_vm11, %v6352_v39, 0.0 }
 0x523   :  { %v6360_v11 = vpop.permute.xlu2 %2245 }
 0x524   :  { %7578 = vst [vmem:[#allocation45_spill] sm:$0xff] %v6360_v11 }
 0x525   :  { %v6354_v35 = vpop.eup %4578 }
 0x526   :  { %v1786_v44 = vsel %vm897_vm11, %v6354_v35, 0.0 }
 0x527   :  { %1715 = vmax.xlane.f32.xlu2 %v1714_v56  ;;  %1784 = vadd.xlane.f32.xlu0 %v1783_v13 }
 0x52f   :  { %1775 = vadd.xlane.f32.xlu2 %v1774_v23  ;;  %1787 = vadd.xlane.f32.xlu0 %v1786_v44  ;;  %v1707_v44 = vpop.xlane.xlu0 %1706 }
 0x539   :  { %v1683_v59 = vpop.xlane.xlu2 %1682 }
 0x53a   :  { %v1721_v33 = vsub.f32 %v6240_v47, %v1683_v59 }
 0x53c   :  { %v1741_v51 = vmul.f32 1.442695, %v1721_v33 }
 0x53e   :  { %4580 = vpow2.f32 %v1741_v51 }
 0x541   :  { %v1695_v15 = vpop.xlane.xlu2 %1694  ;;  %v1686_v21 = vpop.xlane.xlu1 %1685 }
 0x542   :  { %v1725_v56 = vsub.f32 %v6247_v26, %v1695_v15  ;;  %v1722_v14 = vsub.f32 %v6250_v42, %v1686_v21  ;;  %v1729_v26 = vsub.f32 %v6227_v30, %v1707_v44 }
 0x544   :  { %v6364_v13 = vpop.eup %4580  ;;  %v1749_v4 = vmul.f32 1.442695, %v1725_v56  ;;  %v1743_v27 = vmul.f32 1.442695, %v1722_v14 }
 0x545   :  { %v1777_v23 = vsel %vm897_vm11, %v6364_v13, 0.0 }
 0x546   :  { %4582 = vpow2.f32 %v1749_v4  ;;  %1778 = vadd.xlane.f32.xlu2 %v1777_v23  ;;  %v1757_v4 = vmul.f32 1.442695, %v1729_v26 }
 0x547   :  { %4584 = vpow2.f32 %v1743_v27 }
 0x549   :  { %v1698_v11 = vpop.xlane.xlu2 %1697  ;;  %v1713_v47 = vpop.xlane.xlu1 %1712 }
 0x54a   :  { %v1726_v59 = vsub.f32 %v6261_v24, %v1698_v11  ;;  %v1731_v33 = vsub.f32 %v6264_v18, %v1713_v47 }
 0x54c   :  { %v6371_v51 = vpop.eup %4582  ;;  %v1751_v15 = vmul.f32 1.442695, %v1726_v59  ;;  %v1761_v42 = vmul.f32 1.442695, %v1731_v33 }
 0x54d   :  { %v1789_v21 = vsel %vm897_vm11, %v6371_v51, 0.0  ;;  %v6376_v56 = vpop.eup %4584 }
 0x54e   :  { %4586 = vpow2.f32 %v1751_v15  ;;  %1790 = vadd.xlane.f32.xlu2 %v1789_v21  ;;  %v1780_v23 = vsel %vm897_vm11, %v6376_v56, 0.0 }
 0x54f   :  { %4588 = vpow2.f32 %v1761_v42 }
 0x550   :  { %4590 = vpow2.f32 %v1757_v4 }
 0x551   :  { %v1701_v14 = vpop.xlane.xlu2 %1700 }
 0x552   :  { %v1727_v24 = vsub.f32 %v6273_v20, %v1701_v14  ;;  %v6389_v20 = vpop.permute.xlu0 %2364  ;;  %v7579_v14 = vld [vmem:[#allocation7_spill] sm:$0xff] }
 0x554   :  { %v6379_v18 = vpop.eup %4586  ;;  %v1753_v11 = vmul.f32 1.442695, %v1727_v24 }
 0x555   :  { %v6381_v30 = vpop.eup %4588  ;;  %v1792_v27 = vsel %vm897_vm11, %v6379_v18, 0.0 }
 0x556   :  { %4592 = vpow2.f32 %v1753_v11  ;;  %1793 = vadd.xlane.f32.xlu1 %v1792_v27  ;;  %v1807_v44 = vsel %vm897_vm11, %v6381_v30, 0.0  ;;  %1781 = vadd.xlane.f32.xlu2 %v1780_v23  ;;  %v6391_v47 = vpop.eup %4590  ;;  %v4391_v11 = vpack.i.bf16 %v5467_v63, %v5499_v46  ;;  %v7580_v27 = vld [vmem:[#allocation8_spill] sm:$0xff] }
 0x557   :  { %1808 = vadd.xlane.f32.xlu0 %v1807_v44  ;;  %v1801_v26 = vsel %vm897_vm11, %v6391_v47, 0.0  ;;  %v7581_v23 = vld [vmem:[#allocation24_spill] sm:$0xff]  ;;  %v7582_v44 = vld [vmem:[#allocation25_spill] sm:$0xff] }
 0x55c   :  { %v6393_v59 = vpop.eup %4592 }
 0x55d   :  { %v1795_v33 = vsel %vm897_vm11, %v6393_v59, 0.0 }
 0x55e   :  { %1796 = vadd.xlane.f32.xlu1 %v1795_v33  ;;  %1802 = vadd.xlane.f32.xlu2 %v1801_v26  ;;  %v6415_v26 = vpop.permute.xlu2 %2247 }
 0x560   :  { %v1710_v15 = vpop.xlane.xlu0 %1709 }
 0x561   :  { %v1730_v42 = vsub.f32 %v6288_v45, %v1710_v15 }
 0x563   :  { %v1759_v21 = vmul.f32 1.442695, %v1730_v42 }
 0x565   :  { %4594 = vpow2.f32 %v1759_v21  ;;  %v7583_v21 = vld [vmem:[#allocation36_spill] sm:$0xff] }
 0x56b   :  { %v6400_v4 = vpop.eup %4594  ;;  %2405 = vrot.lane.b32.xlu0 %v7579_v14, %s4767_s12 }
 0x56c   :  { %v1804_v24 = vsel %vm897_vm11, %v6400_v4, 0.0 }
 0x56d   :  { %1805 = vadd.xlane.f32.xlu2 %v1804_v24 }
 0x573   :  { %4392 = vrot.lane.b32.xlu0 %v4391_v11, %s4768_s16 }
 0x57b   :  { %4402 = vrot.lane.b32.xlu0 %v7580_v27, %s4768_s16 }
 0x582   :  { %v1767_v45 = vpop.xlane.xlu0 %1766 }
 0x583   :  { %4407 = vrot.lane.b32.xlu0 %v7581_v23, %s4768_s16  ;;  %4596 = vrcp.f32 %v1767_v45 }
 0x585   :  { %2325 = vrot.lane.b32.xlu2 %v7582_v44, %s4766_s11 }
 0x589   :  { %v4597_v33 = vpop.eup %4596 }
 0x58a   :  { %v1829_v15 = vmul.f32 %v4597_v33, %v6316_v38  ;;  %v1773_v42 = vpop.xlane.xlu0 %1772 }
 0x58b   :  { %4598 = vrcp.f32 %v1773_v42 }
 0x58c   :  { %4147 = vmatmul.msk.f32.vlgmr.msrb.gmra.mxu0 %vm897_vm11, %v1829_v15 }
 0x58d   :  { %4165 = vmatpush.xpose.msk.msrb.mxu0 %vm590_vm7, %v6277_v17  ;;  %2403 = vrot.lane.b32.xlu2 %v7583_v21, %s4766_s11 }
 0x591   :  { %4166 = vmatpush.xpose.msk.msrb.mxu0 %vm590_vm7, %v6160_v61  ;;  %v4599_v24 = vpop.eup %4598 }
 0x592   :  { %v1704_v11 = vpop.xlane.xlu2 %1703  ;;  %v1831_v45 = vmul.f32 %v4599_v24, %v6323_v8  ;;  %v1770_v38 = vpop.xlane.xlu0 %1769 }
 0x593   :  { %v1728_v23 = vsub.f32 %v6329_v1, %v1704_v11  ;;  %4600 = vrcp.f32 %v1770_v38 }
 0x594   :  { %4149 = vmatmul.msk.f32.vlgmr.msrb.gmra.mxu1 %vm897_vm11, %v1831_v45 }
 0x595   :  { %v1755_v33 = vmul.f32 1.442695, %v1728_v23  ;;  %4397 = vrot.lane.b32.xlu2 %v5986_v12, %s4768_s16  ;;  %4169 = vmatpush.xpose.msk.msrb.mxu1 %vm590_vm7, %v6252_v29 }
 0x597   :  { %4602 = vpow2.f32 %v1755_v33 }
 0x599   :  { %v4601_v17 = vpop.eup %4600  ;;  %4170 = vmatpush.xpose.msk.msrb.mxu1 %vm590_vm7, %v6290_v54 }
 0x59a   :  { %v1716_v61 = vpop.xlane.xlu2 %1715  ;;  %v1785_v1 = vpop.xlane.xlu0 %1784  ;;  %v1830_v15 = vmul.f32 %v4601_v17, %v6331_v5 }
 0x59b   :  { %v1732_v8 = vsub.f32 %v6342_v34, %v1716_v61  ;;  %4604 = vrcp.f32 %v1785_v1 }
 0x59c   :  { %4148 = vmatmul.msk.f32.gmra.mxu0 %vm897_vm11, %v1830_v15 }
 0x59d   :  { %v6436_v23 = vpop.eup %4602  ;;  %2903 = vrot.lane.b32.xlu2 %v5444_v3, %s4769_s17  ;;  %v1763_v12 = vmul.f32 1.442695, %v1732_v8 }
 0x59e   :  { %v1798_v29 = vsel %vm897_vm11, %v6436_v23, 0.0 }
 0x59f   :  { %1799 = vadd.xlane.f32.xlu1 %v1798_v29  ;;  %4606 = vpow2.f32 %v1763_v12 }
 0x5a1   :  { %v4605_v54 = vpop.eup %4604 }
 0x5a2   :  { %v1776_v34 = vpop.xlane.xlu2 %1775  ;;  %v1835_v42 = vmul.f32 %v4605_v54, %v6344_v52  ;;  %v1788_v5 = vpop.xlane.xlu0 %1787 }
 0x5a3   :  { %4608 = vrcp.f32 %v1776_v34 }
 0x5a4   :  { %4610 = vrcp.f32 %v1788_v5  ;;  %4153 = vmatmul.msk.f32.vlgmr.msrb.gmra.mxu3 %vm897_vm11, %v1835_v42 }
 0x5a5   :  { %2899 = vrot.lane.b32.xlu2 %v5561_v6, %s4770_s18  ;;  %4177 = vmatpush.xpose.msk.msrb.mxu3 %vm590_vm7, %v6283_v28  ;;  %v6449_v3 = vpop.eup %4606  ;;  %v7584_v6 = vld [vmem:[#allocation22_spill] sm:$0xff] }
 0x5a6   :  { %v1810_v38 = vsel %vm897_vm11, %v6449_v3, 0.0 }
 0x5a9   :  { %v4609_v24 = vpop.eup %4608  ;;  %4178 = vmatpush.xpose.msk.msrb.mxu3 %vm590_vm7, %v6304_v43 }
 0x5aa   :  { %v4611_v11 = vpop.eup %4610  ;;  %v1832_v52 = vmul.f32 %v4609_v24, %v6352_v39  ;;  %v7585_v39 = vld [vmem:[#allocation21_spill] sm:$0xff] }
 0x5ab   :  { %v1836_v45 = vmul.f32 %v4611_v11, %v6354_v35  ;;  %v6467_v35 = vpop.permute.xlu1 %2323 }
 0x5ac   :  { %4150 = vmatmul.msk.f32.gmra.mxu1 %vm897_vm11, %v1832_v52 }
 0x5ad   :  { %1811 = vadd.xlane.f32.xlu0 %v1810_v38  ;;  %4154 = vmatmul.msk.f32.gmra.mxu3 %vm897_vm11, %v1836_v45 }
 0x5ae   :  { %4412 = vrot.lane.b32.xlu2 %v6045_v10, %s4768_s16 }
 0x5b6   :  { %2942 = vrot.lane.b32.xlu2 %v5462_v58, %s4769_s17 }
 0x5b8   :  { %2407 = vrot.lane.b32.xlu1 %v7584_v6, %s4767_s12 }
 0x5b9   :  { %v1779_v28 = vpop.xlane.xlu2 %1778 }
 0x5ba   :  { %4612 = vrcp.f32 %v1779_v28  ;;  %v7586_v28 = vld [vmem:[#allocation45_spill] sm:$0xff] }
 0x5c0   :  { %v4613_v43 = vpop.eup %4612  ;;  %2401 = vrot.lane.b32.xlu1 %v7585_v39, %s4766_s11 }
 0x5c1   :  { %v1833_v33 = vmul.f32 %v4613_v43, %v6364_v13  ;;  %2901 = vrot.lane.b32.xlu0 %v5570_v48, %s4770_s18  ;;  %v1791_v10 = vpop.xlane.xlu2 %1790 }
 0x5c2   :  { %4614 = vrcp.f32 %v1791_v10 }
 0x5c3   :  { %4151 = vmatmul.msk.f32.vlgmr.msrb.gmra.mxu2 %vm897_vm11, %v1833_v33 }
 0x5c4   :  { %4173 = vmatpush.xpose.msk.msrb.mxu2 %vm590_vm7, %v6237_v62 }
 0x5c8   :  { %v4615_v58 = vpop.eup %4614  ;;  %4174 = vmatpush.xpose.msk.msrb.mxu2 %vm590_vm7, %v6281_v40  ;;  %4387 = vrot.lane.b32.xlu1 %v5508_v16, %s4768_s16 }
 0x5c9   :  { %v1837_v17 = vmul.f32 %v4615_v58, %v6371_v51  ;;  %v1794_v13 = vpop.xlane.xlu1 %1793  ;;  %v1782_v61 = vpop.xlane.xlu2 %1781 }
 0x5ca   :  { %4616 = vrcp.f32 %v1794_v13  ;;  %v1809_v48 = vpop.xlane.xlu0 %1808 }
 0x5cb   :  { %4618 = vrcp.f32 %v1782_v61  ;;  %4155 = vmatmul.msk.f32.vlgmr.msra.gmra.mxu0 %vm897_vm11, %v1837_v17 }
 0x5cc   :  { %4620 = vrcp.f32 %v1809_v48  ;;  %4181 = vmatpush.xpose.msk.msra.mxu0 %vm590_vm7, %v6270_v60 }
 0x5d0   :  { %v4617_v62 = vpop.eup %4616  ;;  %4182 = vmatpush.xpose.msk.msra.mxu0 %vm590_vm7, %v6300_v32  ;;  %2905 = vrot.lane.b32.xlu1 %v5449_v57, %s4769_s17  ;;  %v4416_v57 = vpack.i.bf16 %v5484_v9, %v5474_v2 }
 0x5d1   :  { %v4619_v40 = vpop.eup %4618  ;;  %v1797_v51 = vpop.xlane.xlu1 %1796  ;;  %v1838_v1 = vmul.f32 %v4617_v62, %v6379_v18 }
 0x5d2   :  { %v1803_v8 = vpop.xlane.xlu2 %1802  ;;  %v4621_v15 = vpop.eup %4620  ;;  %4622 = vrcp.f32 %v1797_v51  ;;  %v1834_v12 = vmul.f32 %v4619_v40, %v6376_v56 }
 0x5d3   :  { %v1843_v29 = vmul.f32 %v4621_v15, %v6381_v30  ;;  %4624 = vrcp.f32 %v1803_v8  ;;  %4156 = vmatmul.msk.f32.gmra.mxu0 %vm897_vm11, %v1838_v1  ;;  %v6566_v8 = vld [vmem:[%s7402_s7 + $0x20] sm:$0xff] }
 0x5d4   :  { %4152 = vmatmul.msk.f32.gmra.mxu2 %vm897_vm11, %v1834_v12 }
 0x5d5   :  { %4161 = vmatmul.msk.f32.vlgmr.msra.gmra.mxu3 %vm897_vm11, %v1843_v29  ;;  %v6576_v29 = vld [vmem:[%s7402_s7 + $0x28] sm:$0xff] }
 0x5d8   :  { %v4623_v32 = vpop.eup %4622  ;;  %4417 = vrot.lane.b32.xlu1 %v4416_v57, %s4768_s16 }
 0x5d9   :  { %v4625_v60 = vpop.eup %4624  ;;  %v1839_v18 = vmul.f32 %v4623_v32, %v6393_v59 }
 0x5da   :  { %v1841_v56 = vmul.f32 %v4625_v60, %v6391_v47 }
 0x5db   :  { %4157 = vmatmul.msk.f32.vlgmr.msra.gmra.mxu1 %vm897_vm11, %v1839_v18  ;;  %4167 = vmatmul.msk.f32.vlgmr.msrb.gmra.mxu0 %vm590_vm7, %v6233_v49  ;;  %v7587_v18 = vld [vmem:[#allocation2_spill] sm:$0xff] }
 0x5dc   :  { %4159 = vmatmul.msk.f32.vlgmr.msra.gmra.mxu2 %vm897_vm11, %v1841_v56  ;;  %4185 = vmatpush.xpose.msk.msra.mxu1 %vm590_vm7, %v6333_v0 }
 0x5dd   :  { %4189 = vmatpush.xpose.msk.msra.mxu2 %vm590_vm7, %v6321_v25  ;;  %v2406_v30 = vpop.permute.xlu0 %2405 }
 0x5e0   :  { %4186 = vmatpush.xpose.msk.msra.mxu1 %vm590_vm7, %v6310_v22  ;;  %v1806_v59 = vpop.xlane.xlu2 %1805 }
 0x5e1   :  { %4190 = vmatpush.xpose.msk.msra.mxu2 %vm590_vm7, %v6348_v19  ;;  %4626 = vrcp.f32 %v1806_v59 }
 0x5e3   :  { %4168 = vmatmul.msk.f32.gmra.mxu0 %vm590_vm7, %v6285_v50 }
 0x5e5   :  { %v6512_v49 = vpop.permute.xlu0 %4392 }
 0x5e6   :  { %v4395_v17 = vunpack.i.h.bf16 %v6512_v49 }
 0x5e7   :  { %v4627_v47 = vpop.eup %4626 }
 0x5e8   :  { %v2326_v54 = vpop.permute.xlu2 %2325  ;;  %v1842_v0 = vmul.f32 %v4627_v47, %v6400_v4 }
 0x5ea   :  { %4160 = vmatmul.msk.f32.gmra.mxu2 %vm897_vm11, %v1842_v0 }
 0x5eb   :  { %4183 = vmatmul.msk.f32.vlgmr.msra.gmra.mxu0 %vm590_vm7, %v6275_v53 }
 0x5ed   :  { %v4403_v22 = vpop.permute.xlu0 %4402 }
 0x5ee   :  { %v4404_v34 = vunpack.i.l.bf16 %v4403_v22  ;;  %v4405_v19 = vunpack.i.h.bf16 %v4403_v22 }
 0x5f0   :  { %v2404_v25 = vpop.permute.xlu2 %2403 }
 0x5f2   :  { %4175 = vmatmul.msk.f32.vlgmr.msrb.gmra.mxu2 %vm590_vm7, %v6258_v37 }
 0x5f3   :  { %2712 = vmatpush.msrb.mxu2 %v4404_v34  ;;  %4184 = vmatmul.msk.f32.gmra.mxu0 %vm590_vm7, %v6294_v7 }
 0x5f5   :  { %2713 = vmatpush.msrb.mxu2 %v4405_v19  ;;  %v4408_v7 = vpop.permute.xlu0 %4407 }
 0x5f6   :  { %v4409_v43 = vunpack.i.l.bf16 %v4408_v7 }
 0x5f8   :  { %v4398_v50 = vpop.permute.xlu2 %4397 }
 0x5f9   :  { %v4399_v52 = vunpack.i.l.bf16 %v4398_v50  ;;  %v4400_v13 = vunpack.i.h.bf16 %v4398_v50 }
 0x5fa   :  { %4176 = vmatmul.msk.f32.gmra.mxu2 %vm590_vm7, %v6313_v36 }
 0x600   :  { %v6524_v4 = vpop.permute.xlu2 %2903 }
 0x602   :  { %4191 = vmatmul.msk.f32.vlgmr.msra.gmra.mxu2 %vm590_vm7, %v6306_v31  ;;  %v4394_v31 = vunpack.i.l.bf16 %v6512_v49 }
 0x608   :  { %v6528_v53 = vpop.permute.xlu2 %2899 }
 0x609   :  { %v6547_v33 = vpop.f32.mrf.mxu0 }
 0x60a   :  { %4192 = vmatmul.msk.f32.gmra.mxu2 %vm590_vm7, %v6389_v20 }
 0x610   :  { %v4413_v37 = vpop.permute.xlu2 %4412 }
 0x611   :  { %v4415_v42 = vunpack.i.h.bf16 %v4413_v37  ;;  %v6593_v49 = vpop.f32.mrf.mxu1 }
 0x612   :  { %v1800_v5 = vpop.xlane.xlu1 %1799 }
 0x613   :  { %4628 = vrcp.f32 %v1800_v5  ;;  %2852 = vmatpush.msra.mxu2 %v4415_v42 }
 0x619   :  { %v4629_v24 = vpop.eup %4628  ;;  %v6553_v61 = vpop.f32.mrf.mxu0 }
 0x61a   :  { %v1840_v11 = vmul.f32 %v4629_v24, %v6436_v23  ;;  %v4414_v23 = vunpack.i.l.bf16 %v4413_v37 }
 0x61c   :  { %4158 = vmatmul.msk.f32.gmra.mxu1 %vm897_vm11, %v1840_v11 }
 0x620   :  { %v1812_v36 = vpop.xlane.xlu0 %1811 }
 0x621   :  { %4630 = vrcp.f32 %v1812_v36 }
 0x624   :  { %4171 = vmatmul.msk.f32.vlgmr.msrb.gmra.mxu1 %vm590_vm7, %v6308_v41 }
 0x625   :  { %2677 = vmatpush.msrb.mxu1 %v4394_v31 }
 0x627   :  { %v4631_v20 = vpop.eup %4630  ;;  %2678 = vmatpush.msrb.mxu1 %v4399_v52 }
 0x628   :  { %v1844_v45 = vmul.f32 %v4631_v20, %v6449_v3  ;;  %v4410_v3 = vunpack.i.h.bf16 %v4408_v7 }
 0x62a   :  { %4162 = vmatmul.msk.f32.gmra.mxu3 %vm897_vm11, %v1844_v45  ;;  %v2408_v38 = vpop.permute.xlu1 %2407 }
 0x62b   :  { %4193 = vmatpush.xpose.msk.msra.mxu3 %vm590_vm7, %v2408_v38 }
 0x62c   :  { %4172 = vmatmul.msk.f32.gmra.mxu1 %vm590_vm7, %v6298_v55 }
 0x62f   :  { %4194 = vmatpush.xpose.msk.msra.mxu3 %vm590_vm7, %v2406_v30  ;;  %v7588_v30 = vld [vmem:[#allocation10_spill] sm:$0xff] }
 0x632   :  { %4179 = vmatmul.msk.f32.vlgmr.msrb.gmra.mxu3 %vm590_vm7, %v7586_v28  ;;  %v2402_v41 = vpop.permute.xlu1 %2401 }
 0x633   :  { %2747 = vmatpush.msrb.mxu3 %v4414_v23 }
 0x634   :  { %4187 = vmatmul.msk.f32.vlgmr.msra.gmra.mxu1 %vm590_vm7, %v6467_v35 }
 0x635   :  { %2817 = vmatpush.msra.mxu1 %v4409_v43 }
 0x637   :  { %2818 = vmatpush.msra.mxu1 %v4410_v3 }
 0x63a   :  { %4180 = vmatmul.msk.f32.gmra.mxu3 %vm590_vm7, %v6415_v26  ;;  %v4388_v55 = vpop.permute.xlu1 %4387 }
 0x63b   :  { %v4389_v10 = vunpack.i.l.bf16 %v4388_v55  ;;  %v4390_v58 = vunpack.i.h.bf16 %v4388_v55 }
 0x63c   :  { %4188 = vmatmul.msk.f32.gmra.mxu1 %vm590_vm7, %v2326_v54  ;;  %v6597_v54 = vpop.f32.mrf.mxu1 }
 0x63d   :  { %2642 = vmatpush.msrb.mxu0 %v4389_v10 }
 0x63f   :  { %2643 = vmatpush.msrb.mxu0 %v4390_v58 }
 0x641   :  { %2782 = vmatpush.msra.mxu0 %v4395_v17 }
 0x642   :  { %4195 = vmatmul.msk.f32.vlgmr.msra.gmra.mxu3 %vm590_vm7, %v2402_v41  ;;  %v6556_v35 = vpop.permute.xlu1 %2905 }
 0x643   :  { %2783 = vmatpush.msra.mxu0 %v4400_v13 }
 0x646   :  { %v6585_v56 = vpop.f32.mrf.mxu2 }
 0x648   :  { %v6558_v48 = vpop.f32.mrf.mxu0 }
 0x64a   :  { %4196 = vmatmul.msk.f32.gmra.mxu3 %vm590_vm7, %v2404_v25  ;;  %v4418_v26 = vpop.permute.xlu1 %4417  ;;  %v6603_v25 = vpop.f32.mrf.mxu3 }
 0x64b   :  { %v4420_v62 = vunpack.i.h.bf16 %v4418_v26  ;;  %v4419_v40 = vunpack.i.l.bf16 %v4418_v26 }
 0x64d   :  { %2748 = vmatpush.msrb.mxu3 %v4419_v40  ;;  %2853 = vmatpush.msra.mxu2 %v4420_v62 }
 0x650   :  { %v6561_v51 = vpop.f32.mrf.mxu0 }
 0x652   :  { %v6607_v37 = vpop.f32.mrf.mxu3 }
 0x657   :  { %v6589_v59 = vpop.f32.mrf.mxu2 }
 0x658   :  { %v2161_v1 = vpop.f32.mrf.mxu0  ;;  %v6601_v22 = vpop.f32.mrf.mxu1 }
 0x659   :  { %v6569_v15 = vadd.f32 %v6566_v8, %v2161_v1 }
 0x65a   :  { %v6622_v31 = vpop.f32.mrf.mxu3 }
 0x65b   :  { %v2440_v12 = vsel %vm897_vm11, %v6569_v15, -inf }
 0x65c   :  { %2441 = vmax.xlane.f32.xlu0 %v2440_v12 }
 0x65f   :  { %v6595_v47 = vpop.f32.mrf.mxu2 }
 0x660   :  { %v2164_v57 = vpop.f32.mrf.mxu0 }
 0x661   :  { %v6579_v32 = vadd.f32 %v6576_v29, %v2164_v57 }
 0x663   :  { %v2443_v60 = vsel %vm897_vm11, %v6579_v32, -inf }
 0x664   :  { %2444 = vmax.xlane.f32.xlu1 %v2443_v60 }
 0x668   :  { %v2317_v50 = vpop.f32.mrf.mxu0 }
 0x66d   :  { %v6599_v0 = vpop.f32.mrf.mxu2 }
 0x670   :  { %2983 = vrot.lane.b32.xlu0 %v7587_v18, %s4769_s17  ;;  %v2320_v1 = vpop.f32.mrf.mxu0 }
 0x671   :  { %v6657_v57 = vadd.f32 %v6576_v29, %v2320_v1 }
 0x675   :  { %v2239_v19 = vpop.f32.mrf.mxu2 }
 0x676   :  { %v6618_v24 = vadd.f32 %v6566_v8, %v2239_v19 }
 0x678   :  { %2938 = vrot.lane.b32.xlu0 %v7588_v30, %s4770_s18  ;;  %v2452_v52 = vsel %vm897_vm11, %v6618_v24, -inf  ;;  %v2467_v30 = vsel %vm897_vm11, %v6657_v57, -inf }
 0x67d   :  { %2944 = vrot.lane.b32.xlu1 %v5499_v46, %s4769_s17  ;;  %v6610_v46 = vadd.f32 %v6566_v8, %v2317_v50  ;;  %v2242_v11 = vpop.f32.mrf.mxu2 }
 0x67e   :  { %v6630_v38 = vadd.f32 %v6576_v29, %v2242_v11 }
 0x67f   :  { %v2464_v7 = vsel %vm897_vm11, %v6610_v46, -inf }
 0x680   :  { %v2455_v43 = vsel %vm897_vm11, %v6630_v38, -inf }
 0x685   :  { %v2395_v41 = vpop.f32.mrf.mxu2 }
 0x686   :  { %v6642_v10 = vadd.f32 %v6566_v8, %v2395_v41 }
 0x688   :  { %v2476_v26 = vsel %vm897_vm11, %v6642_v10, -inf }
 0x68d   :  { %v2398_v62 = vpop.f32.mrf.mxu2 }
 0x68e   :  { %v6654_v12 = vadd.f32 %v6576_v29, %v2398_v62 }
 0x690   :  { %v2479_v18 = vsel %vm897_vm11, %v6654_v12, -inf }
 0x699   :  { %v6605_v34 = vpop.f32.mrf.mxu1 }
 0x6a1   :  { %v2200_v42 = vpop.f32.mrf.mxu1 }
 0x6a2   :  { %v6613_v5 = vadd.f32 %v6566_v8, %v2200_v42  ;;  %2465 = vmax.xlane.f32.xlu0 %v2464_v7  ;;  %v6669_v7 = vpop.permute.xlu0 %2901 }
 0x6a4   :  { %v2446_v36 = vsel %vm897_vm11, %v6613_v5, -inf }
 0x6a5   :  { %2447 = vmax.xlane.f32.xlu2 %v2446_v36 }
 0x6a7   :  { %2453 = vmax.xlane.f32.xlu1 %v2452_v52 }
 0x6a9   :  { %v2203_v20 = vpop.f32.mrf.mxu1 }
 0x6aa   :  { %v6627_v45 = vadd.f32 %v6576_v29, %v2203_v20 }
 0x6ac   :  { %v2449_v23 = vsel %vm897_vm11, %v6627_v45, -inf }
 0x6ad   :  { %v6634_v28 = vpop.f32.mrf.mxu3  ;;  %2450 = vmax.xlane.f32.xlu2 %v2449_v23 }
 0x6af   :  { %2456 = vmax.xlane.f32.xlu1 %v2455_v43 }
 0x6b1   :  { %v2356_v3 = vpop.f32.mrf.mxu1 }
 0x6b2   :  { %v6639_v55 = vadd.f32 %v6566_v8, %v2356_v3 }
 0x6b4   :  { %v2470_v58 = vsel %vm897_vm11, %v6639_v55, -inf }
 0x6b5   :  { %v2278_v17 = vpop.f32.mrf.mxu3  ;;  %2471 = vmax.xlane.f32.xlu2 %v2470_v58 }
 0x6b6   :  { %v6647_v13 = vadd.f32 %v6566_v8, %v2278_v17 }
 0x6b7   :  { %2477 = vmax.xlane.f32.xlu1 %v2476_v26 }
 0x6b8   :  { %v2458_v40 = vsel %vm897_vm11, %v6647_v13, -inf }
 0x6b9   :  { %2459 = vmax.xlane.f32.xlu0 %v2458_v40  ;;  %v2359_v52 = vpop.f32.mrf.mxu1 }
 0x6ba   :  { %v6676_v20 = vadd.f32 %v6576_v29, %v2359_v52 }
 0x6bc   :  { %v2473_v41 = vsel %vm897_vm11, %v6676_v20, -inf }
 0x6bd   :  { %v2281_v60 = vpop.f32.mrf.mxu3 }
 0x6be   :  { %v6664_v19 = vadd.f32 %v6576_v29, %v2281_v60 }
 0x6bf   :  { %2480 = vmax.xlane.f32.xlu1 %v2479_v18 }
 0x6c0   :  { %v2461_v36 = vsel %vm897_vm11, %v6664_v19, -inf }
 0x6c1   :  { %2468 = vmax.xlane.f32.xlu0 %v2467_v30 }
 0x6c5   :  { %v2434_v50 = vpop.f32.mrf.mxu3 }
 0x6c6   :  { %v6667_v42 = vadd.f32 %v6566_v8, %v2434_v50 }
 0x6c8   :  { %v2482_v11 = vsel %vm897_vm11, %v6667_v42, -inf }
 0x6c9   :  { %2483 = vmax.xlane.f32.xlu2 %v2482_v11  ;;  %2462 = vmax.xlane.f32.xlu0 %v2461_v36 }
 0x6cd   :  { %v2437_v8 = vpop.f32.mrf.mxu3 }
 0x6ce   :  { %v6682_v58 = vadd.f32 %v6576_v29, %v2437_v8 }
 0x6cf   :  { %v2442_v23 = vpop.xlane.xlu0 %2441 }
 0x6d0   :  { %v2488_v43 = vsub.f32 %v6569_v15, %v2442_v23  ;;  %v2485_v26 = vsel %vm897_vm11, %v6682_v58, -inf }
 0x6d1   :  { %2474 = vmax.xlane.f32.xlu2 %v2473_v41 }
 0x6d2   :  { %v2504_v3 = vmul.f32 1.442695, %v2488_v43 }
 0x6d4   :  { %4632 = vpow2.f32 %v2504_v3 }
 0x6d7   :  { %v2445_v17 = vpop.xlane.xlu1 %2444 }
 0x6d8   :  { %v2489_v62 = vsub.f32 %v6579_v32, %v2445_v17  ;;  %v6699_v32 = vpop.permute.xlu2 %2942 }
 0x6d9   :  { %2486 = vmax.xlane.f32.xlu2 %v2485_v26 }
 0x6da   :  { %v6687_v40 = vpop.eup %4632  ;;  %v2506_v1 = vmul.f32 1.442695, %v2489_v62 }
 0x6db   :  { %v2536_v60 = vsel %vm897_vm11, %v6687_v40, 0.0 }
 0x6dc   :  { %4634 = vpow2.f32 %v2506_v1  ;;  %2537 = vadd.xlane.f32.xlu0 %v2536_v60 }
 0x6e2   :  { %v6691_v15 = vpop.eup %4634  ;;  %v6695_v18 = vpop.permute.xlu0 %2983 }
 0x6e3   :  { %v2539_v29 = vsel %vm897_vm11, %v6691_v15, 0.0 }
 0x6e4   :  { %2540 = vadd.xlane.f32.xlu0 %v2539_v29 }
 0x6ea   :  { %v6697_v30 = vpop.permute.xlu0 %2938 }
 0x6ef   :  { %v6701_v50 = vpop.permute.xlu1 %2944 }
 0x715   :  { %v2466_v11 = vpop.xlane.xlu0 %2465 }
 0x716   :  { %v2496_v36 = vsub.f32 %v6610_v46, %v2466_v11 }
 0x718   :  { %v2448_v52 = vpop.xlane.xlu2 %2447  ;;  %v2520_v23 = vmul.f32 1.442695, %v2496_v36 }
 0x719   :  { %v2490_v41 = vsub.f32 %v6613_v5, %v2448_v52 }
 0x71a   :  { %4636 = vpow2.f32 %v2520_v23  ;;  %v2454_v43 = vpop.xlane.xlu1 %2453 }
 0x71b   :  { %v2508_v8 = vmul.f32 1.442695, %v2490_v41  ;;  %v2492_v3 = vsub.f32 %v6618_v24, %v2454_v43 }
 0x71d   :  { %4638 = vpow2.f32 %v2508_v8  ;;  %v2512_v17 = vmul.f32 1.442695, %v2492_v3 }
 0x71f   :  { %4640 = vpow2.f32 %v2512_v17 }
 0x720   :  { %v2451_v26 = vpop.xlane.xlu2 %2450  ;;  %v6706_v62 = vpop.eup %4636 }
 0x721   :  { %v2560_v1 = vsel %vm897_vm11, %v6706_v62, 0.0  ;;  %v2491_v46 = vsub.f32 %v6627_v45, %v2451_v26 }
 0x722   :  { %2561 = vadd.xlane.f32.xlu0 %v2560_v1  ;;  %v2457_v52 = vpop.xlane.xlu1 %2456 }
 0x723   :  { %v6710_v60 = vpop.eup %4638  ;;  %v2510_v29 = vmul.f32 1.442695, %v2491_v46  ;;  %v2493_v45 = vsub.f32 %v6630_v38, %v2457_v52 }
 0x724   :  { %v2542_v5 = vsel %vm897_vm11, %v6710_v60, 0.0 }
 0x725   :  { %2543 = vadd.xlane.f32.xlu2 %v2542_v5  ;;  %v6715_v11 = vpop.eup %4640  ;;  %4642 = vpow2.f32 %v2510_v29  ;;  %v2514_v26 = vmul.f32 1.442695, %v2493_v45 }
 0x726   :  { %v2548_v41 = vsel %vm897_vm11, %v6715_v11, 0.0 }
 0x728   :  { %v2472_v24 = vpop.xlane.xlu2 %2471 }
 0x729   :  { %v2498_v36 = vsub.f32 %v6639_v55, %v2472_v24 }
 0x72b   :  { %v2524_v43 = vmul.f32 1.442695, %v2498_v36  ;;  %v6722_v17 = vpop.eup %4642 }
 0x72c   :  { %v2460_v23 = vpop.xlane.xlu0 %2459  ;;  %v2545_v55 = vsel %vm897_vm11, %v6722_v17, 0.0 }
 0x72d   :  { %v2494_v8 = vsub.f32 %v6647_v13, %v2460_v23  ;;  %2549 = vadd.xlane.f32.xlu2 %v2548_v41 }
 0x72f   :  { %v2516_v3 = vmul.f32 1.442695, %v2494_v8 }
 0x731   :  { %4644 = vpow2.f32 %v2516_v3 }
 0x732   :  { %4646 = vpow2.f32 %v2524_v43 }
 0x733   :  { %4648 = vpow2.f32 %v2514_v26 }
 0x734   :  { %v2469_v1 = vpop.xlane.xlu0 %2468 }
 0x735   :  { %v2497_v46 = vsub.f32 %v6657_v57, %v2469_v1  ;;  %2546 = vadd.xlane.f32.xlu2 %v2545_v55  ;;  %v2478_v57 = vpop.xlane.xlu1 %2477 }
 0x736   :  { %v2500_v43 = vsub.f32 %v6642_v10, %v2478_v57 }
 0x737   :  { %v6727_v5 = vpop.eup %4644  ;;  %v2522_v13 = vmul.f32 1.442695, %v2497_v46 }
 0x738   :  { %v2554_v38 = vsel %vm897_vm11, %v6727_v5, 0.0  ;;  %v6731_v29 = vpop.eup %4646  ;;  %v2528_v1 = vmul.f32 1.442695, %v2500_v43 }
 0x739   :  { %4650 = vpow2.f32 %v2522_v13  ;;  %2555 = vadd.xlane.f32.xlu0 %v2554_v38  ;;  %v2566_v52 = vsel %vm897_vm11, %v6731_v29, 0.0  ;;  %v6735_v23 = vpop.eup %4648 }
 0x73a   :  { %v2551_v3 = vsel %vm897_vm11, %v6735_v23, 0.0 }
 0x73c   :  { %v2484_v24 = vpop.xlane.xlu2 %2483  ;;  %v2463_v36 = vpop.xlane.xlu0 %2462 }
 0x73d   :  { %v2495_v41 = vsub.f32 %v6664_v19, %v2463_v36  ;;  %2567 = vadd.xlane.f32.xlu2 %v2566_v52  ;;  %v2502_v38 = vsub.f32 %v6667_v42, %v2484_v24  ;;  %v7589_v42 = vld [vmem:[#allocation3_spill] sm:$0xff] }
 0x73f   :  { %v6738_v8 = vpop.eup %4650  ;;  %v2518_v45 = vmul.f32 1.442695, %v2495_v41  ;;  %v2532_v36 = vmul.f32 1.442695, %v2502_v38  ;;  %v7592_v38 = vld [vmem:[#allocation17_spill] sm:$0xff] }
 0x740   :  { %v2563_v26 = vsel %vm897_vm11, %v6738_v8, 0.0 }
 0x741   :  { %2552 = vadd.xlane.f32.xlu0 %v2551_v3  ;;  %2564 = vadd.xlane.f32.xlu1 %v2563_v26  ;;  %4652 = vpow2.f32 %v2518_v45 }
 0x742   :  { %4654 = vpow2.f32 %v2528_v1 }
 0x744   :  { %v2475_v55 = vpop.xlane.xlu2 %2474 }
 0x745   :  { %v2499_v46 = vsub.f32 %v6676_v20, %v2475_v55  ;;  %v7590_v55 = vld [vmem:[#allocation18_spill] sm:$0xff] }
 0x747   :  { %v2526_v19 = vmul.f32 1.442695, %v2499_v46  ;;  %v6746_v13 = vpop.eup %4652 }
 0x748   :  { %v2557_v10 = vsel %vm897_vm11, %v6746_v13, 0.0  ;;  %v6751_v52 = vpop.eup %4654 }
 0x749   :  { %4656 = vpow2.f32 %v2526_v19  ;;  %2558 = vadd.xlane.f32.xlu1 %v2557_v10  ;;  %v2572_v45 = vsel %vm897_vm11, %v6751_v52, 0.0  ;;  %v7593_v10 = vld [vmem:[#allocation11_spill] sm:$0xff] }
 0x74a   :  { %4658 = vpow2.f32 %v2532_v36 }
 0x74c   :  { %v2487_v36 = vpop.xlane.xlu2 %2486 }
 0x74f   :  { %v6753_v57 = vpop.eup %4656  ;;  %v2538_v41 = vpop.xlane.xlu0 %2537 }
 0x750   :  { %v2569_v20 = vsel %vm897_vm11, %v6753_v57, 0.0  ;;  %4660 = vrcp.f32 %v2538_v41  ;;  %v6761_v24 = vpop.eup %4658  ;;  %v7595_v41 = vld [vmem:[#allocation16_spill] sm:$0xff] }
 0x751   :  { %2570 = vadd.xlane.f32.xlu0 %v2569_v20  ;;  %2573 = vadd.xlane.f32.xlu1 %v2572_v45  ;;  %v2578_v1 = vsel %vm897_vm11, %v6761_v24, 0.0  ;;  %v7596_v45 = vld [vmem:[#allocation5_spill] sm:$0xff] }
 0x755   :  { %2981 = vrot.lane.b32.xlu2 %v7589_v42, %s4769_s17 }
 0x756   :  { %v4661_v43 = vpop.eup %4660 }
 0x757   :  { %v2541_v3 = vpop.xlane.xlu0 %2540  ;;  %v2600_v26 = vmul.f32 %v4661_v43, %v6687_v40  ;;  %v7591_v40 = vld [vmem:[#allocation34_spill] sm:$0xff] }
 0x758   :  { %4662 = vrcp.f32 %v2541_v3 }
 0x759   :  { %2579 = vadd.xlane.f32.xlu1 %v2578_v1  ;;  %4197 = vmatmul.msk.f32.vlgmr.msrb.gmra.mxu0 %vm897_vm11, %v2600_v26  ;;  %v7597_v26 = vld [vmem:[#allocation27_spill] sm:$0xff] }
 0x75a   :  { %4215 = vmatpush.xpose.msk.msrb.mxu0 %vm590_vm7, %v6556_v35  ;;  %v7594_v35 = vld [vmem:[#allocation19_spill] sm:$0xff] }
 0x75d   :  { %2977 = vrot.lane.b32.xlu2 %v7590_v55, %s4770_s18  ;;  %v7598_v55 = vld [vmem:[#allocation6_spill] sm:$0xff] }
 0x75e   :  { %v4663_v46 = vpop.eup %4662  ;;  %4216 = vmatpush.xpose.msk.msrb.mxu0 %vm590_vm7, %v6524_v4  ;;  %v2503_v4 = vsub.f32 %v6682_v58, %v2487_v36 }
 0x75f   :  { %v2601_v19 = vmul.f32 %v4663_v46, %v6691_v15  ;;  %v2481_v15 = vpop.xlane.xlu1 %2480 }
 0x760   :  { %v2534_v20 = vmul.f32 1.442695, %v2503_v4  ;;  %v2501_v42 = vsub.f32 %v6654_v12, %v2481_v15 }
 0x761   :  { %4198 = vmatmul.msk.f32.gmra.mxu0 %vm897_vm11, %v2601_v19 }
 0x762   :  { %4664 = vpow2.f32 %v2534_v20  ;;  %v2530_v43 = vmul.f32 1.442695, %v2501_v42 }
 0x764   :  { %4666 = vpow2.f32 %v2530_v43 }
 0x765   :  { %4422 = vrot.lane.b32.xlu0 %v7591_v40, %s4768_s16  ;;  %2979 = vrot.lane.b32.xlu2 %v7592_v38, %s4770_s18  ;;  %v7599_v38 = vld [vmem:[#allocation30_spill] sm:$0xff] }
 0x768   :  { %v6789_v3 = vpop.eup %4664 }
 0x769   :  { %v2581_v1 = vsel %vm897_vm11, %v6789_v3, 0.0 }
 0x76a   :  { %v6795_v58 = vpop.eup %4666 }
 0x76b   :  { %v2575_v12 = vsel %vm897_vm11, %v6795_v58, 0.0 }
 0x76d   :  { %3022 = vrot.lane.b32.xlu2 %v7593_v10, %s4769_s17 }
 0x772   :  { %2940 = vrot.lane.b32.xlu1 %v7594_v35, %s4770_s18 }
 0x77a   :  { %3016 = vrot.lane.b32.xlu1 %v7595_v41, %s4770_s18 }
 0x782   :  { %3059 = vrot.lane.b32.xlu1 %v7596_v45, %s4769_s17 }
 0x78a   :  { %3057 = vrot.lane.b32.xlu1 %v7597_v26, %s4770_s18 }
 0x78f   :  { %2582 = vadd.xlane.f32.xlu0 %v2581_v1 }
 0x792   :  { %3139 = vrot.lane.b32.xlu1 %v7598_v55, %s4769_s17 }
 0x795   :  { %v2562_v46 = vpop.xlane.xlu0 %2561 }
 0x796   :  { %2576 = vadd.xlane.f32.xlu2 %v2575_v12  ;;  %4668 = vrcp.f32 %v2562_v46 }
 0x798   :  { %v2544_v19 = vpop.xlane.xlu2 %2543 }
 0x799   :  { %4670 = vrcp.f32 %v2544_v19 }
 0x79a   :  { %3133 = vrot.lane.b32.xlu1 %v7599_v38, %s4770_s18 }
 0x79c   :  { %v4669_v10 = vpop.eup %4668 }
 0x79d   :  { %v2608_v35 = vmul.f32 %v4669_v10, %v6706_v62 }
 0x79f   :  { %v4671_v36 = vpop.eup %4670  ;;  %4205 = vmatmul.msk.f32.vlgmr.msra.gmra.mxu0 %vm897_vm11, %v2608_v35 }
 0x7a0   :  { %v2602_v41 = vmul.f32 %v4671_v36, %v6710_v60  ;;  %v2550_v4 = vpop.xlane.xlu2 %2549 }
 0x7a1   :  { %4672 = vrcp.f32 %v2550_v4 }
 0x7a2   :  { %4199 = vmatmul.msk.f32.vlgmr.msrb.gmra.mxu1 %vm897_vm11, %v2602_v41  ;;  %3178 = vrot.lane.b32.xlu1 %v7584_v6, %s4769_s17  ;;  %v7600_v6 = vld [vmem:[#allocation4_spill] sm:$0xff] }
 0x7a3   :  { %3061 = vrot.lane.b32.xlu0 %v5467_v63, %s4769_s17  ;;  %4219 = vmatpush.xpose.msk.msrb.mxu1 %vm590_vm7, %v6701_v50 }
 0x7a7   :  { %v4673_v15 = vpop.eup %4672  ;;  %4220 = vmatpush.xpose.msk.msrb.mxu1 %vm590_vm7, %v6699_v32 }
 0x7a8   :  { %v2604_v62 = vmul.f32 %v4673_v15, %v6715_v11  ;;  %v2547_v60 = vpop.xlane.xlu2 %2546 }
 0x7a9   :  { %4674 = vrcp.f32 %v2547_v60 }
 0x7aa   :  { %4201 = vmatmul.msk.f32.vlgmr.msrb.gmra.mxu2 %vm897_vm11, %v2604_v62  ;;  %3174 = vrot.lane.b32.xlu1 %v7583_v21, %s4770_s18 }
 0x7ab   :  { %3098 = vrot.lane.b32.xlu0 %v7600_v6, %s4769_s17  ;;  %4223 = vmatpush.xpose.msk.msrb.mxu2 %vm590_vm7, %v6695_v18 }
 0x7ac   :  { %v2556_v63 = vpop.xlane.xlu0 %2555 }
 0x7ad   :  { %4676 = vrcp.f32 %v2556_v63 }
 0x7ae   :  { %3020 = vrot.lane.b32.xlu2 %v5474_v2, %s4769_s17  ;;  %v7601_v2 = vld [vmem:[#allocation26_spill] sm:$0xff] }
 0x7af   :  { %v4675_v50 = vpop.eup %4674 }
 0x7b0   :  { %v2568_v32 = vpop.xlane.xlu2 %2567  ;;  %v2603_v11 = vmul.f32 %v4675_v50, %v6722_v17 }
 0x7b1   :  { %4678 = vrcp.f32 %v2568_v32 }
 0x7b2   :  { %4200 = vmatmul.msk.f32.gmra.mxu1 %vm897_vm11, %v2603_v11 }
 0x7b3   :  { %v4677_v20 = vpop.eup %4676  ;;  %3137 = vrot.lane.b32.xlu0 %v5484_v9, %s4769_s17 }
 0x7b4   :  { %v2606_v21 = vmul.f32 %v4677_v20, %v6727_v5  ;;  %v2565_v45 = vpop.xlane.xlu1 %2564  ;;  %v2553_v18 = vpop.xlane.xlu0 %2552  ;;  %v7602_v5 = vld [vmem:[#allocation23_spill] sm:$0xff] }
 0x7b5   :  { %4680 = vrcp.f32 %v2565_v45 }
 0x7b6   :  { %4682 = vrcp.f32 %v2553_v18  ;;  %4203 = vmatmul.msk.f32.vlgmr.msrb.gmra.mxu3 %vm897_vm11, %v2606_v21  ;;  %3018 = vrot.lane.b32.xlu2 %v7601_v2, %s4770_s18 }
 0x7b7   :  { %v4679_v42 = vpop.eup %4678 }
 0x7b8   :  { %v2610_v17 = vmul.f32 %v4679_v42, %v6731_v29  ;;  %v2982_v43 = vpop.permute.xlu2 %2981  ;;  %v7603_v29 = vld [vmem:[#allocation15_spill] sm:$0xff] }
 0x7b9   :  { %4224 = vmatpush.xpose.msk.msrb.mxu2 %vm590_vm7, %v2982_v43 }
 0x7ba   :  { %4207 = vmatmul.msk.f32.vlgmr.msra.gmra.mxu1 %vm897_vm11, %v2610_v17 }
 0x7bb   :  { %v4681_v9 = vpop.eup %4680  ;;  %3135 = vrot.lane.b32.xlu0 %v7602_v5, %s4770_s18 }
 0x7bc   :  { %v4683_v26 = vpop.eup %4682  ;;  %v2609_v1 = vmul.f32 %v4681_v9, %v6738_v8  ;;  %v2559_v55 = vpop.xlane.xlu1 %2558 }
 0x7bd   :  { %v2605_v12 = vmul.f32 %v4683_v26, %v6735_v23  ;;  %4684 = vrcp.f32 %v2559_v55  ;;  %v7604_v23 = vld [vmem:[#allocation20_spill] sm:$0xff] }
 0x7be   :  { %4206 = vmatmul.msk.f32.gmra.mxu0 %vm897_vm11, %v2609_v1  ;;  %3055 = vrot.lane.b32.xlu2 %v7603_v29, %s4770_s18 }
 0x7bf   :  { %4202 = vmatmul.msk.f32.gmra.mxu2 %vm897_vm11, %v2605_v12 }
 0x7c0   :  { %v2978_v10 = vpop.permute.xlu2 %2977 }
 0x7c3   :  { %3172 = vrot.lane.b32.xlu0 %v7585_v39, %s4770_s18  ;;  %v4685_v46 = vpop.eup %4684 }
 0x7c4   :  { %v2571_v19 = vpop.xlane.xlu0 %2570  ;;  %v2574_v38 = vpop.xlane.xlu1 %2573  ;;  %v2607_v8 = vmul.f32 %v4685_v46, %v6746_v13 }
 0x7c5   :  { %4686 = vrcp.f32 %v2571_v19 }
 0x7c6   :  { %4688 = vrcp.f32 %v2574_v38  ;;  %4217 = vmatmul.msk.f32.vlgmr.msrb.gmra.mxu0 %vm590_vm7, %v6528_v53  ;;  %3100 = vrot.lane.b32.xlu2 %v7604_v23, %s4769_s17  ;;  %v7605_v53 = vld [vmem:[#allocation32_spill] sm:$0xff] }
 0x7c7   :  { %4204 = vmatmul.msk.f32.gmra.mxu3 %vm897_vm11, %v2607_v8  ;;  %v6907_v23 = vld [vmem:[%s7402_s7 + $0x30] sm:$0xff] }
 0x7c8   :  { %v2980_v4 = vpop.permute.xlu2 %2979 }
 0x7cb   :  { %v4687_v35 = vpop.eup %4686 }
 0x7cc   :  { %v4689_v36 = vpop.eup %4688  ;;  %v2611_v39 = vmul.f32 %v4687_v35, %v6753_v57  ;;  %v2580_v13 = vpop.xlane.xlu1 %2579 }
 0x7cd   :  { %v2612_v41 = vmul.f32 %v4689_v36, %v6751_v52  ;;  %4690 = vrcp.f32 %v2580_v13  ;;  %v6921_v13 = vld [vmem:[%s7402_s7 + $0x38] sm:$0xff]  ;;  %s4772_s7 = smov 16  }
 0x7ce   :  { %4208 = vmatmul.msk.f32.gmra.mxu1 %vm897_vm11, %v2611_v39  ;;  %4218 = vmatmul.msk.f32.gmra.mxu0 %vm590_vm7, %v6669_v7 }
 0x7cf   :  { %4209 = vmatmul.msk.f32.vlgmr.msra.gmra.mxu2 %vm897_vm11, %v2612_v41  ;;  %3094 = vrot.lane.b32.xlu2 %v7605_v53, %s4770_s18 }
 0x7d0   :  { %v3023_v60 = vpop.permute.xlu2 %3022 }
 0x7d3   :  { %v4691_v57 = vpop.eup %4690 }
 0x7d4   :  { %v2614_v7 = vmul.f32 %v4691_v57, %v6761_v24 }
 0x7d6   :  { %4221 = vmatmul.msk.f32.vlgmr.msrb.gmra.mxu1 %vm590_vm7, %v6697_v30 }
 0x7d7   :  { %3096 = vrot.lane.b32.xlu2 %v7582_v44, %s4770_s18  ;;  %v4423_v52 = vpop.permute.xlu0 %4422 }
 0x7d8   :  { %v4424_v15 = vunpack.i.l.bf16 %v4423_v52  ;;  %v4425_v62 = vunpack.i.h.bf16 %v4423_v52 }
 0x7da   :  { %2887 = vmatpush.msra.mxu3 %v4424_v15 }
 0x7dc   :  { %2888 = vmatpush.msra.mxu3 %v4425_v62 }
 0x7dd   :  { %4211 = vmatmul.msk.f32.vlgmr.msra.gmra.mxu3 %vm897_vm11, %v2614_v7 }
 0x7de   :  { %4227 = vmatpush.xpose.msk.msrb.mxu3 %vm590_vm7, %v3023_v60 }
 0x7df   :  { %3176 = vrot.lane.b32.xlu2 %v7579_v14, %s4769_s17 }
 0x7e4   :  { %v2941_v30 = vpop.permute.xlu1 %2940 }
 0x7e5   :  { %4222 = vmatmul.msk.f32.gmra.mxu1 %vm590_vm7, %v2941_v30  ;;  %v7606_v30 = vld [vmem:[#allocation14_spill] sm:$0xff] }
 0x7ec   :  { %v3017_v44 = vpop.permute.xlu1 %3016 }
 0x7f4   :  { %v3060_v6 = vpop.permute.xlu1 %3059 }
 0x7fc   :  { %v3058_v63 = vpop.permute.xlu1 %3057 }
 0x802   :  { %v2583_v50 = vpop.xlane.xlu0 %2582 }
 0x803   :  { %4692 = vrcp.f32 %v2583_v50 }
 0x804   :  { %v3140_v32 = vpop.permute.xlu1 %3139 }
 0x805   :  { %4239 = vmatpush.xpose.msk.msra.mxu2 %vm590_vm7, %v3140_v32 }
 0x809   :  { %v4693_v24 = vpop.eup %4692  ;;  %v2577_v11 = vpop.xlane.xlu2 %2576 }
 0x80a   :  { %4694 = vrcp.f32 %v2577_v11  ;;  %v2615_v20 = vmul.f32 %v4693_v24, %v6789_v3 }
 0x80c   :  { %4212 = vmatmul.msk.f32.gmra.mxu3 %vm897_vm11, %v2615_v20  ;;  %v3134_v21 = vpop.permute.xlu1 %3133 }
 0x810   :  { %v4695_v14 = vpop.eup %4694 }
 0x811   :  { %v3021_v45 = vpop.permute.xlu2 %3020  ;;  %v2613_v18 = vmul.f32 %v4695_v14, %v6795_v58  ;;  %v6882_v58 = vpop.f32.mrf.mxu0 }
 0x812   :  { %4228 = vmatpush.xpose.msk.msrb.mxu3 %vm590_vm7, %v3021_v45 }
 0x813   :  { %4210 = vmatmul.msk.f32.gmra.mxu2 %vm897_vm11, %v2613_v18 }
 0x814   :  { %v3179_v2 = vpop.permute.xlu1 %3178 }
 0x815   :  { %v3062_v42 = vpop.permute.xlu0 %3061  ;;  %4229 = vmatmul.msk.f32.vlgmr.msrb.gmra.mxu3 %vm590_vm7, %v3017_v44 }
 0x816   :  { %4243 = vmatpush.xpose.msk.msra.mxu3 %vm590_vm7, %v3179_v2  ;;  %4231 = vmatpush.xpose.msk.msra.mxu0 %vm590_vm7, %v3062_v42 }
 0x819   :  { %v3019_v3 = vpop.permute.xlu2 %3018  ;;  %v6889_v26 = vpop.f32.mrf.mxu0 }
 0x81a   :  { %4232 = vmatpush.xpose.msk.msra.mxu0 %vm590_vm7, %v3060_v6 }
 0x81b   :  { %4225 = vmatmul.msk.f32.vlgmr.msrb.gmra.mxu2 %vm590_vm7, %v2978_v10 }
 0x81c   :  { %v3175_v52 = vpop.permute.xlu1 %3174 }
 0x81d   :  { %v3099_v17 = vpop.permute.xlu0 %3098  ;;  %4230 = vmatmul.msk.f32.gmra.mxu3 %vm590_vm7, %v3019_v3 }
 0x81f   :  { %v6893_v1 = vpop.f32.mrf.mxu1 }
 0x821   :  { %v3056_v43 = vpop.permute.xlu2 %3055  ;;  %v6896_v29 = vpop.f32.mrf.mxu0 }
 0x822   :  { %4233 = vmatmul.msk.f32.vlgmr.msra.gmra.mxu0 %vm590_vm7, %v3056_v43 }
 0x823   :  { %4226 = vmatmul.msk.f32.gmra.mxu2 %vm590_vm7, %v2980_v4 }
 0x825   :  { %v3138_v9 = vpop.permute.xlu0 %3137 }
 0x826   :  { %4240 = vmatpush.xpose.msk.msra.mxu2 %vm590_vm7, %v3138_v9 }
 0x829   :  { %v3101_v5 = vpop.permute.xlu2 %3100 }
 0x82a   :  { %4234 = vmatmul.msk.f32.gmra.mxu0 %vm590_vm7, %v3058_v63  ;;  %4235 = vmatpush.xpose.msk.msra.mxu1 %vm590_vm7, %v3101_v5 }
 0x82b   :  { %4241 = vmatmul.msk.f32.vlgmr.msra.gmra.mxu2 %vm590_vm7, %v3134_v21 }
 0x82d   :  { %v3136_v12 = vpop.permute.xlu0 %3135  ;;  %v6936_v6 = vpop.f32.mrf.mxu2 }
 0x82e   :  { %4236 = vmatpush.xpose.msk.msra.mxu1 %vm590_vm7, %v3099_v17 }
 0x82f   :  { %v6899_v46 = vpop.f32.mrf.mxu1 }
 0x831   :  { %v3095_v55 = vpop.permute.xlu2 %3094 }
 0x832   :  { %4237 = vmatmul.msk.f32.vlgmr.msra.gmra.mxu1 %vm590_vm7, %v3095_v55 }
 0x833   :  { %4242 = vmatmul.msk.f32.gmra.mxu2 %vm590_vm7, %v3136_v12 }
 0x835   :  { %v3173_v36 = vpop.permute.xlu0 %3172 }
 0x837   :  { %v6910_v10 = vpop.f32.mrf.mxu1 }
 0x839   :  { %v3097_v19 = vpop.permute.xlu2 %3096  ;;  %v6934_v44 = vpop.f32.mrf.mxu3 }
 0x83a   :  { %4238 = vmatmul.msk.f32.gmra.mxu1 %vm590_vm7, %v3097_v19 }
 0x83b   :  { %v6902_v38 = vpop.f32.mrf.mxu0 }
 0x841   :  { %v3177_v8 = vpop.permute.xlu2 %3176 }
 0x842   :  { %4244 = vmatpush.xpose.msk.msra.mxu3 %vm590_vm7, %v3177_v8  ;;  %v6940_v50 = vpop.f32.mrf.mxu2 }
 0x843   :  { %v2932_v35 = vpop.f32.mrf.mxu0 }
 0x844   :  { %v6913_v39 = vadd.f32 %v6907_v23, %v2932_v35 }
 0x845   :  { %4245 = vmatmul.msk.f32.vlgmr.msra.gmra.mxu3 %vm590_vm7, %v3173_v36 }
 0x846   :  { %v3211_v41 = vsel %vm897_vm11, %v6913_v39, -inf }
 0x847   :  { %3212 = vmax.xlane.f32.xlu2 %v3211_v41 }
 0x84a   :  { %v6938_v63 = vpop.f32.mrf.mxu3 }
 0x84b   :  { %v6923_v53 = vpop.f32.mrf.mxu1  ;;  %v2935_v4 = vpop.f32.mrf.mxu0 }
 0x84c   :  { %v2936_v57 = vadd.f32 %v6921_v13, %v2935_v4 }
 0x84d   :  { %4246 = vmatmul.msk.f32.gmra.mxu3 %vm590_vm7, %v3175_v52 }
 0x84e   :  { %v3214_v15 = vsel %vm897_vm11, %v2936_v57, -inf }
 0x84f   :  { %3215 = vmax.xlane.f32.xlu0 %v3214_v15 }
 0x852   :  { %v6944_v24 = vpop.f32.mrf.mxu2 }
 0x853   :  { %v2971_v62 = vpop.f32.mrf.mxu1 }
 0x854   :  { %v2972_v7 = vadd.f32 %v6907_v23, %v2971_v62 }
 0x856   :  { %v3217_v60 = vsel %vm897_vm11, %v2972_v7, -inf }
 0x857   :  { %3218 = vmax.xlane.f32.xlu1 %v3217_v60 }
 0x860   :  { %v6942_v32 = vpop.f32.mrf.mxu3 }
 0x862   :  { %v2974_v9 = vpop.f32.mrf.mxu1 }
 0x863   :  { %4432 = vrot.lane.b32.xlu0 %v7606_v30, %s4771_s24  ;;  %v6969_v55 = vadd.f32 %v6921_v13, %v2974_v9 }
 0x865   :  { %v3220_v8 = vsel %vm897_vm11, %v6969_v55, -inf }
 0x870   :  { %4427 = vrot.lane.b32.xlu1 %v5508_v16, %s4771_s24 }
 0x88f   :  { %v6946_v11 = vpop.f32.mrf.mxu3 }
 0x896   :  { %v6948_v20 = vpop.f32.mrf.mxu2 }
 0x898   :  { %v3049_v21 = vpop.f32.mrf.mxu3 }
 0x899   :  { %v6951_v14 = vadd.f32 %v6907_v23, %v3049_v21 }
 0x89b   :  { %v3229_v16 = vsel %vm897_vm11, %v6951_v14, -inf }
 0x89c   :  { %3230 = vmax.xlane.f32.xlu1 %v3229_v16 }
 0x89e   :  { %v3010_v45 = vpop.f32.mrf.mxu2 }
 0x89f   :  { %v6956_v18 = vadd.f32 %v6907_v23, %v3010_v45  ;;  %v3088_v2 = vpop.f32.mrf.mxu0 }
 0x8a0   :  { %v6959_v42 = vadd.f32 %v6907_v23, %v3088_v2  ;;  %v3052_v17 = vpop.f32.mrf.mxu3 }
 0x8a1   :  { %v3223_v3 = vsel %vm897_vm11, %v6956_v18, -inf  ;;  %v6966_v5 = vadd.f32 %v6921_v13, %v3052_v17 }
 0x8a2   :  { %3224 = vmax.xlane.f32.xlu0 %v3223_v3  ;;  %v3235_v43 = vsel %vm897_vm11, %v6959_v42, -inf }
 0x8a3   :  { %3236 = vmax.xlane.f32.xlu2 %v3235_v43  ;;  %v3232_v19 = vsel %vm897_vm11, %v6966_v5, -inf }
 0x8a6   :  { %v3013_v12 = vpop.f32.mrf.mxu2 }
 0x8a7   :  { %v3091_v35 = vpop.f32.mrf.mxu0  ;;  %v6996_v2 = vadd.f32 %v6921_v13, %v3013_v12 }
 0x8a8   :  { %v6976_v36 = vadd.f32 %v6921_v13, %v3091_v35 }
 0x8a9   :  { %v3226_v17 = vsel %vm897_vm11, %v6996_v2, -inf }
 0x8aa   :  { %3233 = vmax.xlane.f32.xlu0 %v3232_v19  ;;  %v3238_v15 = vsel %vm897_vm11, %v6976_v36, -inf }
 0x8ab   :  { %3221 = vmax.xlane.f32.xlu2 %v3220_v8 }
 0x8ae   :  { %v3166_v41 = vpop.f32.mrf.mxu2 }
 0x8af   :  { %v6979_v4 = vadd.f32 %v6907_v23, %v3166_v41  ;;  %v3127_v62 = vpop.f32.mrf.mxu1 }
 0x8b0   :  { %v6986_v60 = vadd.f32 %v6907_v23, %v3127_v62 }
 0x8b1   :  { %v3247_v52 = vsel %vm897_vm11, %v6979_v4, -inf }
 0x8b2   :  { %3248 = vmax.xlane.f32.xlu1 %v3247_v52  ;;  %v3241_v45 = vsel %vm897_vm11, %v6986_v60, -inf }
 0x8b3   :  { %3239 = vmax.xlane.f32.xlu2 %v3238_v15 }
 0x8b6   :  { %v3169_v30 = vpop.f32.mrf.mxu2 }
 0x8b7   :  { %v6989_v21 = vadd.f32 %v6921_v13, %v3169_v30 }
 0x8b9   :  { %v3250_v16 = vsel %vm897_vm11, %v6989_v21, -inf }
 0x8ba   :  { %3251 = vmax.xlane.f32.xlu1 %v3250_v16 }
 0x8bb   :  { %3242 = vmax.xlane.f32.xlu2 %v3241_v45 }
 0x8c2   :  { %v3216_v3 = vpop.xlane.xlu0 %3215 }
 0x8c3   :  { %v3260_v43 = vsub.f32 %v2936_v57, %v3216_v3  ;;  %3227 = vmax.xlane.f32.xlu2 %v3226_v17  ;;  %v3213_v3 = vpop.xlane.xlu2 %3212 }
 0x8c4   :  { %v3259_v17 = vsub.f32 %v6913_v39, %v3213_v3 }
 0x8c5   :  { %v3277_v9 = vmul.f32 1.442695, %v3260_v43 }
 0x8c6   :  { %v3275_v43 = vmul.f32 1.442695, %v3259_v17 }
 0x8c7   :  { %4696 = vpow2.f32 %v3277_v9 }
 0x8c8   :  { %v3205_v17 = vpop.f32.mrf.mxu3 }
 0x8ca   :  { %v3219_v19 = vpop.xlane.xlu1 %3218 }
 0x8cb   :  { %v3261_v8 = vsub.f32 %v2972_v7, %v3219_v19 }
 0x8cd   :  { %v7000_v35 = vpop.eup %4696  ;;  %v3279_v41 = vmul.f32 1.442695, %v3261_v8  ;;  %v3130_v8 = vpop.f32.mrf.mxu1 }
 0x8ce   :  { %v3310_v52 = vsel %vm897_vm11, %v7000_v35, 0.0 }
 0x8cf   :  { %4698 = vpow2.f32 %v3279_v41  ;;  %3311 = vadd.xlane.f32.xlu0 %v3310_v52  ;;  %v7016_v41 = vadd.f32 %v6921_v13, %v3130_v8 }
 0x8d0   :  { %4700 = vpow2.f32 %v3275_v43 }
 0x8d5   :  { %v7004_v12 = vpop.eup %4698  ;;  %v4433_v15 = vpop.permute.xlu0 %4432 }
 0x8d6   :  { %v4434_v62 = vunpack.i.l.bf16 %v4433_v15  ;;  %v3313_v57 = vsel %vm897_vm11, %v7004_v12, 0.0  ;;  %v4435_v30 = vunpack.i.h.bf16 %v4433_v15  ;;  %v7011_v9 = vpop.eup %4700 }
 0x8d7   :  { %3314 = vadd.xlane.f32.xlu0 %v3313_v57  ;;  %v3307_v19 = vsel %vm897_vm11, %v7011_v9, 0.0 }
 0x8d8   :  { %3448 = vmatpush.msrb.mxu1 %v4434_v62 }
 0x8da   :  { %3449 = vmatpush.msrb.mxu1 %v4435_v30 }
 0x8db   :  { %4437 = vrot.lane.b32.xlu2 %v7580_v27, %s4771_s24  ;;  %v3244_v27 = vsel %vm897_vm11, %v7016_v41, -inf }
 0x8e2   :  { %v4428_v7 = vpop.permute.xlu1 %4427 }
 0x8e3   :  { %v4429_v16 = vunpack.i.l.bf16 %v4428_v7  ;;  %v4430_v45 = vunpack.i.h.bf16 %v4428_v7 }
 0x8e5   :  { %3413 = vmatpush.msrb.mxu0 %v4429_v16 }
 0x8e7   :  { %3414 = vmatpush.msrb.mxu0 %v4430_v45 }
 0x904   :  { %3308 = vadd.xlane.f32.xlu2 %v3307_v19 }
 0x90c   :  { %3245 = vmax.xlane.f32.xlu2 %v3244_v27 }
 0x90f   :  { %v3231_v52 = vpop.xlane.xlu1 %3230 }
 0x910   :  { %v3265_v57 = vsub.f32 %v6951_v14, %v3231_v52 }
 0x912   :  { %v3287_v7 = vmul.f32 1.442695, %v3265_v57  ;;  %v3208_v57 = vpop.f32.mrf.mxu3 }
 0x915   :  { %v3225_v15 = vpop.xlane.xlu0 %3224 }
 0x916   :  { %v3263_v39 = vsub.f32 %v6956_v18, %v3225_v15  ;;  %v7021_v62 = vpop.xlane.xlu2 %3236 }
 0x918   :  { %v3283_v30 = vmul.f32 1.442695, %v3263_v39 }
 0x91a   :  { %4702 = vpow2.f32 %v3283_v30 }
 0x91b   :  { %4704 = vpow2.f32 %v3287_v7  ;;  %v7040_v7 = vadd.f32 %v6907_v23, %v3205_v17 }
 0x91d   :  { %v3234_v18 = vpop.xlane.xlu0 %3233 }
 0x91e   :  { %v3222_v16 = vpop.xlane.xlu2 %3221  ;;  %v3266_v27 = vsub.f32 %v6966_v5, %v3234_v18  ;;  %v7043_v5 = vadd.f32 %v6921_v13, %v3208_v57 }
 0x91f   :  { %v3262_v45 = vsub.f32 %v6969_v55, %v3222_v16 }
 0x920   :  { %v7025_v3 = vpop.eup %4702  ;;  %v3289_v30 = vmul.f32 1.442695, %v3266_v27 }
 0x921   :  { %v3281_v43 = vmul.f32 1.442695, %v3262_v45  ;;  %v3319_v19 = vsel %vm897_vm11, %v7025_v3, 0.0  ;;  %v7029_v8 = vpop.eup %4704 }
 0x922   :  { %3320 = vadd.xlane.f32.xlu1 %v3319_v19  ;;  %v3325_v15 = vsel %vm897_vm11, %v7029_v8, 0.0  ;;  %v3256_v19 = vsel %vm897_vm11, %v7043_v5, -inf }
 0x923   :  { %4706 = vpow2.f32 %v3281_v43  ;;  %v3253_v43 = vsel %vm897_vm11, %v7040_v7, -inf }
 0x924   :  { %4708 = vpow2.f32 %v3289_v30 }
 0x926   :  { %v3240_v14 = vpop.xlane.xlu2 %3239 }
 0x927   :  { %v3268_v55 = vsub.f32 %v6976_v36, %v3240_v14 }
 0x929   :  { %v7032_v52 = vpop.eup %4706  ;;  %v3293_v16 = vmul.f32 1.442695, %v3268_v55 }
 0x92a   :  { %3326 = vadd.xlane.f32.xlu1 %v3325_v15  ;;  %v3316_v39 = vsel %vm897_vm11, %v7032_v52, 0.0  ;;  %v7050_v23 = vpop.eup %4708 }
 0x92b   :  { %3317 = vadd.xlane.f32.xlu2 %v3316_v39  ;;  %4710 = vpow2.f32 %v3293_v16 }
 0x92e   :  { %v3243_v45 = vpop.xlane.xlu2 %3242 }
 0x92f   :  { %v3269_v36 = vsub.f32 %v6986_v60, %v3243_v45  ;;  %v3328_v60 = vsel %vm897_vm11, %v7050_v23, 0.0 }
 0x931   :  { %v3295_v18 = vmul.f32 1.442695, %v3269_v36  ;;  %v7052_v14 = vpop.eup %4710 }
 0x932   :  { %3254 = vmax.xlane.f32.xlu1 %v3253_v43  ;;  %v3334_v55 = vsel %vm897_vm11, %v7052_v14, 0.0 }
 0x933   :  { %3257 = vmax.xlane.f32.xlu2 %v3256_v19  ;;  %4712 = vpow2.f32 %v3295_v18 }
 0x936   :  { %v3228_v17 = vpop.xlane.xlu2 %3227 }
 0x937   :  { %v3264_v13 = vsub.f32 %v6996_v2, %v3228_v17  ;;  %v7607_v17 = vld [vmem:[#allocation12_spill] sm:$0xff] }
 0x939   :  { %v3285_v27 = vmul.f32 1.442695, %v3264_v13  ;;  %v7059_v39 = vpop.eup %4712  ;;  %v7608_v13 = vld [vmem:[#allocation13_spill] sm:$0xff] }
 0x93a   :  { %3329 = vadd.xlane.f32.xlu1 %v3328_v60  ;;  %v3337_v45 = vsel %vm897_vm11, %v7059_v39, 0.0  ;;  %v7610_v60 = vld [vmem:[#allocation9_spill] sm:$0xff] }
 0x93b   :  { %4714 = vpow2.f32 %v3285_v27  ;;  %3335 = vadd.xlane.f32.xlu2 %v3334_v55  ;;  %v7609_v27 = vld [vmem:[#allocation24_spill] sm:$0xff]  ;;  %v3267_v55 = vsub.f32 %v6959_v42, %v7021_v62 }
 0x93e   :  { %v4438_v15 = vpop.permute.xlu2 %4437 }
 0x93f   :  { %v4439_v57 = vunpack.i.l.bf16 %v4438_v15  ;;  %v4440_v16 = vunpack.i.h.bf16 %v4438_v15  ;;  %v3291_v15 = vmul.f32 1.442695, %v3267_v55 }
 0x941   :  { %v7061_v30 = vpop.eup %4714  ;;  %3483 = vmatpush.msrb.mxu2 %v4439_v57  ;;  %v3249_v57 = vpop.xlane.xlu1 %3248 }
 0x942   :  { %v3312_v2 = vpop.xlane.xlu0 %3311  ;;  %v3322_v36 = vsel %vm897_vm11, %v7061_v30, 0.0 }
 0x943   :  { %3338 = vadd.xlane.f32.xlu2 %v3337_v45  ;;  %3484 = vmatpush.msrb.mxu2 %v4440_v16  ;;  %v3271_v16 = vsub.f32 %v6979_v4, %v3249_v57 }
 0x944   :  { %3323 = vadd.xlane.f32.xlu0 %v3322_v36 }
 0x945   :  { %v3299_v45 = vmul.f32 1.442695, %v3271_v16 }
 0x94a   :  { %v3315_v43 = vpop.xlane.xlu0 %3314 }
 0x94b   :  { %4716 = vrcp.f32 %v3315_v43  ;;  %v3252_v43 = vpop.xlane.xlu1 %3251 }
 0x94c   :  { %4718 = vpow2.f32 %v3291_v15 }
 0x951   :  { %v4717_v19 = vpop.eup %4716 }
 0x952   :  { %v3373_v18 = vmul.f32 %v4717_v19, %v7004_v12  ;;  %v7080_v36 = vpop.eup %4718 }
 0x953   :  { %4447 = vrot.lane.b32.xlu1 %v7607_v17, %s4771_s24  ;;  %v3331_v62 = vsel %vm897_vm11, %v7080_v36, 0.0 }
 0x954   :  { %4249 = vmatmul.msk.f32.vlgmr.msrb.gmra.mxu1 %vm897_vm11, %v3373_v18 }
 0x958   :  { %4442 = vrot.lane.b32.xlu0 %v7608_v13, %s4771_s24  ;;  %v3272_v13 = vsub.f32 %v6989_v21, %v3252_v43 }
 0x95b   :  { %4452 = vrot.lane.b32.xlu2 %v7609_v27, %s4771_s24 }
 0x963   :  { %4457 = vrot.lane.b32.xlu2 %v7610_v60, %s4771_s24  ;;  %v3301_v60 = vmul.f32 1.442695, %v3272_v13 }
 0x977   :  { %v3309_v12 = vpop.xlane.xlu2 %3308 }
 0x978   :  { %4720 = vrcp.f32 %v3309_v12 }
 0x979   :  { %4722 = vrcp.f32 %v3312_v2 }
 0x97a   :  { %4724 = vpow2.f32 %v3299_v45 }
 0x97e   :  { %v4721_v19 = vpop.eup %4720 }
 0x97f   :  { %v3371_v18 = vmul.f32 %v4721_v19, %v7011_v9  ;;  %v3246_v17 = vpop.xlane.xlu2 %3245  ;;  %v4723_v27 = vpop.eup %4722 }
 0x980   :  { %v3270_v42 = vsub.f32 %v7016_v41, %v3246_v17  ;;  %v7088_v55 = vpop.eup %4724  ;;  %v3372_v9 = vmul.f32 %v4723_v27, %v7000_v35 }
 0x981   :  { %4247 = vmatmul.msk.f32.vlgmr.msrb.gmra.mxu0 %vm897_vm11, %v3371_v18  ;;  %v3343_v21 = vsel %vm897_vm11, %v7088_v55, 0.0 }
 0x982   :  { %v3297_v4 = vmul.f32 1.442695, %v3270_v42  ;;  %3332 = vadd.xlane.f32.xlu0 %v3331_v62 }
 0x984   :  { %4726 = vpow2.f32 %v3297_v4 }
 0x985   :  { %4728 = vpow2.f32 %v3301_v60 }
 0x989   :  { %4248 = vmatmul.msk.f32.gmra.mxu0 %vm897_vm11, %v3372_v9 }
 0x98a   :  { %v7094_v41 = vpop.eup %4726  ;;  %3344 = vadd.xlane.f32.xlu0 %v3343_v21 }
 0x98b   :  { %v3340_v2 = vsel %vm897_vm11, %v7094_v41, 0.0  ;;  %v7098_v15 = vpop.eup %4728 }
 0x98c   :  { %3341 = vadd.xlane.f32.xlu1 %v3340_v2  ;;  %v3346_v57 = vsel %vm897_vm11, %v7098_v15, 0.0 }
 0x992   :  { %3347 = vadd.xlane.f32.xlu0 %v3346_v57 }
 0x995   :  { %v3321_v35 = vpop.xlane.xlu1 %3320 }
 0x996   :  { %4730 = vrcp.f32 %v3321_v35 }
 0x99c   :  { %v4731_v12 = vpop.eup %4730 }
 0x99d   :  { %v3375_v16 = vmul.f32 %v4731_v12, %v7025_v3  ;;  %v3327_v45 = vpop.xlane.xlu1 %3326 }
 0x99e   :  { %v3318_v43 = vpop.xlane.xlu2 %3317 }
 0x99f   :  { %4732 = vrcp.f32 %v3318_v43  ;;  %4251 = vmatmul.msk.f32.vlgmr.msrb.gmra.mxu2 %vm897_vm11, %v3375_v16 }
 0x9a5   :  { %v4733_v19 = vpop.eup %4732  ;;  %v3255_v18 = vpop.xlane.xlu1 %3254 }
 0x9a6   :  { %4462 = vrot.lane.b32.xlu0 %v7591_v40, %s4771_s24  ;;  %v3273_v17 = vsub.f32 %v7040_v7, %v3255_v18  ;;  %v3258_v13 = vpop.xlane.xlu2 %3257  ;;  %v3374_v42 = vmul.f32 %v4733_v19, %v7032_v52 }
 0x9a7   :  { %v3274_v62 = vsub.f32 %v7043_v5, %v3258_v13 }
 0x9a8   :  { %v3303_v4 = vmul.f32 1.442695, %v3273_v17  ;;  %4250 = vmatmul.msk.f32.gmra.mxu1 %vm897_vm11, %v3374_v42 }
 0x9a9   :  { %v3305_v3 = vmul.f32 1.442695, %v3274_v62 }
 0x9aa   :  { %4734 = vpow2.f32 %v3303_v4 }
 0x9ab   :  { %4736 = vpow2.f32 %v3305_v3 }
 0x9ae   :  { %3747 = vrot.lane.b32.xlu0 %v6882_v58, %s4772_s7  ;;  %v3336_v27 = vpop.xlane.xlu2 %3335  ;;  %v3330_v58 = vpop.xlane.xlu1 %3329 }
 0x9b0   :  { %v7112_v60 = vpop.eup %4734 }
 0x9b1   :  { %v7114_v40 = vpop.eup %4736  ;;  %v3349_v52 = vsel %vm897_vm11, %v7112_v60, 0.0 }
 0x9b2   :  { %3350 = vadd.xlane.f32.xlu2 %v3349_v52  ;;  %v3352_v7 = vsel %vm897_vm11, %v7114_v40, 0.0 }
 0x9b3   :  { %3353 = vadd.xlane.f32.xlu1 %v3352_v7 }
 0x9b6   :  { %3685 = vrot.lane.b32.xlu0 %v6553_v61, %s4773_s25  ;;  %v3339_v5 = vpop.xlane.xlu2 %3338 }
 0x9b7   :  { %v3324_v9 = vpop.xlane.xlu0 %3323 }
 0x9b8   :  { %4738 = vrcp.f32 %v3324_v9 }
 0x9b9   :  { %4740 = vrcp.f32 %v3339_v5 }
 0x9ba   :  { %4742 = vrcp.f32 %v3327_v45 }
 0x9bb   :  { %4744 = vrcp.f32 %v3330_v58 }
 0x9be   :  { %v4739_v21 = vpop.eup %4738  ;;  %v4453_v2 = vpop.permute.xlu2 %4452 }
 0x9bf   :  { %v4741_v57 = vpop.eup %4740  ;;  %v4454_v35 = vunpack.i.l.bf16 %v4453_v2  ;;  %v3376_v12 = vmul.f32 %v4739_v21, %v7061_v30  ;;  %v4455_v16 = vunpack.i.h.bf16 %v4453_v2 }
 0x9c0   :  { %v3381_v43 = vmul.f32 %v4741_v57, %v7059_v39  ;;  %v4743_v30 = vpop.eup %4742 }
 0x9c1   :  { %4252 = vmatmul.msk.f32.gmra.mxu2 %vm897_vm11, %v3376_v12  ;;  %3588 = vmatpush.msra.mxu1 %v4454_v35  ;;  %v3377_v45 = vmul.f32 %v4743_v30, %v7029_v8  ;;  %v4745_v3 = vpop.eup %4744 }
 0x9c3   :  { %3589 = vmatpush.msra.mxu1 %v4455_v16 }
 0x9c4   :  { %4257 = vmatmul.msk.f32.vlgmr.msra.gmra.mxu1 %vm897_vm11, %v3381_v43 }
 0x9c5   :  { %v4448_v61 = vpop.permute.xlu1 %4447 }
 0x9c6   :  { %v4449_v19 = vunpack.i.l.bf16 %v4448_v61  ;;  %v4458_v18 = vpop.permute.xlu2 %4457  ;;  %v4450_v13 = vunpack.i.h.bf16 %v4448_v61 }
 0x9c7   :  { %v4459_v17 = vunpack.i.l.bf16 %v4458_v18  ;;  %v4460_v42 = vunpack.i.h.bf16 %v4458_v18  ;;  %v7613_v18 = vld [vmem:[#allocation37_spill] sm:$0xff] }
 0x9c8   :  { %3553 = vmatpush.msra.mxu0 %v4449_v19 }
 0x9c9   :  { %3623 = vmatpush.msra.mxu2 %v4459_v17 }
 0x9ca   :  { %v4443_v62 = vpop.permute.xlu0 %4442  ;;  %3749 = vrot.lane.b32.xlu2 %v6889_v26, %s4772_s7  ;;  %3554 = vmatpush.msra.mxu0 %v4450_v13  ;;  %v3378_v26 = vmul.f32 %v4745_v3, %v7050_v23 }
 0x9cb   :  { %v4444_v4 = vunpack.i.l.bf16 %v4443_v62  ;;  %3624 = vmatpush.msra.mxu2 %v4460_v42  ;;  %v4445_v39 = vunpack.i.h.bf16 %v4443_v62 }
 0x9cc   :  { %3683 = vrot.lane.b32.xlu1 %v6547_v33, %s4773_s25 }
 0x9cd   :  { %3518 = vmatpush.msrb.mxu3 %v4444_v4 }
 0x9cf   :  { %3519 = vmatpush.msrb.mxu3 %v4445_v39 }
 0x9d0   :  { %4253 = vmatmul.msk.f32.vlgmr.msrb.gmra.mxu3 %vm897_vm11, %v3377_v45  ;;  %v7614_v45 = vld [vmem:[#allocation47_spill] sm:$0xff] }
 0x9d1   :  { %v3451_v52 = vpop.f32.mrf.mxu1 }
 0x9d4   :  { %3687 = vrot.lane.b32.xlu1 %v6593_v49, %s4773_s25 }
 0x9d8   :  { %4254 = vmatmul.msk.f32.gmra.mxu3 %vm897_vm11, %v3378_v26 }
 0x9dc   :  { %3815 = vrot.lane.b32.xlu1 %v3451_v52, %s4774_s4 }
 0x9e4   :  { %3753 = vrot.lane.b32.xlu1 %v6899_v46, %s4772_s7 }
 0x9ec   :  { %3755 = vrot.lane.b32.xlu1 %v6936_v6, %s4772_s7 }
 0x9f4   :  { %3757 = vrot.lane.b32.xlu1 %v6940_v50, %s4772_s7 }
 0x9f5   :  { %v3333_v33 = vpop.xlane.xlu0 %3332 }
 0x9f6   :  { %4746 = vrcp.f32 %v3333_v33 }
 0x9f7   :  { %4748 = vrcp.f32 %v3336_v27 }
 0x9fc   :  { %v4747_v49 = vpop.eup %4746  ;;  %3759 = vrot.lane.b32.xlu1 %v6934_v44, %s4772_s7 }
 0x9fd   :  { %v3379_v8 = vmul.f32 %v4747_v49, %v7080_v36  ;;  %v3345_v23 = vpop.xlane.xlu0 %3344  ;;  %v4749_v6 = vpop.eup %4748 }
 0x9fe   :  { %4750 = vrcp.f32 %v3345_v23  ;;  %v3416_v7 = vpop.f32.mrf.mxu0  ;;  %v3380_v44 = vmul.f32 %v4749_v6, %v7052_v14  ;;  %v7615_v23 = vld [vmem:[#allocation35_spill] sm:$0xff] }
 0x9ff   :  { %4255 = vmatmul.msk.f32.vlgmr.msra.gmra.mxu0 %vm897_vm11, %v3379_v8  ;;  %v3342_v46 = vpop.xlane.xlu1 %3341  ;;  %3811 = vrot.lane.b32.xlu0 %v3416_v7, %s4774_s4 }
 0xa00   :  { %4752 = vrcp.f32 %v3342_v46 }
 0xa04   :  { %v4751_v50 = vpop.eup %4750  ;;  %3761 = vrot.lane.b32.xlu1 %v6938_v63, %s4772_s7 }
 0xa05   :  { %v3383_v27 = vmul.f32 %v4751_v50, %v7088_v55  ;;  %v3348_v5 = vpop.xlane.xlu0 %3347 }
 0xa06   :  { %v4753_v36 = vpop.eup %4752  ;;  %4754 = vrcp.f32 %v3348_v5  ;;  %v3419_v9 = vpop.f32.mrf.mxu0 }
 0xa07   :  { %4256 = vmatmul.msk.f32.gmra.mxu0 %vm897_vm11, %v3380_v44  ;;  %4259 = vmatmul.msk.f32.vlgmr.msra.gmra.mxu2 %vm897_vm11, %v3383_v27  ;;  %v3382_v58 = vmul.f32 %v4753_v36, %v7094_v41  ;;  %v7616_v36 = vld [vmem:[#allocation55_spill] sm:$0xff] }
 0xa08   :  { %3813 = vrot.lane.b32.xlu0 %v3419_v9, %s4774_s4 }
 0xa09   :  { %4258 = vmatmul.msk.f32.gmra.mxu1 %vm897_vm11, %v3382_v58 }
 0xa0c   :  { %v4755_v21 = vpop.eup %4754  ;;  %3763 = vrot.lane.b32.xlu1 %v6896_v29, %s4772_s7 }
 0xa0d   :  { %v3384_v63 = vmul.f32 %v4755_v21, %v7098_v15 }
 0xa0f   :  { %4260 = vmatmul.msk.f32.gmra.mxu2 %vm897_vm11, %v3384_v63 }
 0xa10   :  { %3751 = vrot.lane.b32.xlu0 %v6893_v1, %s4772_s7 }
 0xa14   :  { %3765 = vrot.lane.b32.xlu1 %v6902_v38, %s4772_s7 }
 0xa18   :  { %v4463_v14 = vpop.permute.xlu0 %4462  ;;  %3689 = vrot.lane.b32.xlu0 %v6597_v54, %s4773_s25 }
 0xa19   :  { %v4464_v55 = vunpack.i.l.bf16 %v4463_v14  ;;  %v4465_v41 = vunpack.i.h.bf16 %v4463_v14 }
 0xa1b   :  { %3658 = vmatpush.msra.mxu3 %v4464_v55 }
 0xa1c   :  { %3767 = vrot.lane.b32.xlu1 %v6910_v10, %s4772_s7 }
 0xa1d   :  { %3659 = vmatpush.msra.mxu3 %v4465_v41 }
 0xa20   :  { %3691 = vrot.lane.b32.xlu0 %v6585_v56, %s4773_s25 }
 0xa22   :  { %v3486_v10 = vpop.f32.mrf.mxu2 }
 0xa24   :  { %3769 = vrot.lane.b32.xlu1 %v6923_v53, %s4772_s7 }
 0xa25   :  { %v3454_v1 = vpop.f32.mrf.mxu1  ;;  %v3351_v29 = vpop.xlane.xlu2 %3350 }
 0xa26   :  { %4756 = vrcp.f32 %v3351_v29  ;;  %3817 = vrot.lane.b32.xlu2 %v3454_v1, %s4774_s4  ;;  %v3354_v54 = vpop.xlane.xlu1 %3353  ;;  %v7617_v29 = vld [vmem:[#allocation39_spill] sm:$0xff] }
 0xa27   :  { %4758 = vrcp.f32 %v3354_v54 }
 0xa28   :  { %3693 = vrot.lane.b32.xlu0 %v6589_v59, %s4773_s25 }
 0xa2c   :  { %v4757_v38 = vpop.eup %4756  ;;  %3771 = vrot.lane.b32.xlu1 %v6944_v24, %s4772_s7 }
 0xa2d   :  { %v3385_v56 = vmul.f32 %v4757_v38, %v7112_v60  ;;  %v4759_v53 = vpop.eup %4758  ;;  %v7611_v60 = vld [vmem:[#allocation28_spill] sm:$0xff]  ;;  %v3750_v35 = vpop.permute.xlu2 %3749 }
 0xa2e   :  { %3819 = vrot.lane.b32.xlu2 %v3486_v10, %s4774_s4  ;;  %v3386_v59 = vmul.f32 %v4759_v53, %v7114_v40 }
 0xa2f   :  { %4261 = vmatmul.msk.f32.vlgmr.msra.gmra.mxu3 %vm897_vm11, %v3385_v56 }
 0xa30   :  { %3695 = vrot.lane.b32.xlu0 %v6603_v25, %s4773_s25  ;;  %v3911_v25 = vld [vmem:[%s7403_s5 + $0x18] sm:$0xff] }
 0xa31   :  { %3976 = vmatpush.msrb.mxu0 %v3911_v25 }
 0xa34   :  { %3773 = vrot.lane.b32.xlu1 %v6948_v20, %s4772_s7 }
 0xa37   :  { %4262 = vmatmul.msk.f32.gmra.mxu3 %vm897_vm11, %v3386_v59 }
 0xa38   :  { %3697 = vrot.lane.b32.xlu0 %v6607_v37, %s4773_s25  ;;  %v3910_v37 = vld [vmem:[%s7403_s5 + $0x10] sm:$0xff] }
 0xa39   :  { %3977 = vmatpush.msrb.mxu0 %v3910_v37 }
 0xa3c   :  { %3775 = vrot.lane.b32.xlu1 %v6942_v32, %s4772_s7 }
 0xa3e   :  { %v3684_v15 = vpop.permute.xlu1 %3683 }
 0xa3f   :  { %v3859_v40 = vsel %vm590_vm7, %v7611_v60, %v3684_v15  ;;  %v7619_v60 = vld [vmem:[#allocation43_spill] sm:$0xff] }
 0xa40   :  { %3699 = vrot.lane.b32.xlu0 %v6558_v48, %s4773_s25  ;;  %v3909_v48 = vld [vmem:[%s7403_s5 + $0x8] sm:$0xff] }
 0xa41   :  { %3978 = vmatpush.msrb.mxu0 %v3909_v48  ;;  %v3591_v26 = vpop.f32.mrf.mxu1 }
 0xa44   :  { %v3489_v24 = vpop.f32.mrf.mxu2  ;;  %3777 = vrot.lane.b32.xlu1 %v6946_v11, %s4772_s7 }
 0xa45   :  { %3821 = vrot.lane.b32.xlu2 %v3489_v24, %s4774_s4  ;;  %v7618_v24 = vld [vmem:[#allocation42_spill] sm:$0xff] }
 0xa48   :  { %3701 = vrot.lane.b32.xlu0 %v6561_v51, %s4773_s25  ;;  %v3908_v51 = vld [vmem:[%s7403_s5] sm:$0xff] }
 0xa49   :  { %3979 = vmatpush.msrb.mxu0 %v3908_v51 }
 0xa50   :  { %3703 = vrot.lane.b32.xlu0 %v6601_v22, %s4773_s25  ;;  %v3748_v22 = vpop.permute.xlu0 %3747 }
 0xa53   :  { %v3521_v32 = vpop.f32.mrf.mxu3 }
 0xa54   :  { %3823 = vrot.lane.b32.xlu2 %v3521_v32, %s4774_s4 }
 0xa58   :  { %3705 = vrot.lane.b32.xlu0 %v6605_v34, %s4773_s25  ;;  %v3686_v20 = vpop.permute.xlu0 %3685  ;;  %v3875_v34 = vsel %vm897_vm11, %v3859_v40, %v3748_v22 }
 0xa5b   :  { %v3524_v11 = vpop.f32.mrf.mxu3 }
 0xa5c   :  { %3825 = vrot.lane.b32.xlu2 %v3524_v11, %s4774_s4 }
 0xa60   :  { %3707 = vrot.lane.b32.xlu0 %v6595_v47, %s4773_s25  ;;  %v3688_v47 = vpop.permute.xlu1 %3687 }
 0xa61   :  { %v3861_v17 = vsel %vm590_vm7, %v7613_v18, %v3688_v47 }
 0xa68   :  { %3709 = vrot.lane.b32.xlu0 %v6599_v0, %s4773_s25  ;;  %v7612_v0 = vld [vmem:[#allocation29_spill] sm:$0xff]  ;;  %v3816_v19 = vpop.permute.xlu1 %3815 }
 0xa69   :  { %v3860_v12 = vsel %vm590_vm7, %v7612_v0, %v3686_v20  ;;  %v7620_v0 = vld [vmem:[#allocation44_spill] sm:$0xff] }
 0xa6a   :  { %v3876_v16 = vsel %vm897_vm11, %v3860_v12, %v3750_v35 }
 0xa70   :  { %3711 = vrot.lane.b32.xlu0 %v6622_v31, %s4773_s25  ;;  %v3754_v30 = vpop.permute.xlu1 %3753 }
 0xa71   :  { %v3812_v2 = vpop.permute.xlu0 %3811 }
 0xa72   :  { %v3892_v57 = vsel %vm3891_vm4, %v3875_v34, %v3812_v2 }
 0xa73   :  { %4263 = vmatmul.msk.f32.vlgmr.msrb.gmra.mxu0 %vm47_vm0, %v3892_v57 }
 0xa78   :  { %3713 = vrot.lane.b32.xlu0 %v6634_v28, %s4773_s25  ;;  %v3756_v8 = vpop.permute.xlu1 %3755 }
 0xa7a   :  { %v3814_v43 = vpop.permute.xlu0 %3813 }
 0xa7b   :  { %v3893_v31 = vsel %vm3891_vm4, %v3876_v16, %v3814_v43 }
 0xa7c   :  { %v3556_v61 = vpop.f32.mrf.mxu0  ;;  %4264 = vmatmul.msk.f32.gmra.mxu0 %vm47_vm0, %v3893_v31 }
 0xa7d   :  { %3827 = vrot.lane.b32.xlu2 %v3556_v61, %s4774_s4 }
 0xa80   :  { %v3818_v4 = vpop.permute.xlu2 %3817  ;;  %v3758_v58 = vpop.permute.xlu1 %3757 }
 0xa82   :  { %v3752_v13 = vpop.permute.xlu0 %3751 }
 0xa83   :  { %v3877_v28 = vsel %vm897_vm11, %v3861_v17, %v3752_v13 }
 0xa84   :  { %v3559_v42 = vpop.f32.mrf.mxu0  ;;  %v3894_v62 = vsel %vm3891_vm4, %v3877_v28, %v3816_v19  ;;  %v7621_v19 = vld [vmem:[#allocation40_spill] sm:$0xff] }
 0xa85   :  { %4265 = vmatmul.msk.f32.gmra.mxu0 %vm47_vm0, %v3894_v62  ;;  %3829 = vrot.lane.b32.xlu2 %v3559_v42, %s4774_s4 }
 0xa86   :  { %v3594_v46 = vpop.f32.mrf.mxu1 }
 0xa88   :  { %v3820_v6 = vpop.permute.xlu2 %3819  ;;  %v3760_v1 = vpop.permute.xlu1 %3759 }
 0xa8a   :  { %v3690_v39 = vpop.permute.xlu0 %3689  ;;  %v3626_v5 = vpop.f32.mrf.mxu2 }
 0xa8b   :  { %v3862_v3 = vsel %vm590_vm7, %v7614_v45, %v3690_v39  ;;  %v7292_v39 = vld [vmem:[%s7404_s6] ss:$0 sm:$0xff] }
 0xa8c   :  { %v3878_v52 = vsel %vm897_vm11, %v3862_v3, %v3754_v30  ;;  %v7622_v30 = vld [vmem:[#allocation31_spill] sm:$0xff] }
 0xa8d   :  { %3831 = vrot.lane.b32.xlu2 %v3591_v26, %s4774_s4  ;;  %v3895_v33 = vsel %vm3891_vm4, %v3878_v52, %v3818_v4 }
 0xa8e   :  { %4266 = vmatmul.msk.f32.gmra.mxu0 %vm47_vm0, %v3895_v33 }
 0xa90   :  { %v3762_v37 = vpop.permute.xlu1 %3761 }
 0xa92   :  { %v3692_v49 = vpop.permute.xlu0 %3691  ;;  %v3629_v55 = vpop.f32.mrf.mxu2 }
 0xa93   :  { %v3863_v7 = vsel %vm590_vm7, %v7615_v23, %v3692_v49  ;;  %v7623_v23 = vld [vmem:[#allocation49_spill] sm:$0xff] }
 0xa94   :  { %v3879_v50 = vsel %vm897_vm11, %v3863_v7, %v3756_v8 }
 0xa95   :  { %3833 = vrot.lane.b32.xlu2 %v3594_v46, %s4774_s4  ;;  %v3896_v27 = vsel %vm3891_vm4, %v3879_v50, %v3820_v6 }
 0xa96   :  { %4267 = vmatmul.msk.f32.gmra.mxu0 %vm47_vm0, %v3896_v27 }
 0xa98   :  { %v3764_v20 = vpop.permute.xlu1 %3763 }
 0xa9a   :  { %v3694_v44 = vpop.permute.xlu0 %3693 }
 0xa9b   :  { %v3864_v9 = vsel %vm590_vm7, %v7616_v36, %v3694_v44  ;;  %v7624_v36 = vld [vmem:[#allocation33_spill] sm:$0xff] }
 0xa9c   :  { %v3880_v63 = vsel %vm897_vm11, %v3864_v9, %v3758_v58 }
 0xa9d   :  { %3835 = vrot.lane.b32.xlu2 %v3626_v5, %s4774_s4 }
 0xa9f   :  { %v3822_v21 = vpop.permute.xlu2 %3821 }
 0xaa0   :  { %v3897_v14 = vsel %vm3891_vm4, %v3880_v63, %v3822_v21  ;;  %v3766_v34 = vpop.permute.xlu1 %3765 }
 0xaa1   :  { %4268 = vmatmul.msk.f32.gmra.mxu0 %vm47_vm0, %v3897_v14 }
 0xaa2   :  { %v3696_v41 = vpop.permute.xlu0 %3695 }
 0xaa3   :  { %v3865_v54 = vsel %vm590_vm7, %v7617_v29, %v3696_v41 }
 0xaa4   :  { %v3881_v10 = vsel %vm897_vm11, %v3865_v54, %v3760_v1  ;;  %v7625_v54 = vld [vmem:[#allocation48_spill] sm:$0xff] }
 0xaa5   :  { %3837 = vrot.lane.b32.xlu2 %v3629_v55, %s4774_s4 }
 0xaa8   :  { %v3768_v31 = vpop.permute.xlu1 %3767 }
 0xaaa   :  { %v3698_v53 = vpop.permute.xlu0 %3697 }
 0xaab   :  { %v3866_v25 = vsel %vm590_vm7, %v7618_v24, %v3698_v53 }
 0xaac   :  { %v3882_v51 = vsel %vm897_vm11, %v3866_v25, %v3762_v37  ;;  %v7626_v37 = vld [vmem:[#allocation52_spill] sm:$0xff] }
 0xaae   :  { %v3824_v38 = vpop.permute.xlu2 %3823 }
 0xaaf   :  { %v3898_v56 = vsel %vm3891_vm4, %v3881_v10, %v3824_v38 }
 0xab0   :  { %4269 = vmatmul.msk.f32.gmra.mxu0 %vm47_vm0, %v3898_v56  ;;  %v3770_v62 = vpop.permute.xlu1 %3769 }
 0xab2   :  { %v3661_v59 = vpop.f32.mrf.mxu3  ;;  %v3700_v22 = vpop.permute.xlu0 %3699 }
 0xab3   :  { %3839 = vrot.lane.b32.xlu2 %v3661_v59, %s4774_s4  ;;  %v3867_v40 = vsel %vm590_vm7, %v7619_v60, %v3700_v22 }
 0xab4   :  { %v3883_v2 = vsel %vm897_vm11, %v3867_v40, %v3764_v20 }
 0xab6   :  { %v3826_v48 = vpop.permute.xlu2 %3825 }
 0xab7   :  { %v3899_v32 = vsel %vm3891_vm4, %v3882_v51, %v3826_v48 }
 0xab8   :  { %4270 = vmatmul.msk.f32.gmra.mxu0 %vm47_vm0, %v3899_v32  ;;  %v3772_v8 = vpop.permute.xlu1 %3771 }
 0xaba   :  { %v3664_v11 = vpop.f32.mrf.mxu3  ;;  %v3702_v15 = vpop.permute.xlu0 %3701 }
 0xabb   :  { %3841 = vrot.lane.b32.xlu2 %v3664_v11, %s4774_s4  ;;  %v3868_v12 = vsel %vm590_vm7, %v7620_v0, %v3702_v15 }
 0xabc   :  { %v3884_v16 = vsel %vm897_vm11, %v3868_v12, %v3766_v34 }
 0xac0   :  { %v3774_v58 = vpop.permute.xlu1 %3773 }
 0xac2   :  { %v3704_v35 = vpop.permute.xlu0 %3703 }
 0xac3   :  { %v3869_v18 = vsel %vm590_vm7, %v7621_v19, %v3704_v35 }
 0xac4   :  { %v3885_v13 = vsel %vm897_vm11, %v3869_v18, %v3768_v31 }
 0xac8   :  { %v3776_v29 = vpop.permute.xlu1 %3775 }
 0xaca   :  { %v3706_v17 = vpop.permute.xlu0 %3705 }
 0xacb   :  { %v3870_v4 = vsel %vm590_vm7, %v7622_v30, %v3706_v17 }
 0xacc   :  { %v3886_v3 = vsel %vm897_vm11, %v3870_v4, %v3770_v62 }
 0xad0   :  { %v3778_v32 = vpop.permute.xlu1 %3777 }
 0xad2   :  { %v3708_v45 = vpop.permute.xlu0 %3707 }
 0xad3   :  { %v3871_v7 = vsel %vm590_vm7, %v7623_v23, %v3708_v45 }
 0xad4   :  { %v3887_v46 = vsel %vm897_vm11, %v3871_v7, %v3772_v8 }
 0xad7   :  { %v3828_v57 = vpop.permute.xlu2 %3827 }
 0xad8   :  { %v3900_v47 = vsel %vm3891_vm4, %v3883_v2, %v3828_v57 }
 0xad9   :  { %4271 = vmatmul.msk.f32.gmra.mxu0 %vm47_vm0, %v3900_v47 }
 0xada   :  { %v3710_v27 = vpop.permute.xlu0 %3709 }
 0xadb   :  { %v3872_v9 = vsel %vm590_vm7, %v7624_v36, %v3710_v27 }
 0xadc   :  { %v3888_v21 = vsel %vm897_vm11, %v3872_v9, %v3774_v58 }
 0xadf   :  { %v3830_v43 = vpop.permute.xlu2 %3829 }
 0xae0   :  { %v3901_v61 = vsel %vm3891_vm4, %v3884_v16, %v3830_v43 }
 0xae1   :  { %4272 = vmatmul.msk.f32.gmra.mxu0 %vm47_vm0, %v3901_v61 }
 0xae2   :  { %v3712_v1 = vpop.permute.xlu0 %3711 }
 0xae3   :  { %v3873_v38 = vsel %vm590_vm7, %v7625_v54, %v3712_v1 }
 0xae4   :  { %v3889_v53 = vsel %vm897_vm11, %v3873_v38, %v3776_v29 }
 0xae7   :  { %v3832_v28 = vpop.permute.xlu2 %3831 }
 0xae8   :  { %v3902_v42 = vsel %vm3891_vm4, %v3885_v13, %v3832_v28 }
 0xae9   :  { %4273 = vmatmul.msk.f32.gmra.mxu0 %vm47_vm0, %v3902_v42 }
 0xaea   :  { %v3714_v25 = vpop.permute.xlu0 %3713 }
 0xaeb   :  { %v3874_v48 = vsel %vm590_vm7, %v7626_v37, %v3714_v25 }
 0xaec   :  { %v3890_v22 = vsel %vm897_vm11, %v3874_v48, %v3778_v32 }
 0xaef   :  { %v3834_v26 = vpop.permute.xlu2 %3833 }
 0xaf0   :  { %v3903_v52 = vsel %vm3891_vm4, %v3886_v3, %v3834_v26  ;;  %v3981_v33 = vpop.f32.mrf.mxu0 }
 0xaf1   :  { %v3982_v49 = vadd.f32 %v7292_v39, %v3981_v33  ;;  %4274 = vmatmul.msk.f32.gmra.mxu0 %vm47_vm0, %v3903_v52 }
 0xaf3   :  { %4029 = vst.msk [vmem:[%s7405_s8] sm:$0xff] %vm47_vm0, %v3982_v49 }
 0xaf7   :  { %v3836_v6 = vpop.permute.xlu2 %3835 }
 0xaf8   :  { %v3904_v50 = vsel %vm3891_vm4, %v3887_v46, %v3836_v6 }
 0xaf9   :  { %v3984_v5 = vpop.f32.mrf.mxu0  ;;  %4275 = vmatmul.msk.f32.gmra.mxu0 %vm47_vm0, %v3904_v50 }
 0xafa   :  { %v3985_v44 = vadd.f32 %v7292_v39, %v3984_v5 }
 0xafc   :  { %4030 = vst.msk [vmem:[%s7405_s8 + $0x8] sm:$0xff] %vm47_vm0, %v3985_v44 }
 0xaff   :  { %v3838_v63 = vpop.permute.xlu2 %3837 }
 0xb00   :  { %v3905_v14 = vsel %vm3891_vm4, %v3888_v21, %v3838_v63 }
 0xb01   :  { %4276 = vmatmul.msk.f32.gmra.mxu0 %vm47_vm0, %v3905_v14 }
 0xb02   :  { %v3987_v55 = vpop.f32.mrf.mxu0 }
 0xb03   :  { %v3988_v41 = vadd.f32 %v7292_v39, %v3987_v55 }
 0xb05   :  { %4031 = vst.msk [vmem:[%s7405_s8 + $0x10] sm:$0xff] %vm47_vm0, %v3988_v41 }
 0xb0b   :  { %v3990_v10 = vpop.f32.mrf.mxu0 }
 0xb0c   :  { %v3991_v56 = vadd.f32 %v7292_v39, %v3990_v10 }
 0xb0d   :  { %v3840_v59 = vpop.permute.xlu2 %3839 }
 0xb0e   :  { %4032 = vst.msk [vmem:[%s7405_s8 + $0x18] sm:$0xff] %vm47_vm0, %v3991_v56  ;;  %v3906_v24 = vsel %vm3891_vm4, %v3889_v53, %v3840_v59 }
 0xb0f   :  { %4277 = vmatmul.msk.f32.gmra.mxu0 %vm47_vm0, %v3906_v24 }
 0xb13   :  { %v3993_v51 = vpop.f32.mrf.mxu0 }
 0xb14   :  { %v3994_v11 = vadd.f32 %v7292_v39, %v3993_v51 }
 0xb15   :  { %v3842_v20 = vpop.permute.xlu2 %3841 }
 0xb16   :  { %4033 = vst.msk [vmem:[%s7405_s8 + $0x20] sm:$0xff] %vm47_vm0, %v3994_v11  ;;  %v3907_v15 = vsel %vm3891_vm4, %v3890_v22, %v3842_v20 }
 0xb17   :  { %4278 = vmatmul.msk.f32.gmra.mxu0 %vm47_vm0, %v3907_v15 }
 0xb1e   :  { %v3996_v60 = vpop.f32.mrf.mxu0 }
 0xb1f   :  { %v3997_v40 = vadd.f32 %v7292_v39, %v3996_v60 }
 0xb21   :  { %4034 = vst.msk [vmem:[%s7405_s8 + $0x28] sm:$0xff] %vm47_vm0, %v3997_v40 }
 0xb2d   :  { %v3999_v34 = vpop.f32.mrf.mxu0 }
 0xb2e   :  { %v4000_v2 = vadd.f32 %v7292_v39, %v3999_v34 }
 0xb30   :  { %4035 = vst.msk [vmem:[%s7405_s8 + $0x30] sm:$0xff] %vm47_vm0, %v4000_v2 }
 0xb35   :  { %v4002_v57 = vpop.f32.mrf.mxu0 }
 0xb36   :  { %v4003_v47 = vadd.f32 %v7292_v39, %v4002_v57 }
 0xb38   :  { %4036 = vst.msk [vmem:[%s7405_s8 + $0x38] sm:$0xff] %vm47_vm0, %v4003_v47 }
 0xb56   :  { %v4005_v35 = vpop.f32.mrf.mxu0 }
 0xb57   :  { %v4006_v0 = vadd.f32 %v7292_v39, %v4005_v35 }
 0xb59   :  { %4037 = vst.msk [vmem:[%s7405_s8 + $0x40] sm:$0xff] %vm47_vm0, %v4006_v0 }
 0xb5e   :  { %v4008_v12 = vpop.f32.mrf.mxu0 }
 0xb5f   :  { %v4009_v16 = vadd.f32 %v7292_v39, %v4008_v12 }
 0xb61   :  { %4038 = vst.msk [vmem:[%s7405_s8 + $0x48] sm:$0xff] %vm47_vm0, %v4009_v16 }
 0xb66   :  { %v4011_v43 = vpop.f32.mrf.mxu0 }
 0xb67   :  { %v4012_v31 = vadd.f32 %v7292_v39, %v4011_v43 }
 0xb69   :  { %4039 = vst.msk [vmem:[%s7405_s8 + $0x50] sm:$0xff] %vm47_vm0, %v4012_v31 }
 0xb6e   :  { %v4014_v61 = vpop.f32.mrf.mxu0 }
 0xb6f   :  { %v4015_v19 = vadd.f32 %v7292_v39, %v4014_v61 }
 0xb71   :  { %4040 = vst.msk [vmem:[%s7405_s8 + $0x58] sm:$0xff] %vm47_vm0, %v4015_v19 }
 0xb76   :  { %v4017_v18 = vpop.f32.mrf.mxu0 }
 0xb77   :  { %v4018_v17 = vadd.f32 %v7292_v39, %v4017_v18 }
 0xb79   :  { %4041 = vst.msk [vmem:[%s7405_s8 + $0x60] sm:$0xff] %vm47_vm0, %v4018_v17 }
 0xb7e   :  { %v4020_v13 = vpop.f32.mrf.mxu0 }
 0xb7f   :  { %v4021_v28 = vadd.f32 %v7292_v39, %v4020_v13 }
 0xb81   :  { %4042 = vst.msk [vmem:[%s7405_s8 + $0x68] sm:$0xff] %vm47_vm0, %v4021_v28 }
 0xb8c   :  { %v4023_v42 = vpop.f32.mrf.mxu0 }
 0xb8d   :  { %v4024_v62 = vadd.f32 %v7292_v39, %v4023_v42 }
 0xb8f   :  { %4043 = vst.msk [vmem:[%s7405_s8 + $0x70] sm:$0xff] %vm47_vm0, %v4024_v62 }
 0xb94   :  { %v4026_v30 = vpop.f32.mrf.mxu0 }
 0xb95   :  { %v4027_v4 = vadd.f32 %v7292_v39, %v4026_v30 }
 0xb97   :  { %4044 = vst.msk [vmem:[%s7405_s8 + $0x78] sm:$0xff] %vm47_vm0, %v4027_v4 }

</bundles_post_ra>
